<compile_context>
chip_gen: v7x
topology: tpu7x:2x2x1
jax: 0.10.0
libtpu: 0.0.40
codegen_flags: <defaults>
</compile_context>

<pallas_src>
import functools
import math

import jax
import jax.numpy as jnp
import numpy as np
from jax.experimental import pallas as pl
from jax.experimental.pallas import tpu as pltpu

BN_EPS = 1e-5


def gpt_block_kernel(x_ref, qkvw_ref, qkvb_ref, wo_ref, slab_ref, w1_ref, b1_ref, w2_ref,
                     o_ref, k_scr, v_scr, att_scr,
                     *, n_heads, head_dim, tq, recompute_kv):
    qi = pl.program_id(1)
    L = x_ref.shape[1]
    D = n_heads * head_dim

    # Packed per-channel params (f32); rows: [bo, b2, g1/sqrt(1+eps), be1, g2/sqrt(1+eps), be2]
    slab = slab_ref[...]                                                  # (6, D)
    bo, b2 = slab[0:1], slab[1:2]
    g1, be1, g2, be2 = slab[2:3], slab[3:4], slab[4:5], slab[5:6]

    # ---- K / V projections into (H, L, hd) scratch -----------------------------------
    # Per-head weight slabs (D, hd): full-depth contraction; per-head selection everywhere
    # below is a leading-dim index (no sub-128 lane slicing of computed values).
    def project_kv():
        xf = x_ref[0]                                                     # (L, D) bf16
        for h in range(n_heads):
            k_scr[h] = (jnp.dot(xf, qkvw_ref[1, h], preferred_element_type=jnp.float32)
                        + qkvb_ref[1, h]).astype(jnp.bfloat16)
            v_scr[h] = (jnp.dot(xf, qkvw_ref[2, h], preferred_element_type=jnp.float32)
                        + qkvb_ref[2, h]).astype(jnp.bfloat16)

    if recompute_kv:
        project_kv()                       # q axis fully "parallel" (v7x 2-TC, small B)
    else:
        pl.when(qi == 0)(project_kv)       # once per batch element, reused by later q-tiles

    # ---- current query tile -----------------------------------------------------------
    q0 = pl.multiple_of(qi * tq, tq)
    x_bf = x_ref[0, pl.ds(q0, tq), :]                                     # (TQ, D) bf16
    x_f32 = x_bf.astype(jnp.float32)

    # Causal mask hoisted out of the head loop as a single additive bias (finite, NaN-safe).
    row = q0 + jax.lax.broadcasted_iota(jnp.int32, (tq, L), 0)
    col = jax.lax.broadcasted_iota(jnp.int32, (tq, L), 1)
    mask_bias = jnp.where(col > row, jnp.float32(-1e30), jnp.float32(0.0))

    # ---- attention: per-head scores/softmax; heads written to a (TQ, D) bf16 scratch ---
    for h in range(n_heads):                                              # static unroll
        qh = (jnp.dot(x_bf, qkvw_ref[0, h], preferred_element_type=jnp.float32)
              + qkvb_ref[0, h]).astype(jnp.bfloat16)                      # (TQ, hd)
        s = jax.lax.dot_general(qh, k_scr[h], (((1,), (1,)), ((), ())),
                                preferred_element_type=jnp.float32)       # (TQ, L)
        s = s + mask_bias
        s = s - jnp.max(s, axis=-1, keepdims=True)
        p = jnp.exp(s)
        p = p * pl.reciprocal(jnp.sum(p, axis=-1, keepdims=True), approx=True)
        ho = jnp.dot(p.astype(jnp.bfloat16), v_scr[h],
                     preferred_element_type=jnp.float32)                  # (TQ, hd)
        att_scr[:, h * head_dim:(h + 1) * head_dim] = ho.astype(jnp.bfloat16)

    # Single output projection: contracting dim = D (full MXU depth), one matmul.
    attn = jnp.dot(att_scr[...], wo_ref[...], preferred_element_type=jnp.float32) + bo

    # ---- residual + BatchNorm1d #1 (eval; gamma/sqrt(1+eps) pre-folded) ----------------
    res = x_f32 + attn
    adn = res * g1 + be1

    # ---- MLP: Linear(D,4D) -> exact GELU -> Linear(4D,D) (dropout = identity) ----------
    h1 = jnp.dot(res.astype(jnp.bfloat16), w1_ref[...],
                 preferred_element_type=jnp.float32) + b1_ref[...]        # (TQ, 4D)
    h1 = 0.5 * h1 * (1.0 + jax.lax.erf(h1 * (1.0 / math.sqrt(2.0))))
    h2 = jnp.dot(h1.astype(jnp.bfloat16), w2_ref[...],
                 preferred_element_type=jnp.float32) + b2                 # (TQ, D)

    # ---- residual with adn + BatchNorm1d #2 --------------------------------------------
    o_ref[0] = ((h2 + adn) * g2 + be2).astype(o_ref.dtype)


def pack_params(master, n_heads):
    """Fold scales, pre-split per-head Q/K/V weights, cast matmul weights to bf16."""
    (wq, bq, wk, bk, wv, bv, wo, bo, g1, be1, w1, b1, w2, b2, g2, be2) = master
    D = wq.shape[0]
    hd = D // n_heads
    scale = 1.0 / math.sqrt(hd)
    inv_std = 1.0 / math.sqrt(1.0 + BN_EPS)

    def split_w(w):                       # (D, D) -> (H, D, hd)  (per-head output columns)
        return w.reshape(D, n_heads, hd).transpose(1, 0, 2)

    def split_b(b):                       # (1, D) -> (H, 1, hd)
        return b.reshape(n_heads, 1, hd)

    qkv_w = jnp.stack([split_w(wq * scale), split_w(wk), split_w(wv)]
                      ).astype(jnp.bfloat16)                              # (3, H, D, hd)
    qkv_b = jnp.stack([split_b(bq * scale), split_b(bk), split_b(bv)]
                      ).astype(jnp.float32)                               # (3, H, 1, hd)
    slab = jnp.concatenate([bo, b2, g1 * inv_std, be1, g2 * inv_std, be2],
                           axis=0).astype(jnp.float32)                    # (6, D)
    return (qkv_w, qkv_b, wo.astype(jnp.bfloat16), slab,
            w1.astype(jnp.bfloat16), b1.astype(jnp.float32), w2.astype(jnp.bfloat16))


def gpt_block(x, packed, n_heads, q_tile=None, recompute_kv=None):
    B, L, D = x.shape
    head_dim = D // n_heads
    assert head_dim * n_heads == D
    qkv_w, qkv_b, wo, slab, w1, b1, w2 = packed
    D4 = w1.shape[1]

    if q_tile is None:
        # Larger q-tiles amortise per-grid-step overhead and K/V scratch re-reads (v6e sweep).
        q_tile = L if L <= 256 else 256
    assert L % q_tile == 0 and (q_tile % 8 == 0 or q_tile == L)
    n_qt = L // q_tile
    if recompute_kv is None:
        # v7x has 2 TensorCores: with B == 1 the batch axis alone cannot use both, so
        # recompute K/V per q-tile and make the q axis "parallel" as well.
        recompute_kv = (B == 1 and n_qt > 1)

    x_bf = x.astype(jnp.bfloat16)      # boundary cast: halves x HBM traffic / VMEM footprint
    out_dtype = x.dtype
    weights = (qkv_w, qkv_b, wo, slab, w1, b1, w2)

    kernel = functools.partial(gpt_block_kernel, n_heads=n_heads, head_dim=head_dim,
                               tq=q_tile, recompute_kv=recompute_kv)

    def build(single_buffer_weights):
        weight_bytes = sum(int(a.size) * a.dtype.itemsize for a in weights)
        weight_buffers = 1 if single_buffer_weights else 2
        footprint = (
            weight_buffers * weight_bytes                         # resident weights
            + 2 * L * D * 2                                       # x block (bf16, double-buffered)
            + 2 * q_tile * D * np.dtype(out_dtype).itemsize       # output block
            + 2 * (L * D * 2)                                     # K + V scratch (bf16)
            + q_tile * D * 2                                      # attention-output scratch (bf16)
            + 2 * q_tile * D4 * 4                                 # (TQ,4D) f32 GELU activation (+headroom)
            + 4 * q_tile * L * 4                                  # (TQ,L) f32 scores/mask/exp temporaries
            + (2 << 20)                                           # compiler internal / spill slack
        )
        try:
            vmem_cap = pltpu.get_tpu_info().vmem_capacity_bytes
        except Exception:
            vmem_cap = 128 * 1024 * 1024
        # ~85% of physical VMEM: ~109 MiB on v5e/v6e (128 MiB), ~54 MiB on v7x (64 MiB).
        vmem_limit = int(min(int(0.85 * vmem_cap), max(footprint, 8 * 1024 * 1024)))

        def const_spec(shape):
            index_map = lambda b, q: (0,) * len(shape)
            if single_buffer_weights:
                # Block index never changes -> double-buffering only wastes VMEM (v7x critical).
                return pl.BlockSpec(shape, index_map, pipeline_mode=pl.Buffered(1))
            return pl.BlockSpec(shape, index_map)

        grid_spec = pltpu.PrefetchScalarGridSpec(
            num_scalar_prefetch=0,
            grid=(B, n_qt),
            in_specs=[
                pl.BlockSpec((1, L, D), lambda b, q: (b, 0, 0)),  # x: full sequence per batch elem
                const_spec(qkv_w.shape),                          # (3,H,D,hd) per-head QKV weights
                const_spec(qkv_b.shape),                          # (3,H,1,hd) per-head QKV biases
                const_spec(wo.shape),                             # (D,D) output projection
                const_spec(slab.shape),                           # (6,D) biases / BN params
                const_spec(w1.shape),
                const_spec(b1.shape),
                const_spec(w2.shape),
            ],
            out_specs=pl.BlockSpec((1, q_tile, D), lambda b, q: (b, q, 0)),
            scratch_shapes=[pltpu.VMEM((n_heads, L, head_dim), jnp.bfloat16),   # K
                            pltpu.VMEM((n_heads, L, head_dim), jnp.bfloat16),   # V
                            pltpu.VMEM((q_tile, D), jnp.bfloat16)],             # attn output
        )
        return pl.pallas_call(
            kernel,
            out_shape=jax.ShapeDtypeStruct((B, L, D), out_dtype),
            grid_spec=grid_spec,
            compiler_params=pltpu.CompilerParams(
                # q axis carries the K/V scratch unless K/V is recomputed per tile.
                dimension_semantics=("parallel", "parallel" if recompute_kv else "arbitrary"),
                vmem_limit_bytes=vmem_limit,
            ),
        )

    try:
        return build(single_buffer_weights=True)(x_bf, *weights)
    except Exception:
        # TODO(synk): pipeline_mode=pl.Buffered(1) not supported by this Mosaic build;
        # fall back to default double-buffered weight blocks.
        return build(single_buffer_weights=False)(x_bf, *weights)


# ---------------- pure-JAX f32 reference (for correctness check) ----------------
def ref_gpt_block(x, params, n_heads):
    (wq, bq, wk, bk, wv, bv, wo, bo, g1, be1, w1, b1, w2, b2, g2, be2) = params
    B, L, D = x.shape
    hd = D // n_heads
    lin = lambda t, w, b: t @ w + b
    q = lin(x, wq, bq).reshape(B, L, n_heads, hd).transpose(0, 2, 1, 3)
    k = lin(x, wk, bk).reshape(B, L, n_heads, hd).transpose(0, 2, 1, 3)
    v = lin(x, wv, bv).reshape(B, L, n_heads, hd).transpose(0, 2, 1, 3)
    scores = jnp.einsum("bhqd,bhkd->bhqk", q, k) / math.sqrt(hd)
    mask = jnp.triu(jnp.ones((L, L), bool), k=1)
    scores = jnp.where(mask, -jnp.inf, scores)
    w = jax.nn.softmax(scores, axis=-1)
    att = jnp.einsum("bhqk,bhkd->bhqd", w, v).transpose(0, 2, 1, 3).reshape(B, L, D)
    att = lin(att, wo, bo)
    res = x + att
    inv = 1.0 / math.sqrt(1.0 + BN_EPS)
    adn = res * inv * g1 + be1
    h = lin(res, w1, b1)
    h = 0.5 * h * (1.0 + jax.lax.erf(h / math.sqrt(2.0)))
    h = lin(h, w2, b2)
    return (h + adn) * inv * g2 + be2


if __name__ == "__main__":
    # Small shapes; L=16 with q_tile=8 exercises the multi-q-tile (K/V reuse) path.
    # NOTE: toy D=32 < 128 means lane-sparse tiles; correct but not representative --
    # validate once with D a multiple of 128 before production use.
    B, L, D, H = 2, 16, 32, 4

    key = jax.random.PRNGKey(0)
    keys = jax.random.split(key, 16)

    def linear_params(kw, kb, din, dout):
        # PyTorch nn.Linear default init: U(-1/sqrt(in), 1/sqrt(in)); weights as (in, out).
        lim = 1.0 / math.sqrt(din)
        w = jax.random.uniform(kw, (din, dout), jnp.float32, -lim, lim)
        b = jax.random.uniform(kb, (1, dout), jnp.float32, -lim, lim)
        return w, b

    wq, bq = linear_params(keys[0], keys[1], D, D)
    wk, bk = linear_params(keys[2], keys[3], D, D)
    wv, bv = linear_params(keys[4], keys[5], D, D)
    wo, bo = linear_params(keys[6], keys[7], D, D)
    w1, b1 = linear_params(keys[8], keys[9], D, 4 * D)
    w2, b2 = linear_params(keys[10], keys[11], 4 * D, D)
    # BatchNorm1d default affine init: gamma=1, beta=0.
    g1 = jnp.ones((1, D), jnp.float32)
    be1 = jnp.zeros((1, D), jnp.float32)
    g2 = jnp.ones((1, D), jnp.float32)
    be2 = jnp.zeros((1, D), jnp.float32)

    master = (wq, bq, wk, bk, wv, bv, wo, bo,
              g1, be1, w1, b1, w2, b2, g2, be2)
    packed = pack_params(master, H)

    x = jax.random.normal(keys[12], (B, L, D), jnp.float32)
    ref = ref_gpt_block(x, master, H)

    # Path 1: B=2 -> K/V projected once per batch element (q axis "arbitrary").
    out = jax.block_until_ready(gpt_block(x, packed, H, q_tile=8))
    assert out.shape == (B, L, D)
    # bf16 MXU operands + bf16 boundary cast of x + approx reciprocal vs. pure-f32 reference.
    np.testing.assert_allclose(np.asarray(out), np.asarray(ref), rtol=3e-2, atol=3e-2)

    # Path 2: B=1 -> K/V recomputed per q-tile, both grid axes "parallel" (v7x 2-TC shape).
    out1 = jax.block_until_ready(gpt_block(x[:1], packed, H, q_tile=8))
    np.testing.assert_allclose(np.asarray(out1), np.asarray(ref[:1]), rtol=3e-2, atol=3e-2)

    print("KERNEL_OK")
</pallas_src>

<mosaic_0001>
module attributes {stable_mosaic.version = 11 : i64} {
  func.func @gpt_block_kernel(%arg0: i32, %arg1: i32, %arg2: memref<1x16x32xbf16, #tpu.memory_space<vmem>>, %arg3: memref<3x4x32x8xbf16, #tpu.memory_space<vmem>>, %arg4: memref<3x4x1x8xf32, #tpu.memory_space<vmem>>, %arg5: memref<32x32xbf16, #tpu.memory_space<vmem>>, %arg6: memref<6x32xf32, #tpu.memory_space<vmem>>, %arg7: memref<32x128xbf16, #tpu.memory_space<vmem>>, %arg8: memref<1x128xf32, #tpu.memory_space<vmem>>, %arg9: memref<128x32xbf16, #tpu.memory_space<vmem>>, %arg10: memref<1x8x32xf32, #tpu.memory_space<vmem>>, %arg11: memref<4x16x8xbf16, #tpu.memory_space<vmem>>, %arg12: memref<4x16x8xbf16, #tpu.memory_space<vmem>>, %arg13: memref<8x32xbf16, #tpu.memory_space<vmem>>) attributes {dimension_semantics = [#tpu.dimension_semantics<parallel>, #tpu.dimension_semantics<arbitrary>], iteration_bounds = array<i64: 2, 2>, scalar_prefetch = 0 : i64, scratch_operands = 3 : i64, tpu.core_type = #tpu.core_type<tc>, window_params = [{transform_indices = @transform_0, window_bounds = array<i64: 1, 16, 32>}, {pipeline_mode = #tpu.pipeline_mode<synchronous>, transform_indices = @transform_1, window_bounds = array<i64: 3, 4, 32, 8>}, {pipeline_mode = #tpu.pipeline_mode<synchronous>, transform_indices = @transform_2, window_bounds = array<i64: 3, 4, 1, 8>}, {pipeline_mode = #tpu.pipeline_mode<synchronous>, transform_indices = @transform_3, window_bounds = array<i64: 32, 32>}, {pipeline_mode = #tpu.pipeline_mode<synchronous>, transform_indices = @transform_4, window_bounds = array<i64: 6, 32>}, {pipeline_mode = #tpu.pipeline_mode<synchronous>, transform_indices = @transform_5, window_bounds = array<i64: 32, 128>}, {pipeline_mode = #tpu.pipeline_mode<synchronous>, transform_indices = @transform_6, window_bounds = array<i64: 1, 128>}, {pipeline_mode = #tpu.pipeline_mode<synchronous>, transform_indices = @transform_7, window_bounds = array<i64: 128, 32>}, {transform_indices = @transform_8, window_bounds = array<i64: 1, 8, 32>}]} {
    %c0 = arith.constant 0 : index
    %c0_0 = arith.constant 0 : index
    %0 = vector.load %arg6[%c0, %c0_0] : memref<6x32xf32, #tpu.memory_space<vmem>>, vector<6x32xf32>
    %1 = vector.extract_strided_slice %0 {offsets = [0, 0], sizes = [1, 32], strides = [1, 1]} : vector<6x32xf32> to vector<1x32xf32>
    %2 = vector.extract_strided_slice %0 {offsets = [1, 0], sizes = [1, 32], strides = [1, 1]} : vector<6x32xf32> to vector<1x32xf32>
    %3 = vector.extract_strided_slice %0 {offsets = [2, 0], sizes = [1, 32], strides = [1, 1]} : vector<6x32xf32> to vector<1x32xf32>
    %4 = vector.extract_strided_slice %0 {offsets = [3, 0], sizes = [1, 32], strides = [1, 1]} : vector<6x32xf32> to vector<1x32xf32>
    %5 = vector.extract_strided_slice %0 {offsets = [4, 0], sizes = [1, 32], strides = [1, 1]} : vector<6x32xf32> to vector<1x32xf32>
    %6 = vector.extract_strided_slice %0 {offsets = [5, 0], sizes = [1, 32], strides = [1, 1]} : vector<6x32xf32> to vector<1x32xf32>
    %c0_i32 = arith.constant 0 : i32
    %7 = arith.cmpi eq, %arg1, %c0_i32 : i32
    %8 = arith.extui %7 : i1 to i32
    %c0_i32_1 = arith.constant 0 : i32
    %9 = arith.cmpi ne, %8, %c0_i32_1 : i32
    scf.if %9 {
      %c0_102 = arith.constant 0 : index
      %c0_103 = arith.constant 0 : index
      %c0_104 = arith.constant 0 : index
      %173 = vector.load %arg2[%c0_102, %c0_103, %c0_104] : memref<1x16x32xbf16, #tpu.memory_space<vmem>>, vector<1x16x32xbf16>
      %174 = vector.shape_cast %173 : vector<1x16x32xbf16> to vector<16x32xbf16>
      %c1_105 = arith.constant 1 : index
      %c0_106 = arith.constant 0 : index
      %c0_107 = arith.constant 0 : index
      %c0_108 = arith.constant 0 : index
      %175 = vector.load %arg3[%c1_105, %c0_106, %c0_107, %c0_108] : memref<3x4x32x8xbf16, #tpu.memory_space<vmem>>, vector<1x1x32x8xbf16>
      %176 = vector.shape_cast %175 : vector<1x1x32x8xbf16> to vector<32x8xbf16>
      %cst_109 = arith.constant dense<0.000000e+00> : vector<16x8xf32>
      %177 = tpu.matmul %174, %176, %cst_109 {dimension_numbers = #tpu.dot_dimension_numbers<[1], [0], [0], [1], [0, 0, 1, 1], [], []>} : vector<16x32xbf16>, vector<32x8xbf16>, vector<16x8xf32> -> vector<16x8xf32>
      %c1_110 = arith.constant 1 : index
      %c0_111 = arith.constant 0 : index
      %c0_112 = arith.constant 0 : index
      %c0_113 = arith.constant 0 : index
      %178 = vector.load %arg4[%c1_110, %c0_111, %c0_112, %c0_113] : memref<3x4x1x8xf32, #tpu.memory_space<vmem>>, vector<1x1x1x8xf32>
      %179 = vector.shape_cast %178 : vector<1x1x1x8xf32> to vector<1x8xf32>
      %180 = vector.broadcast %179 : vector<1x8xf32> to vector<16x8xf32>
      %181 = arith.addf %177, %180 : vector<16x8xf32>
      %182 = arith.truncf %181 : vector<16x8xf32> to vector<16x8xbf16>
      %c0_114 = arith.constant 0 : index
      %c0_115 = arith.constant 0 : index
      %c0_116 = arith.constant 0 : index
      %183 = vector.load %arg11[%c0_114, %c0_115, %c0_116] : memref<4x16x8xbf16, #tpu.memory_space<vmem>>, vector<1x16x8xbf16>
      %184 = vector.shape_cast %183 : vector<1x16x8xbf16> to vector<16x8xbf16>
      %185 = vector.shape_cast %182 : vector<16x8xbf16> to vector<1x16x8xbf16>
      tpu.vector_store %arg11[%c0_114, %c0_115, %c0_116], %185 {strides = array<i32>} : memref<4x16x8xbf16, #tpu.memory_space<vmem>>, vector<1x16x8xbf16>,
      %c2_117 = arith.constant 2 : index
      %c0_118 = arith.constant 0 : index
      %c0_119 = arith.constant 0 : index
      %c0_120 = arith.constant 0 : index
      %186 = vector.load %arg3[%c2_117, %c0_118, %c0_119, %c0_120] : memref<3x4x32x8xbf16, #tpu.memory_space<vmem>>, vector<1x1x32x8xbf16>
      %187 = vector.shape_cast %186 : vector<1x1x32x8xbf16> to vector<32x8xbf16>
      %cst_121 = arith.constant dense<0.000000e+00> : vector<16x8xf32>
      %188 = tpu.matmul %174, %187, %cst_121 {dimension_numbers = #tpu.dot_dimension_numbers<[1], [0], [0], [1], [0, 0, 1, 1], [], []>} : vector<16x32xbf16>, vector<32x8xbf16>, vector<16x8xf32> -> vector<16x8xf32>
      %c2_122 = arith.constant 2 : index
      %c0_123 = arith.constant 0 : index
      %c0_124 = arith.constant 0 : index
      %c0_125 = arith.constant 0 : index
      %189 = vector.load %arg4[%c2_122, %c0_123, %c0_124, %c0_125] : memref<3x4x1x8xf32, #tpu.memory_space<vmem>>, vector<1x1x1x8xf32>
      %190 = vector.shape_cast %189 : vector<1x1x1x8xf32> to vector<1x8xf32>
      %191 = vector.broadcast %190 : vector<1x8xf32> to vector<16x8xf32>
      %192 = arith.addf %188, %191 : vector<16x8xf32>
      %193 = arith.truncf %192 : vector<16x8xf32> to vector<16x8xbf16>
      %c0_126 = arith.constant 0 : index
      %c0_127 = arith.constant 0 : index
      %c0_128 = arith.constant 0 : index
      %194 = vector.load %arg12[%c0_126, %c0_127, %c0_128] : memref<4x16x8xbf16, #tpu.memory_space<vmem>>, vector<1x16x8xbf16>
      %195 = vector.shape_cast %194 : vector<1x16x8xbf16> to vector<16x8xbf16>
      %196 = vector.shape_cast %193 : vector<16x8xbf16> to vector<1x16x8xbf16>
      tpu.vector_store %arg12[%c0_126, %c0_127, %c0_128], %196 {strides = array<i32>} : memref<4x16x8xbf16, #tpu.memory_space<vmem>>, vector<1x16x8xbf16>,
      %c1_129 = arith.constant 1 : index
      %c1_130 = arith.constant 1 : index
      %c0_131 = arith.constant 0 : index
      %c0_132 = arith.constant 0 : index
      %197 = vector.load %arg3[%c1_129, %c1_130, %c0_131, %c0_132] : memref<3x4x32x8xbf16, #tpu.memory_space<vmem>>, vector<1x1x32x8xbf16>
      %198 = vector.shape_cast %197 : vector<1x1x32x8xbf16> to vector<32x8xbf16>
      %cst_133 = arith.constant dense<0.000000e+00> : vector<16x8xf32>
      %199 = tpu.matmul %174, %198, %cst_133 {dimension_numbers = #tpu.dot_dimension_numbers<[1], [0], [0], [1], [0, 0, 1, 1], [], []>} : vector<16x32xbf16>, vector<32x8xbf16>, vector<16x8xf32> -> vector<16x8xf32>
      %c1_134 = arith.constant 1 : index
      %c1_135 = arith.constant 1 : index
      %c0_136 = arith.constant 0 : index
      %c0_137 = arith.constant 0 : index
      %200 = vector.load %arg4[%c1_134, %c1_135, %c0_136, %c0_137] : memref<3x4x1x8xf32, #tpu.memory_space<vmem>>, vector<1x1x1x8xf32>
      %201 = vector.shape_cast %200 : vector<1x1x1x8xf32> to vector<1x8xf32>
      %202 = vector.broadcast %201 : vector<1x8xf32> to vector<16x8xf32>
      %203 = arith.addf %199, %202 : vector<16x8xf32>
      %204 = arith.truncf %203 : vector<16x8xf32> to vector<16x8xbf16>
      %c1_138 = arith.constant 1 : index
      %c0_139 = arith.constant 0 : index
      %c0_140 = arith.constant 0 : index
      %205 = vector.load %arg11[%c1_138, %c0_139, %c0_140] : memref<4x16x8xbf16, #tpu.memory_space<vmem>>, vector<1x16x8xbf16>
      %206 = vector.shape_cast %205 : vector<1x16x8xbf16> to vector<16x8xbf16>
      %207 = vector.shape_cast %204 : vector<16x8xbf16> to vector<1x16x8xbf16>
      tpu.vector_store %arg11[%c1_138, %c0_139, %c0_140], %207 {strides = array<i32>} : memref<4x16x8xbf16, #tpu.memory_space<vmem>>, vector<1x16x8xbf16>,
      %c2_141 = arith.constant 2 : index
      %c1_142 = arith.constant 1 : index
      %c0_143 = arith.constant 0 : index
      %c0_144 = arith.constant 0 : index
      %208 = vector.load %arg3[%c2_141, %c1_142, %c0_143, %c0_144] : memref<3x4x32x8xbf16, #tpu.memory_space<vmem>>, vector<1x1x32x8xbf16>
      %209 = vector.shape_cast %208 : vector<1x1x32x8xbf16> to vector<32x8xbf16>
      %cst_145 = arith.constant dense<0.000000e+00> : vector<16x8xf32>
      %210 = tpu.matmul %174, %209, %cst_145 {dimension_numbers = #tpu.dot_dimension_numbers<[1], [0], [0], [1], [0, 0, 1, 1], [], []>} : vector<16x32xbf16>, vector<32x8xbf16>, vector<16x8xf32> -> vector<16x8xf32>
      %c2_146 = arith.constant 2 : index
      %c1_147 = arith.constant 1 : index
      %c0_148 = arith.constant 0 : index
      %c0_149 = arith.constant 0 : index
      %211 = vector.load %arg4[%c2_146, %c1_147, %c0_148, %c0_149] : memref<3x4x1x8xf32, #tpu.memory_space<vmem>>, vector<1x1x1x8xf32>
      %212 = vector.shape_cast %211 : vector<1x1x1x8xf32> to vector<1x8xf32>
      %213 = vector.broadcast %212 : vector<1x8xf32> to vector<16x8xf32>
      %214 = arith.addf %210, %213 : vector<16x8xf32>
      %215 = arith.truncf %214 : vector<16x8xf32> to vector<16x8xbf16>
      %c1_150 = arith.constant 1 : index
      %c0_151 = arith.constant 0 : index
      %c0_152 = arith.constant 0 : index
      %216 = vector.load %arg12[%c1_150, %c0_151, %c0_152] : memref<4x16x8xbf16, #tpu.memory_space<vmem>>, vector<1x16x8xbf16>
      %217 = vector.shape_cast %216 : vector<1x16x8xbf16> to vector<16x8xbf16>
      %218 = vector.shape_cast %215 : vector<16x8xbf16> to vector<1x16x8xbf16>
      tpu.vector_store %arg12[%c1_150, %c0_151, %c0_152], %218 {strides = array<i32>} : memref<4x16x8xbf16, #tpu.memory_space<vmem>>, vector<1x16x8xbf16>,
      %c1_153 = arith.constant 1 : index
      %c2_154 = arith.constant 2 : index
      %c0_155 = arith.constant 0 : index
      %c0_156 = arith.constant 0 : index
      %219 = vector.load %arg3[%c1_153, %c2_154, %c0_155, %c0_156] : memref<3x4x32x8xbf16, #tpu.memory_space<vmem>>, vector<1x1x32x8xbf16>
      %220 = vector.shape_cast %219 : vector<1x1x32x8xbf16> to vector<32x8xbf16>
      %cst_157 = arith.constant dense<0.000000e+00> : vector<16x8xf32>
      %221 = tpu.matmul %174, %220, %cst_157 {dimension_numbers = #tpu.dot_dimension_numbers<[1], [0], [0], [1], [0, 0, 1, 1], [], []>} : vector<16x32xbf16>, vector<32x8xbf16>, vector<16x8xf32> -> vector<16x8xf32>
      %c1_158 = arith.constant 1 : index
      %c2_159 = arith.constant 2 : index
      %c0_160 = arith.constant 0 : index
      %c0_161 = arith.constant 0 : index
      %222 = vector.load %arg4[%c1_158, %c2_159, %c0_160, %c0_161] : memref<3x4x1x8xf32, #tpu.memory_space<vmem>>, vector<1x1x1x8xf32>
      %223 = vector.shape_cast %222 : vector<1x1x1x8xf32> to vector<1x8xf32>
      %224 = vector.broadcast %223 : vector<1x8xf32> to vector<16x8xf32>
      %225 = arith.addf %221, %224 : vector<16x8xf32>
      %226 = arith.truncf %225 : vector<16x8xf32> to vector<16x8xbf16>
      %c2_162 = arith.constant 2 : index
      %c0_163 = arith.constant 0 : index
      %c0_164 = arith.constant 0 : index
      %227 = vector.load %arg11[%c2_162, %c0_163, %c0_164] : memref<4x16x8xbf16, #tpu.memory_space<vmem>>, vector<1x16x8xbf16>
      %228 = vector.shape_cast %227 : vector<1x16x8xbf16> to vector<16x8xbf16>
      %229 = vector.shape_cast %226 : vector<16x8xbf16> to vector<1x16x8xbf16>
      tpu.vector_store %arg11[%c2_162, %c0_163, %c0_164], %229 {strides = array<i32>} : memref<4x16x8xbf16, #tpu.memory_space<vmem>>, vector<1x16x8xbf16>,
      %c2_165 = arith.constant 2 : index
      %c2_166 = arith.constant 2 : index
      %c0_167 = arith.constant 0 : index
      %c0_168 = arith.constant 0 : index
      %230 = vector.load %arg3[%c2_165, %c2_166, %c0_167, %c0_168] : memref<3x4x32x8xbf16, #tpu.memory_space<vmem>>, vector<1x1x32x8xbf16>
      %231 = vector.shape_cast %230 : vector<1x1x32x8xbf16> to vector<32x8xbf16>
      %cst_169 = arith.constant dense<0.000000e+00> : vector<16x8xf32>
      %232 = tpu.matmul %174, %231, %cst_169 {dimension_numbers = #tpu.dot_dimension_numbers<[1], [0], [0], [1], [0, 0, 1, 1], [], []>} : vector<16x32xbf16>, vector<32x8xbf16>, vector<16x8xf32> -> vector<16x8xf32>
      %c2_170 = arith.constant 2 : index
      %c2_171 = arith.constant 2 : index
      %c0_172 = arith.constant 0 : index
      %c0_173 = arith.constant 0 : index
      %233 = vector.load %arg4[%c2_170, %c2_171, %c0_172, %c0_173] : memref<3x4x1x8xf32, #tpu.memory_space<vmem>>, vector<1x1x1x8xf32>
      %234 = vector.shape_cast %233 : vector<1x1x1x8xf32> to vector<1x8xf32>
      %235 = vector.broadcast %234 : vector<1x8xf32> to vector<16x8xf32>
      %236 = arith.addf %232, %235 : vector<16x8xf32>
      %237 = arith.truncf %236 : vector<16x8xf32> to vector<16x8xbf16>
      %c2_174 = arith.constant 2 : index
      %c0_175 = arith.constant 0 : index
      %c0_176 = arith.constant 0 : index
      %238 = vector.load %arg12[%c2_174, %c0_175, %c0_176] : memref<4x16x8xbf16, #tpu.memory_space<vmem>>, vector<1x16x8xbf16>
      %239 = vector.shape_cast %238 : vector<1x16x8xbf16> to vector<16x8xbf16>
      %240 = vector.shape_cast %237 : vector<16x8xbf16> to vector<1x16x8xbf16>
      tpu.vector_store %arg12[%c2_174, %c0_175, %c0_176], %240 {strides = array<i32>} : memref<4x16x8xbf16, #tpu.memory_space<vmem>>, vector<1x16x8xbf16>,
      %c1_177 = arith.constant 1 : index
      %c3_178 = arith.constant 3 : index
      %c0_179 = arith.constant 0 : index
      %c0_180 = arith.constant 0 : index
      %241 = vector.load %arg3[%c1_177, %c3_178, %c0_179, %c0_180] : memref<3x4x32x8xbf16, #tpu.memory_space<vmem>>, vector<1x1x32x8xbf16>
      %242 = vector.shape_cast %241 : vector<1x1x32x8xbf16> to vector<32x8xbf16>
      %cst_181 = arith.constant dense<0.000000e+00> : vector<16x8xf32>
      %243 = tpu.matmul %174, %242, %cst_181 {dimension_numbers = #tpu.dot_dimension_numbers<[1], [0], [0], [1], [0, 0, 1, 1], [], []>} : vector<16x32xbf16>, vector<32x8xbf16>, vector<16x8xf32> -> vector<16x8xf32>
      %c1_182 = arith.constant 1 : index
      %c3_183 = arith.constant 3 : index
      %c0_184 = arith.constant 0 : index
      %c0_185 = arith.constant 0 : index
      %244 = vector.load %arg4[%c1_182, %c3_183, %c0_184, %c0_185] : memref<3x4x1x8xf32, #tpu.memory_space<vmem>>, vector<1x1x1x8xf32>
      %245 = vector.shape_cast %244 : vector<1x1x1x8xf32> to vector<1x8xf32>
      %246 = vector.broadcast %245 : vector<1x8xf32> to vector<16x8xf32>
      %247 = arith.addf %243, %246 : vector<16x8xf32>
      %248 = arith.truncf %247 : vector<16x8xf32> to vector<16x8xbf16>
      %c3_186 = arith.constant 3 : index
      %c0_187 = arith.constant 0 : index
      %c0_188 = arith.constant 0 : index
      %249 = vector.load %arg11[%c3_186, %c0_187, %c0_188] : memref<4x16x8xbf16, #tpu.memory_space<vmem>>, vector<1x16x8xbf16>
      %250 = vector.shape_cast %249 : vector<1x16x8xbf16> to vector<16x8xbf16>
      %251 = vector.shape_cast %248 : vector<16x8xbf16> to vector<1x16x8xbf16>
      tpu.vector_store %arg11[%c3_186, %c0_187, %c0_188], %251 {strides = array<i32>} : memref<4x16x8xbf16, #tpu.memory_space<vmem>>, vector<1x16x8xbf16>,
      %c2_189 = arith.constant 2 : index
      %c3_190 = arith.constant 3 : index
      %c0_191 = arith.constant 0 : index
      %c0_192 = arith.constant 0 : index
      %252 = vector.load %arg3[%c2_189, %c3_190, %c0_191, %c0_192] : memref<3x4x32x8xbf16, #tpu.memory_space<vmem>>, vector<1x1x32x8xbf16>
      %253 = vector.shape_cast %252 : vector<1x1x32x8xbf16> to vector<32x8xbf16>
      %cst_193 = arith.constant dense<0.000000e+00> : vector<16x8xf32>
      %254 = tpu.matmul %174, %253, %cst_193 {dimension_numbers = #tpu.dot_dimension_numbers<[1], [0], [0], [1], [0, 0, 1, 1], [], []>} : vector<16x32xbf16>, vector<32x8xbf16>, vector<16x8xf32> -> vector<16x8xf32>
      %c2_194 = arith.constant 2 : index
      %c3_195 = arith.constant 3 : index
      %c0_196 = arith.constant 0 : index
      %c0_197 = arith.constant 0 : index
      %255 = vector.load %arg4[%c2_194, %c3_195, %c0_196, %c0_197] : memref<3x4x1x8xf32, #tpu.memory_space<vmem>>, vector<1x1x1x8xf32>
      %256 = vector.shape_cast %255 : vector<1x1x1x8xf32> to vector<1x8xf32>
      %257 = vector.broadcast %256 : vector<1x8xf32> to vector<16x8xf32>
      %258 = arith.addf %254, %257 : vector<16x8xf32>
      %259 = arith.truncf %258 : vector<16x8xf32> to vector<16x8xbf16>
      %c3_198 = arith.constant 3 : index
      %c0_199 = arith.constant 0 : index
      %c0_200 = arith.constant 0 : index
      %260 = vector.load %arg12[%c3_198, %c0_199, %c0_200] : memref<4x16x8xbf16, #tpu.memory_space<vmem>>, vector<1x16x8xbf16>
      %261 = vector.shape_cast %260 : vector<1x16x8xbf16> to vector<16x8xbf16>
      %262 = vector.shape_cast %259 : vector<16x8xbf16> to vector<1x16x8xbf16>
      tpu.vector_store %arg12[%c3_198, %c0_199, %c0_200], %262 {strides = array<i32>} : memref<4x16x8xbf16, #tpu.memory_space<vmem>>, vector<1x16x8xbf16>,
    } else {
    }
    %c8_i32 = arith.constant 8 : i32
    %10 = arith.muli %arg1, %c8_i32 : i32
    %11 = tpu.assume_multiple %10, 8 : i32
    %c0_2 = arith.constant 0 : index
    %12 = arith.index_cast %11 : i32 to index
    %c0_3 = arith.constant 0 : index
    %13 = vector.load %arg2[%c0_2, %12, %c0_3] : memref<1x16x32xbf16, #tpu.memory_space<vmem>>, vector<1x8x32xbf16>
    %14 = vector.shape_cast %13 : vector<1x8x32xbf16> to vector<8x32xbf16>
    %15 = arith.extf %14 : vector<8x32xbf16> to vector<8x32xf32>
    %16 = tpu.iota {dimensions = array<i32: 0>} : vector<8x16xi32>
    %17 = vector.broadcast %11 : i32 to vector<8x16xi32>
    %18 = arith.addi %17, %16 : vector<8x16xi32>
    %19 = tpu.iota {dimensions = array<i32: 1>} : vector<8x16xi32>
    %20 = arith.cmpi sgt, %19, %18 : vector<8x16xi32>
    %cst = arith.constant -1.000000e+30 : f32
    %cst_4 = arith.constant 0.000000e+00 : f32
    %21 = vector.broadcast %cst : f32 to vector<8x16xf32>
    %22 = vector.broadcast %cst_4 : f32 to vector<8x16xf32>
    %23 = arith.select %20, %21, %22 : vector<8x16xi1>, vector<8x16xf32>
    %c0_5 = arith.constant 0 : index
    %c0_6 = arith.constant 0 : index
    %c0_7 = arith.constant 0 : index
    %c0_8 = arith.constant 0 : index
    %24 = vector.load %arg3[%c0_5, %c0_6, %c0_7, %c0_8] : memref<3x4x32x8xbf16, #tpu.memory_space<vmem>>, vector<1x1x32x8xbf16>
    %25 = vector.shape_cast %24 : vector<1x1x32x8xbf16> to vector<32x8xbf16>
    %cst_9 = arith.constant dense<0.000000e+00> : vector<8x8xf32>
    %26 = tpu.matmul %14, %25, %cst_9 {dimension_numbers = #tpu.dot_dimension_numbers<[1], [0], [0], [1], [0, 0, 1, 1], [], []>} : vector<8x32xbf16>, vector<32x8xbf16>, vector<8x8xf32> -> vector<8x8xf32>
    %c0_10 = arith.constant 0 : index
    %c0_11 = arith.constant 0 : index
    %c0_12 = arith.constant 0 : index
    %c0_13 = arith.constant 0 : index
    %27 = vector.load %arg4[%c0_10, %c0_11, %c0_12, %c0_13] : memref<3x4x1x8xf32, #tpu.memory_space<vmem>>, vector<1x1x1x8xf32>
    %28 = vector.shape_cast %27 : vector<1x1x1x8xf32> to vector<1x8xf32>
    %29 = vector.broadcast %28 : vector<1x8xf32> to vector<8x8xf32>
    %30 = arith.addf %26, %29 : vector<8x8xf32>
    %31 = arith.truncf %30 : vector<8x8xf32> to vector<8x8xbf16>
    %c0_14 = arith.constant 0 : index
    %c0_15 = arith.constant 0 : index
    %c0_16 = arith.constant 0 : index
    %32 = vector.load %arg11[%c0_14, %c0_15, %c0_16] : memref<4x16x8xbf16, #tpu.memory_space<vmem>>, vector<1x16x8xbf16>
    %33 = vector.shape_cast %32 : vector<1x16x8xbf16> to vector<16x8xbf16>
    %cst_17 = arith.constant dense<0.000000e+00> : vector<8x16xf32>
    %34 = tpu.matmul %31, %33, %cst_17 {dimension_numbers = #tpu.dot_dimension_numbers<[1], [1], [0], [0], [0, 0, 1, 0], [], []>} : vector<8x8xbf16>, vector<16x8xbf16>, vector<8x16xf32> -> vector<8x16xf32>
    %35 = arith.addf %34, %23 : vector<8x16xf32>
    %cst_18 = arith.constant dense<0xFF800000> : vector<8xf32>
    %36 = vector.multi_reduction <maximumf>, %35, %cst_18 [1] : vector<8x16xf32> to vector<8xf32>
    %37 = vector.shape_cast %36 : vector<8xf32> to vector<8x1xf32>
    %38 = vector.broadcast %37 : vector<8x1xf32> to vector<8x16xf32>
    %39 = arith.subf %35, %38 : vector<8x16xf32>
    %40 = math.exp %39 : vector<8x16xf32>
    %cst_19 = arith.constant dense<0.000000e+00> : vector<8xf32>
    %41 = vector.multi_reduction <add>, %40, %cst_19 [1] : vector<8x16xf32> to vector<8xf32>
    %42 = vector.shape_cast %41 : vector<8xf32> to vector<8x1xf32>
    %43 = tpu.reciprocal %42 {approx = true} : vector<8x1xf32> -> vector<8x1xf32>
    %44 = vector.broadcast %43 : vector<8x1xf32> to vector<8x16xf32>
    %45 = arith.mulf %40, %44 : vector<8x16xf32>
    %46 = arith.truncf %45 : vector<8x16xf32> to vector<8x16xbf16>
    %c0_20 = arith.constant 0 : index
    %c0_21 = arith.constant 0 : index
    %c0_22 = arith.constant 0 : index
    %47 = vector.load %arg12[%c0_20, %c0_21, %c0_22] : memref<4x16x8xbf16, #tpu.memory_space<vmem>>, vector<1x16x8xbf16>
    %48 = vector.shape_cast %47 : vector<1x16x8xbf16> to vector<16x8xbf16>
    %cst_23 = arith.constant dense<0.000000e+00> : vector<8x8xf32>
    %49 = tpu.matmul %46, %48, %cst_23 {dimension_numbers = #tpu.dot_dimension_numbers<[1], [0], [0], [1], [0, 0, 1, 1], [], []>} : vector<8x16xbf16>, vector<16x8xbf16>, vector<8x8xf32> -> vector<8x8xf32>
    %50 = arith.truncf %49 : vector<8x8xf32> to vector<8x8xbf16>
    %c0_24 = arith.constant 0 : index
    %c0_25 = arith.constant 0 : index
    %51 = vector.load %arg13[%c0_24, %c0_25] : memref<8x32xbf16, #tpu.memory_space<vmem>>, vector<8x8xbf16>
    tpu.vector_store %arg13[%c0_24, %c0_25], %50 {strides = array<i32>} : memref<8x32xbf16, #tpu.memory_space<vmem>>, vector<8x8xbf16>,
    %c0_26 = arith.constant 0 : index
    %c1 = arith.constant 1 : index
    %c0_27 = arith.constant 0 : index
    %c0_28 = arith.constant 0 : index
    %52 = vector.load %arg3[%c0_26, %c1, %c0_27, %c0_28] : memref<3x4x32x8xbf16, #tpu.memory_space<vmem>>, vector<1x1x32x8xbf16>
    %53 = vector.shape_cast %52 : vector<1x1x32x8xbf16> to vector<32x8xbf16>
    %cst_29 = arith.constant dense<0.000000e+00> : vector<8x8xf32>
    %54 = tpu.matmul %14, %53, %cst_29 {dimension_numbers = #tpu.dot_dimension_numbers<[1], [0], [0], [1], [0, 0, 1, 1], [], []>} : vector<8x32xbf16>, vector<32x8xbf16>, vector<8x8xf32> -> vector<8x8xf32>
    %c0_30 = arith.constant 0 : index
    %c1_31 = arith.constant 1 : index
    %c0_32 = arith.constant 0 : index
    %c0_33 = arith.constant 0 : index
    %55 = vector.load %arg4[%c0_30, %c1_31, %c0_32, %c0_33] : memref<3x4x1x8xf32, #tpu.memory_space<vmem>>, vector<1x1x1x8xf32>
    %56 = vector.shape_cast %55 : vector<1x1x1x8xf32> to vector<1x8xf32>
    %57 = vector.broadcast %56 : vector<1x8xf32> to vector<8x8xf32>
    %58 = arith.addf %54, %57 : vector<8x8xf32>
    %59 = arith.truncf %58 : vector<8x8xf32> to vector<8x8xbf16>
    %c1_34 = arith.constant 1 : index
    %c0_35 = arith.constant 0 : index
    %c0_36 = arith.constant 0 : index
    %60 = vector.load %arg11[%c1_34, %c0_35, %c0_36] : memref<4x16x8xbf16, #tpu.memory_space<vmem>>, vector<1x16x8xbf16>
    %61 = vector.shape_cast %60 : vector<1x16x8xbf16> to vector<16x8xbf16>
    %cst_37 = arith.constant dense<0.000000e+00> : vector<8x16xf32>
    %62 = tpu.matmul %59, %61, %cst_37 {dimension_numbers = #tpu.dot_dimension_numbers<[1], [1], [0], [0], [0, 0, 1, 0], [], []>} : vector<8x8xbf16>, vector<16x8xbf16>, vector<8x16xf32> -> vector<8x16xf32>
    %63 = arith.addf %62, %23 : vector<8x16xf32>
    %cst_38 = arith.constant dense<0xFF800000> : vector<8xf32>
    %64 = vector.multi_reduction <maximumf>, %63, %cst_38 [1] : vector<8x16xf32> to vector<8xf32>
    %65 = vector.shape_cast %64 : vector<8xf32> to vector<8x1xf32>
    %66 = vector.broadcast %65 : vector<8x1xf32> to vector<8x16xf32>
    %67 = arith.subf %63, %66 : vector<8x16xf32>
    %68 = math.exp %67 : vector<8x16xf32>
    %cst_39 = arith.constant dense<0.000000e+00> : vector<8xf32>
    %69 = vector.multi_reduction <add>, %68, %cst_39 [1] : vector<8x16xf32> to vector<8xf32>
    %70 = vector.shape_cast %69 : vector<8xf32> to vector<8x1xf32>
    %71 = tpu.reciprocal %70 {approx = true} : vector<8x1xf32> -> vector<8x1xf32>
    %72 = vector.broadcast %71 : vector<8x1xf32> to vector<8x16xf32>
    %73 = arith.mulf %68, %72 : vector<8x16xf32>
    %74 = arith.truncf %73 : vector<8x16xf32> to vector<8x16xbf16>
    %c1_40 = arith.constant 1 : index
    %c0_41 = arith.constant 0 : index
    %c0_42 = arith.constant 0 : index
    %75 = vector.load %arg12[%c1_40, %c0_41, %c0_42] : memref<4x16x8xbf16, #tpu.memory_space<vmem>>, vector<1x16x8xbf16>
    %76 = vector.shape_cast %75 : vector<1x16x8xbf16> to vector<16x8xbf16>
    %cst_43 = arith.constant dense<0.000000e+00> : vector<8x8xf32>
    %77 = tpu.matmul %74, %76, %cst_43 {dimension_numbers = #tpu.dot_dimension_numbers<[1], [0], [0], [1], [0, 0, 1, 1], [], []>} : vector<8x16xbf16>, vector<16x8xbf16>, vector<8x8xf32> -> vector<8x8xf32>
    %78 = arith.truncf %77 : vector<8x8xf32> to vector<8x8xbf16>
    %c0_44 = arith.constant 0 : index
    %c8 = arith.constant 8 : index
    %79 = vector.load %arg13[%c0_44, %c8] : memref<8x32xbf16, #tpu.memory_space<vmem>>, vector<8x8xbf16>
    tpu.vector_store %arg13[%c0_44, %c8], %78 {strides = array<i32>} : memref<8x32xbf16, #tpu.memory_space<vmem>>, vector<8x8xbf16>,
    %c0_45 = arith.constant 0 : index
    %c2 = arith.constant 2 : index
    %c0_46 = arith.constant 0 : index
    %c0_47 = arith.constant 0 : index
    %80 = vector.load %arg3[%c0_45, %c2, %c0_46, %c0_47] : memref<3x4x32x8xbf16, #tpu.memory_space<vmem>>, vector<1x1x32x8xbf16>
    %81 = vector.shape_cast %80 : vector<1x1x32x8xbf16> to vector<32x8xbf16>
    %cst_48 = arith.constant dense<0.000000e+00> : vector<8x8xf32>
    %82 = tpu.matmul %14, %81, %cst_48 {dimension_numbers = #tpu.dot_dimension_numbers<[1], [0], [0], [1], [0, 0, 1, 1], [], []>} : vector<8x32xbf16>, vector<32x8xbf16>, vector<8x8xf32> -> vector<8x8xf32>
    %c0_49 = arith.constant 0 : index
    %c2_50 = arith.constant 2 : index
    %c0_51 = arith.constant 0 : index
    %c0_52 = arith.constant 0 : index
    %83 = vector.load %arg4[%c0_49, %c2_50, %c0_51, %c0_52] : memref<3x4x1x8xf32, #tpu.memory_space<vmem>>, vector<1x1x1x8xf32>
    %84 = vector.shape_cast %83 : vector<1x1x1x8xf32> to vector<1x8xf32>
    %85 = vector.broadcast %84 : vector<1x8xf32> to vector<8x8xf32>
    %86 = arith.addf %82, %85 : vector<8x8xf32>
    %87 = arith.truncf %86 : vector<8x8xf32> to vector<8x8xbf16>
    %c2_53 = arith.constant 2 : index
    %c0_54 = arith.constant 0 : index
    %c0_55 = arith.constant 0 : index
    %88 = vector.load %arg11[%c2_53, %c0_54, %c0_55] : memref<4x16x8xbf16, #tpu.memory_space<vmem>>, vector<1x16x8xbf16>
    %89 = vector.shape_cast %88 : vector<1x16x8xbf16> to vector<16x8xbf16>
    %cst_56 = arith.constant dense<0.000000e+00> : vector<8x16xf32>
    %90 = tpu.matmul %87, %89, %cst_56 {dimension_numbers = #tpu.dot_dimension_numbers<[1], [1], [0], [0], [0, 0, 1, 0], [], []>} : vector<8x8xbf16>, vector<16x8xbf16>, vector<8x16xf32> -> vector<8x16xf32>
    %91 = arith.addf %90, %23 : vector<8x16xf32>
    %cst_57 = arith.constant dense<0xFF800000> : vector<8xf32>
    %92 = vector.multi_reduction <maximumf>, %91, %cst_57 [1] : vector<8x16xf32> to vector<8xf32>
    %93 = vector.shape_cast %92 : vector<8xf32> to vector<8x1xf32>
    %94 = vector.broadcast %93 : vector<8x1xf32> to vector<8x16xf32>
    %95 = arith.subf %91, %94 : vector<8x16xf32>
    %96 = math.exp %95 : vector<8x16xf32>
    %cst_58 = arith.constant dense<0.000000e+00> : vector<8xf32>
    %97 = vector.multi_reduction <add>, %96, %cst_58 [1] : vector<8x16xf32> to vector<8xf32>
    %98 = vector.shape_cast %97 : vector<8xf32> to vector<8x1xf32>
    %99 = tpu.reciprocal %98 {approx = true} : vector<8x1xf32> -> vector<8x1xf32>
    %100 = vector.broadcast %99 : vector<8x1xf32> to vector<8x16xf32>
    %101 = arith.mulf %96, %100 : vector<8x16xf32>
    %102 = arith.truncf %101 : vector<8x16xf32> to vector<8x16xbf16>
    %c2_59 = arith.constant 2 : index
    %c0_60 = arith.constant 0 : index
    %c0_61 = arith.constant 0 : index
    %103 = vector.load %arg12[%c2_59, %c0_60, %c0_61] : memref<4x16x8xbf16, #tpu.memory_space<vmem>>, vector<1x16x8xbf16>
    %104 = vector.shape_cast %103 : vector<1x16x8xbf16> to vector<16x8xbf16>
    %cst_62 = arith.constant dense<0.000000e+00> : vector<8x8xf32>
    %105 = tpu.matmul %102, %104, %cst_62 {dimension_numbers = #tpu.dot_dimension_numbers<[1], [0], [0], [1], [0, 0, 1, 1], [], []>} : vector<8x16xbf16>, vector<16x8xbf16>, vector<8x8xf32> -> vector<8x8xf32>
    %106 = arith.truncf %105 : vector<8x8xf32> to vector<8x8xbf16>
    %c0_63 = arith.constant 0 : index
    %c16 = arith.constant 16 : index
    %107 = vector.load %arg13[%c0_63, %c16] : memref<8x32xbf16, #tpu.memory_space<vmem>>, vector<8x8xbf16>
    tpu.vector_store %arg13[%c0_63, %c16], %106 {strides = array<i32>} : memref<8x32xbf16, #tpu.memory_space<vmem>>, vector<8x8xbf16>,
    %c0_64 = arith.constant 0 : index
    %c3 = arith.constant 3 : index
    %c0_65 = arith.constant 0 : index
    %c0_66 = arith.constant 0 : index
    %108 = vector.load %arg3[%c0_64, %c3, %c0_65, %c0_66] : memref<3x4x32x8xbf16, #tpu.memory_space<vmem>>, vector<1x1x32x8xbf16>
    %109 = vector.shape_cast %108 : vector<1x1x32x8xbf16> to vector<32x8xbf16>
    %cst_67 = arith.constant dense<0.000000e+00> : vector<8x8xf32>
    %110 = tpu.matmul %14, %109, %cst_67 {dimension_numbers = #tpu.dot_dimension_numbers<[1], [0], [0], [1], [0, 0, 1, 1], [], []>} : vector<8x32xbf16>, vector<32x8xbf16>, vector<8x8xf32> -> vector<8x8xf32>
    %c0_68 = arith.constant 0 : index
    %c3_69 = arith.constant 3 : index
    %c0_70 = arith.constant 0 : index
    %c0_71 = arith.constant 0 : index
    %111 = vector.load %arg4[%c0_68, %c3_69, %c0_70, %c0_71] : memref<3x4x1x8xf32, #tpu.memory_space<vmem>>, vector<1x1x1x8xf32>
    %112 = vector.shape_cast %111 : vector<1x1x1x8xf32> to vector<1x8xf32>
    %113 = vector.broadcast %112 : vector<1x8xf32> to vector<8x8xf32>
    %114 = arith.addf %110, %113 : vector<8x8xf32>
    %115 = arith.truncf %114 : vector<8x8xf32> to vector<8x8xbf16>
    %c3_72 = arith.constant 3 : index
    %c0_73 = arith.constant 0 : index
    %c0_74 = arith.constant 0 : index
    %116 = vector.load %arg11[%c3_72, %c0_73, %c0_74] : memref<4x16x8xbf16, #tpu.memory_space<vmem>>, vector<1x16x8xbf16>
    %117 = vector.shape_cast %116 : vector<1x16x8xbf16> to vector<16x8xbf16>
    %cst_75 = arith.constant dense<0.000000e+00> : vector<8x16xf32>
    %118 = tpu.matmul %115, %117, %cst_75 {dimension_numbers = #tpu.dot_dimension_numbers<[1], [1], [0], [0], [0, 0, 1, 0], [], []>} : vector<8x8xbf16>, vector<16x8xbf16>, vector<8x16xf32> -> vector<8x16xf32>
    %119 = arith.addf %118, %23 : vector<8x16xf32>
    %cst_76 = arith.constant dense<0xFF800000> : vector<8xf32>
    %120 = vector.multi_reduction <maximumf>, %119, %cst_76 [1] : vector<8x16xf32> to vector<8xf32>
    %121 = vector.shape_cast %120 : vector<8xf32> to vector<8x1xf32>
    %122 = vector.broadcast %121 : vector<8x1xf32> to vector<8x16xf32>
    %123 = arith.subf %119, %122 : vector<8x16xf32>
    %124 = math.exp %123 : vector<8x16xf32>
    %cst_77 = arith.constant dense<0.000000e+00> : vector<8xf32>
    %125 = vector.multi_reduction <add>, %124, %cst_77 [1] : vector<8x16xf32> to vector<8xf32>
    %126 = vector.shape_cast %125 : vector<8xf32> to vector<8x1xf32>
    %127 = tpu.reciprocal %126 {approx = true} : vector<8x1xf32> -> vector<8x1xf32>
    %128 = vector.broadcast %127 : vector<8x1xf32> to vector<8x16xf32>
    %129 = arith.mulf %124, %128 : vector<8x16xf32>
    %130 = arith.truncf %129 : vector<8x16xf32> to vector<8x16xbf16>
    %c3_78 = arith.constant 3 : index
    %c0_79 = arith.constant 0 : index
    %c0_80 = arith.constant 0 : index
    %131 = vector.load %arg12[%c3_78, %c0_79, %c0_80] : memref<4x16x8xbf16, #tpu.memory_space<vmem>>, vector<1x16x8xbf16>
    %132 = vector.shape_cast %131 : vector<1x16x8xbf16> to vector<16x8xbf16>
    %cst_81 = arith.constant dense<0.000000e+00> : vector<8x8xf32>
    %133 = tpu.matmul %130, %132, %cst_81 {dimension_numbers = #tpu.dot_dimension_numbers<[1], [0], [0], [1], [0, 0, 1, 1], [], []>} : vector<8x16xbf16>, vector<16x8xbf16>, vector<8x8xf32> -> vector<8x8xf32>
    %134 = arith.truncf %133 : vector<8x8xf32> to vector<8x8xbf16>
    %c0_82 = arith.constant 0 : index
    %c24 = arith.constant 24 : index
    %135 = vector.load %arg13[%c0_82, %c24] : memref<8x32xbf16, #tpu.memory_space<vmem>>, vector<8x8xbf16>
    tpu.vector_store %arg13[%c0_82, %c24], %134 {strides = array<i32>} : memref<8x32xbf16, #tpu.memory_space<vmem>>, vector<8x8xbf16>,
    %c0_83 = arith.constant 0 : index
    %c0_84 = arith.constant 0 : index
    %136 = vector.load %arg13[%c0_83, %c0_84] : memref<8x32xbf16, #tpu.memory_space<vmem>>, vector<8x32xbf16>
    %c0_85 = arith.constant 0 : index
    %c0_86 = arith.constant 0 : index
    %137 = vector.load %arg5[%c0_85, %c0_86] : memref<32x32xbf16, #tpu.memory_space<vmem>>, vector<32x32xbf16>
    %cst_87 = arith.constant dense<0.000000e+00> : vector<8x32xf32>
    %138 = tpu.matmul %136, %137, %cst_87 {dimension_numbers = #tpu.dot_dimension_numbers<[1], [0], [0], [1], [0, 0, 1, 1], [], []>} : vector<8x32xbf16>, vector<32x32xbf16>, vector<8x32xf32> -> vector<8x32xf32>
    %139 = vector.broadcast %1 : vector<1x32xf32> to vector<8x32xf32>
    %140 = arith.addf %138, %139 : vector<8x32xf32>
    %141 = arith.addf %15, %140 : vector<8x32xf32>
    %142 = vector.broadcast %3 : vector<1x32xf32> to vector<8x32xf32>
    %143 = arith.mulf %141, %142 : vector<8x32xf32>
    %144 = vector.broadcast %4 : vector<1x32xf32> to vector<8x32xf32>
    %145 = arith.addf %143, %144 : vector<8x32xf32>
    %146 = arith.truncf %141 : vector<8x32xf32> to vector<8x32xbf16>
    %c0_88 = arith.constant 0 : index
    %c0_89 = arith.constant 0 : index
    %147 = vector.load %arg7[%c0_88, %c0_89] : memref<32x128xbf16, #tpu.memory_space<vmem>>, vector<32x128xbf16>
    %cst_90 = arith.constant dense<0.000000e+00> : vector<8x128xf32>
    %148 = tpu.matmul %146, %147, %cst_90 {dimension_numbers = #tpu.dot_dimension_numbers<[1], [0], [0], [1], [0, 0, 1, 1], [], []>} : vector<8x32xbf16>, vector<32x128xbf16>, vector<8x128xf32> -> vector<8x128xf32>
    %c0_91 = arith.constant 0 : index
    %c0_92 = arith.constant 0 : index
    %149 = vector.load %arg8[%c0_91, %c0_92] : memref<1x128xf32, #tpu.memory_space<vmem>>, vector<1x128xf32>
    %150 = vector.broadcast %149 : vector<1x128xf32> to vector<8x128xf32>
    %151 = arith.addf %148, %150 : vector<8x128xf32>
    %cst_93 = arith.constant 5.000000e-01 : f32
    %152 = vector.broadcast %cst_93 : f32 to vector<8x128xf32>
    %153 = arith.mulf %152, %151 : vector<8x128xf32>
    %cst_94 = arith.constant 0.707106769 : f32
    %154 = vector.broadcast %cst_94 : f32 to vector<8x128xf32>
    %155 = arith.mulf %151, %154 : vector<8x128xf32>
    %156 = math.erf %155 : vector<8x128xf32>
    %cst_95 = arith.constant 1.000000e+00 : f32
    %157 = vector.broadcast %cst_95 : f32 to vector<8x128xf32>
    %158 = arith.addf %157, %156 : vector<8x128xf32>
    %159 = arith.mulf %153, %158 : vector<8x128xf32>
    %160 = arith.truncf %159 : vector<8x128xf32> to vector<8x128xbf16>
    %c0_96 = arith.constant 0 : index
    %c0_97 = arith.constant 0 : index
    %161 = vector.load %arg9[%c0_96, %c0_97] : memref<128x32xbf16, #tpu.memory_space<vmem>>, vector<128x32xbf16>
    %cst_98 = arith.constant dense<0.000000e+00> : vector<8x32xf32>
    %162 = tpu.matmul %160, %161, %cst_98 {dimension_numbers = #tpu.dot_dimension_numbers<[1], [0], [0], [1], [0, 0, 1, 1], [], []>} : vector<8x128xbf16>, vector<128x32xbf16>, vector<8x32xf32> -> vector<8x32xf32>
    %163 = vector.broadcast %2 : vector<1x32xf32> to vector<8x32xf32>
    %164 = arith.addf %162, %163 : vector<8x32xf32>
    %165 = arith.addf %164, %145 : vector<8x32xf32>
    %166 = vector.broadcast %5 : vector<1x32xf32> to vector<8x32xf32>
    %167 = arith.mulf %165, %166 : vector<8x32xf32>
    %168 = vector.broadcast %6 : vector<1x32xf32> to vector<8x32xf32>
    %169 = arith.addf %167, %168 : vector<8x32xf32>
    %c0_99 = arith.constant 0 : index
    %c0_100 = arith.constant 0 : index
    %c0_101 = arith.constant 0 : index
    %170 = vector.load %arg10[%c0_99, %c0_100, %c0_101] : memref<1x8x32xf32, #tpu.memory_space<vmem>>, vector<1x8x32xf32>
    %171 = vector.shape_cast %170 : vector<1x8x32xf32> to vector<8x32xf32>
    %172 = vector.shape_cast %169 : vector<8x32xf32> to vector<1x8x32xf32>
    tpu.vector_store %arg10[%c0_99, %c0_100, %c0_101], %172 {strides = array<i32>} : memref<1x8x32xf32, #tpu.memory_space<vmem>>, vector<1x8x32xf32>,
    return
  }
  func.func @transform_0(%arg0: i32, %arg1: i32) -> (i32, i32, i32) {
    %c0_i32 = arith.constant 0 : i32
    %c0_i32_0 = arith.constant 0 : i32
    %c0_i32_1 = arith.constant 0 : i32
    return %arg0, %c0_i32, %c0_i32_0 : i32, i32, i32
  }
  func.func @transform_1(%arg0: i32, %arg1: i32) -> (i32, i32, i32, i32) {
    %c0_i32 = arith.constant 0 : i32
    %c0_i32_0 = arith.constant 0 : i32
    %c0_i32_1 = arith.constant 0 : i32
    %c0_i32_2 = arith.constant 0 : i32
    %c0_i32_3 = arith.constant 0 : i32
    return %c0_i32, %c0_i32_0, %c0_i32_1, %c0_i32_2 : i32, i32, i32, i32
  }
  func.func @transform_2(%arg0: i32, %arg1: i32) -> (i32, i32, i32, i32) {
    %c0_i32 = arith.constant 0 : i32
    %c0_i32_0 = arith.constant 0 : i32
    %c0_i32_1 = arith.constant 0 : i32
    %c0_i32_2 = arith.constant 0 : i32
    %c0_i32_3 = arith.constant 0 : i32
    return %c0_i32, %c0_i32_0, %c0_i32_1, %c0_i32_2 : i32, i32, i32, i32
  }
  func.func @transform_3(%arg0: i32, %arg1: i32) -> (i32, i32) {
    %c0_i32 = arith.constant 0 : i32
    %c0_i32_0 = arith.constant 0 : i32
    %c0_i32_1 = arith.constant 0 : i32
    return %c0_i32, %c0_i32_0 : i32, i32
  }
  func.func @transform_4(%arg0: i32, %arg1: i32) -> (i32, i32) {
    %c0_i32 = arith.constant 0 : i32
    %c0_i32_0 = arith.constant 0 : i32
    %c0_i32_1 = arith.constant 0 : i32
    return %c0_i32, %c0_i32_0 : i32, i32
  }
  func.func @transform_5(%arg0: i32, %arg1: i32) -> (i32, i32) {
    %c0_i32 = arith.constant 0 : i32
    %c0_i32_0 = arith.constant 0 : i32
    %c0_i32_1 = arith.constant 0 : i32
    return %c0_i32, %c0_i32_0 : i32, i32
  }
  func.func @transform_6(%arg0: i32, %arg1: i32) -> (i32, i32) {
    %c0_i32 = arith.constant 0 : i32
    %c0_i32_0 = arith.constant 0 : i32
    %c0_i32_1 = arith.constant 0 : i32
    return %c0_i32, %c0_i32_0 : i32, i32
  }
  func.func @transform_7(%arg0: i32, %arg1: i32) -> (i32, i32) {
    %c0_i32 = arith.constant 0 : i32
    %c0_i32_0 = arith.constant 0 : i32
    %c0_i32_1 = arith.constant 0 : i32
    return %c0_i32, %c0_i32_0 : i32, i32
  }
  func.func @transform_8(%arg0: i32, %arg1: i32) -> (i32, i32, i32) {
    %c0_i32 = arith.constant 0 : i32
    %c0_i32_0 = arith.constant 0 : i32
    return %arg0, %arg1, %c0_i32 : i32, i32, i32
  }
}

module attributes {stable_mosaic.version = 11 : i64} {
  func.func @gpt_block_kernel(%arg0: i32, %arg1: i32, %arg2: memref<1x16x32xbf16, #tpu.memory_space<vmem>>, %arg3: memref<3x4x32x8xbf16, #tpu.memory_space<vmem>>, %arg4: memref<3x4x1x8xf32, #tpu.memory_space<vmem>>, %arg5: memref<32x32xbf16, #tpu.memory_space<vmem>>, %arg6: memref<6x32xf32, #tpu.memory_space<vmem>>, %arg7: memref<32x128xbf16, #tpu.memory_space<vmem>>, %arg8: memref<1x128xf32, #tpu.memory_space<vmem>>, %arg9: memref<128x32xbf16, #tpu.memory_space<vmem>>, %arg10: memref<1x8x32xf32, #tpu.memory_space<vmem>>, %arg11: memref<4x16x8xbf16, #tpu.memory_space<vmem>>, %arg12: memref<4x16x8xbf16, #tpu.memory_space<vmem>>, %arg13: memref<8x32xbf16, #tpu.memory_space<vmem>>) attributes {dimension_semantics = [#tpu.dimension_semantics<parallel>, #tpu.dimension_semantics<arbitrary>], iteration_bounds = array<i64: 2, 2>, scalar_prefetch = 0 : i64, scratch_operands = 3 : i64, tpu.core_type = #tpu.core_type<tc>, window_params = [{transform_indices = @transform_0, window_bounds = array<i64: 1, 16, 32>}, {pipeline_mode = #tpu.pipeline_mode<synchronous>, transform_indices = @transform_1, window_bounds = array<i64: 3, 4, 32, 8>}, {pipeline_mode = #tpu.pipeline_mode<synchronous>, transform_indices = @transform_2, window_bounds = array<i64: 3, 4, 1, 8>}, {pipeline_mode = #tpu.pipeline_mode<synchronous>, transform_indices = @transform_3, window_bounds = array<i64: 32, 32>}, {pipeline_mode = #tpu.pipeline_mode<synchronous>, transform_indices = @transform_4, window_bounds = array<i64: 6, 32>}, {pipeline_mode = #tpu.pipeline_mode<synchronous>, transform_indices = @transform_5, window_bounds = array<i64: 32, 128>}, {pipeline_mode = #tpu.pipeline_mode<synchronous>, transform_indices = @transform_6, window_bounds = array<i64: 1, 128>}, {pipeline_mode = #tpu.pipeline_mode<synchronous>, transform_indices = @transform_7, window_bounds = array<i64: 128, 32>}, {transform_indices = @transform_8, window_bounds = array<i64: 1, 8, 32>}]} {
    %c0 = arith.constant 0 : index
    %c0_0 = arith.constant 0 : index
    %0 = vector.load %arg6[%c0, %c0_0] : memref<6x32xf32, #tpu.memory_space<vmem>>, vector<6x32xf32>
    %1 = vector.extract_strided_slice %0 {offsets = [0, 0], sizes = [1, 32], strides = [1, 1]} : vector<6x32xf32> to vector<1x32xf32>
    %2 = vector.extract_strided_slice %0 {offsets = [1, 0], sizes = [1, 32], strides = [1, 1]} : vector<6x32xf32> to vector<1x32xf32>
    %3 = vector.extract_strided_slice %0 {offsets = [2, 0], sizes = [1, 32], strides = [1, 1]} : vector<6x32xf32> to vector<1x32xf32>
    %4 = vector.extract_strided_slice %0 {offsets = [3, 0], sizes = [1, 32], strides = [1, 1]} : vector<6x32xf32> to vector<1x32xf32>
    %5 = vector.extract_strided_slice %0 {offsets = [4, 0], sizes = [1, 32], strides = [1, 1]} : vector<6x32xf32> to vector<1x32xf32>
    %6 = vector.extract_strided_slice %0 {offsets = [5, 0], sizes = [1, 32], strides = [1, 1]} : vector<6x32xf32> to vector<1x32xf32>
    %c0_i32 = arith.constant 0 : i32
    %7 = arith.cmpi eq, %arg1, %c0_i32 : i32
    %8 = arith.extui %7 : i1 to i32
    %c0_i32_1 = arith.constant 0 : i32
    %9 = arith.cmpi ne, %8, %c0_i32_1 : i32
    scf.if %9 {
      %c0_102 = arith.constant 0 : index
      %c0_103 = arith.constant 0 : index
      %c0_104 = arith.constant 0 : index
      %173 = vector.load %arg2[%c0_102, %c0_103, %c0_104] : memref<1x16x32xbf16, #tpu.memory_space<vmem>>, vector<1x16x32xbf16>
      %174 = vector.shape_cast %173 : vector<1x16x32xbf16> to vector<16x32xbf16>
      %c1_105 = arith.constant 1 : index
      %c0_106 = arith.constant 0 : index
      %c0_107 = arith.constant 0 : index
      %c0_108 = arith.constant 0 : index
      %175 = vector.load %arg3[%c1_105, %c0_106, %c0_107, %c0_108] : memref<3x4x32x8xbf16, #tpu.memory_space<vmem>>, vector<1x1x32x8xbf16>
      %176 = vector.shape_cast %175 : vector<1x1x32x8xbf16> to vector<32x8xbf16>
      %cst_109 = arith.constant dense<0.000000e+00> : vector<16x8xf32>
      %177 = tpu.matmul %174, %176, %cst_109 {dimension_numbers = #tpu.dot_dimension_numbers<[1], [0], [0], [1], [0, 0, 1, 1], [], []>} : vector<16x32xbf16>, vector<32x8xbf16>, vector<16x8xf32> -> vector<16x8xf32>
      %c1_110 = arith.constant 1 : index
      %c0_111 = arith.constant 0 : index
      %c0_112 = arith.constant 0 : index
      %c0_113 = arith.constant 0 : index
      %178 = vector.load %arg4[%c1_110, %c0_111, %c0_112, %c0_113] : memref<3x4x1x8xf32, #tpu.memory_space<vmem>>, vector<1x1x1x8xf32>
      %179 = vector.shape_cast %178 : vector<1x1x1x8xf32> to vector<1x8xf32>
      %180 = vector.broadcast %179 : vector<1x8xf32> to vector<16x8xf32>
      %181 = arith.addf %177, %180 : vector<16x8xf32>
      %182 = arith.truncf %181 : vector<16x8xf32> to vector<16x8xbf16>
      %c0_114 = arith.constant 0 : index
      %c0_115 = arith.constant 0 : index
      %c0_116 = arith.constant 0 : index
      %183 = vector.load %arg11[%c0_114, %c0_115, %c0_116] : memref<4x16x8xbf16, #tpu.memory_space<vmem>>, vector<1x16x8xbf16>
      %184 = vector.shape_cast %183 : vector<1x16x8xbf16> to vector<16x8xbf16>
      %185 = vector.shape_cast %182 : vector<16x8xbf16> to vector<1x16x8xbf16>
      tpu.vector_store %arg11[%c0_114, %c0_115, %c0_116], %185 {strides = array<i32>} : memref<4x16x8xbf16, #tpu.memory_space<vmem>>, vector<1x16x8xbf16>,
      %c2_117 = arith.constant 2 : index
      %c0_118 = arith.constant 0 : index
      %c0_119 = arith.constant 0 : index
      %c0_120 = arith.constant 0 : index
      %186 = vector.load %arg3[%c2_117, %c0_118, %c0_119, %c0_120] : memref<3x4x32x8xbf16, #tpu.memory_space<vmem>>, vector<1x1x32x8xbf16>
      %187 = vector.shape_cast %186 : vector<1x1x32x8xbf16> to vector<32x8xbf16>
      %cst_121 = arith.constant dense<0.000000e+00> : vector<16x8xf32>
      %188 = tpu.matmul %174, %187, %cst_121 {dimension_numbers = #tpu.dot_dimension_numbers<[1], [0], [0], [1], [0, 0, 1, 1], [], []>} : vector<16x32xbf16>, vector<32x8xbf16>, vector<16x8xf32> -> vector<16x8xf32>
      %c2_122 = arith.constant 2 : index
      %c0_123 = arith.constant 0 : index
      %c0_124 = arith.constant 0 : index
      %c0_125 = arith.constant 0 : index
      %189 = vector.load %arg4[%c2_122, %c0_123, %c0_124, %c0_125] : memref<3x4x1x8xf32, #tpu.memory_space<vmem>>, vector<1x1x1x8xf32>
      %190 = vector.shape_cast %189 : vector<1x1x1x8xf32> to vector<1x8xf32>
      %191 = vector.broadcast %190 : vector<1x8xf32> to vector<16x8xf32>
      %192 = arith.addf %188, %191 : vector<16x8xf32>
      %193 = arith.truncf %192 : vector<16x8xf32> to vector<16x8xbf16>
      %c0_126 = arith.constant 0 : index
      %c0_127 = arith.constant 0 : index
      %c0_128 = arith.constant 0 : index
      %194 = vector.load %arg12[%c0_126, %c0_127, %c0_128] : memref<4x16x8xbf16, #tpu.memory_space<vmem>>, vector<1x16x8xbf16>
      %195 = vector.shape_cast %194 : vector<1x16x8xbf16> to vector<16x8xbf16>
      %196 = vector.shape_cast %193 : vector<16x8xbf16> to vector<1x16x8xbf16>
      tpu.vector_store %arg12[%c0_126, %c0_127, %c0_128], %196 {strides = array<i32>} : memref<4x16x8xbf16, #tpu.memory_space<vmem>>, vector<1x16x8xbf16>,
      %c1_129 = arith.constant 1 : index
      %c1_130 = arith.constant 1 : index
      %c0_131 = arith.constant 0 : index
      %c0_132 = arith.constant 0 : index
      %197 = vector.load %arg3[%c1_129, %c1_130, %c0_131, %c0_132] : memref<3x4x32x8xbf16, #tpu.memory_space<vmem>>, vector<1x1x32x8xbf16>
      %198 = vector.shape_cast %197 : vector<1x1x32x8xbf16> to vector<32x8xbf16>
      %cst_133 = arith.constant dense<0.000000e+00> : vector<16x8xf32>
      %199 = tpu.matmul %174, %198, %cst_133 {dimension_numbers = #tpu.dot_dimension_numbers<[1], [0], [0], [1], [0, 0, 1, 1], [], []>} : vector<16x32xbf16>, vector<32x8xbf16>, vector<16x8xf32> -> vector<16x8xf32>
      %c1_134 = arith.constant 1 : index
      %c1_135 = arith.constant 1 : index
      %c0_136 = arith.constant 0 : index
      %c0_137 = arith.constant 0 : index
      %200 = vector.load %arg4[%c1_134, %c1_135, %c0_136, %c0_137] : memref<3x4x1x8xf32, #tpu.memory_space<vmem>>, vector<1x1x1x8xf32>
      %201 = vector.shape_cast %200 : vector<1x1x1x8xf32> to vector<1x8xf32>
      %202 = vector.broadcast %201 : vector<1x8xf32> to vector<16x8xf32>
      %203 = arith.addf %199, %202 : vector<16x8xf32>
      %204 = arith.truncf %203 : vector<16x8xf32> to vector<16x8xbf16>
      %c1_138 = arith.constant 1 : index
      %c0_139 = arith.constant 0 : index
      %c0_140 = arith.constant 0 : index
      %205 = vector.load %arg11[%c1_138, %c0_139, %c0_140] : memref<4x16x8xbf16, #tpu.memory_space<vmem>>, vector<1x16x8xbf16>
      %206 = vector.shape_cast %205 : vector<1x16x8xbf16> to vector<16x8xbf16>
      %207 = vector.shape_cast %204 : vector<16x8xbf16> to vector<1x16x8xbf16>
      tpu.vector_store %arg11[%c1_138, %c0_139, %c0_140], %207 {strides = array<i32>} : memref<4x16x8xbf16, #tpu.memory_space<vmem>>, vector<1x16x8xbf16>,
      %c2_141 = arith.constant 2 : index
      %c1_142 = arith.constant 1 : index
      %c0_143 = arith.constant 0 : index
      %c0_144 = arith.constant 0 : index
      %208 = vector.load %arg3[%c2_141, %c1_142, %c0_143, %c0_144] : memref<3x4x32x8xbf16, #tpu.memory_space<vmem>>, vector<1x1x32x8xbf16>
      %209 = vector.shape_cast %208 : vector<1x1x32x8xbf16> to vector<32x8xbf16>
      %cst_145 = arith.constant dense<0.000000e+00> : vector<16x8xf32>
      %210 = tpu.matmul %174, %209, %cst_145 {dimension_numbers = #tpu.dot_dimension_numbers<[1], [0], [0], [1], [0, 0, 1, 1], [], []>} : vector<16x32xbf16>, vector<32x8xbf16>, vector<16x8xf32> -> vector<16x8xf32>
      %c2_146 = arith.constant 2 : index
      %c1_147 = arith.constant 1 : index
      %c0_148 = arith.constant 0 : index
      %c0_149 = arith.constant 0 : index
      %211 = vector.load %arg4[%c2_146, %c1_147, %c0_148, %c0_149] : memref<3x4x1x8xf32, #tpu.memory_space<vmem>>, vector<1x1x1x8xf32>
      %212 = vector.shape_cast %211 : vector<1x1x1x8xf32> to vector<1x8xf32>
      %213 = vector.broadcast %212 : vector<1x8xf32> to vector<16x8xf32>
      %214 = arith.addf %210, %213 : vector<16x8xf32>
      %215 = arith.truncf %214 : vector<16x8xf32> to vector<16x8xbf16>
      %c1_150 = arith.constant 1 : index
      %c0_151 = arith.constant 0 : index
      %c0_152 = arith.constant 0 : index
      %216 = vector.load %arg12[%c1_150, %c0_151, %c0_152] : memref<4x16x8xbf16, #tpu.memory_space<vmem>>, vector<1x16x8xbf16>
      %217 = vector.shape_cast %216 : vector<1x16x8xbf16> to vector<16x8xbf16>
      %218 = vector.shape_cast %215 : vector<16x8xbf16> to vector<1x16x8xbf16>
      tpu.vector_store %arg12[%c1_150, %c0_151, %c0_152], %218 {strides = array<i32>} : memref<4x16x8xbf16, #tpu.memory_space<vmem>>, vector<1x16x8xbf16>,
      %c1_153 = arith.constant 1 : index
      %c2_154 = arith.constant 2 : index
      %c0_155 = arith.constant 0 : index
      %c0_156 = arith.constant 0 : index
      %219 = vector.load %arg3[%c1_153, %c2_154, %c0_155, %c0_156] : memref<3x4x32x8xbf16, #tpu.memory_space<vmem>>, vector<1x1x32x8xbf16>
      %220 = vector.shape_cast %219 : vector<1x1x32x8xbf16> to vector<32x8xbf16>
      %cst_157 = arith.constant dense<0.000000e+00> : vector<16x8xf32>
      %221 = tpu.matmul %174, %220, %cst_157 {dimension_numbers = #tpu.dot_dimension_numbers<[1], [0], [0], [1], [0, 0, 1, 1], [], []>} : vector<16x32xbf16>, vector<32x8xbf16>, vector<16x8xf32> -> vector<16x8xf32>
      %c1_158 = arith.constant 1 : index
      %c2_159 = arith.constant 2 : index
      %c0_160 = arith.constant 0 : index
      %c0_161 = arith.constant 0 : index
      %222 = vector.load %arg4[%c1_158, %c2_159, %c0_160, %c0_161] : memref<3x4x1x8xf32, #tpu.memory_space<vmem>>, vector<1x1x1x8xf32>
      %223 = vector.shape_cast %222 : vector<1x1x1x8xf32> to vector<1x8xf32>
      %224 = vector.broadcast %223 : vector<1x8xf32> to vector<16x8xf32>
      %225 = arith.addf %221, %224 : vector<16x8xf32>
      %226 = arith.truncf %225 : vector<16x8xf32> to vector<16x8xbf16>
      %c2_162 = arith.constant 2 : index
      %c0_163 = arith.constant 0 : index
      %c0_164 = arith.constant 0 : index
      %227 = vector.load %arg11[%c2_162, %c0_163, %c0_164] : memref<4x16x8xbf16, #tpu.memory_space<vmem>>, vector<1x16x8xbf16>
      %228 = vector.shape_cast %227 : vector<1x16x8xbf16> to vector<16x8xbf16>
      %229 = vector.shape_cast %226 : vector<16x8xbf16> to vector<1x16x8xbf16>
      tpu.vector_store %arg11[%c2_162, %c0_163, %c0_164], %229 {strides = array<i32>} : memref<4x16x8xbf16, #tpu.memory_space<vmem>>, vector<1x16x8xbf16>,
      %c2_165 = arith.constant 2 : index
      %c2_166 = arith.constant 2 : index
      %c0_167 = arith.constant 0 : index
      %c0_168 = arith.constant 0 : index
      %230 = vector.load %arg3[%c2_165, %c2_166, %c0_167, %c0_168] : memref<3x4x32x8xbf16, #tpu.memory_space<vmem>>, vector<1x1x32x8xbf16>
      %231 = vector.shape_cast %230 : vector<1x1x32x8xbf16> to vector<32x8xbf16>
      %cst_169 = arith.constant dense<0.000000e+00> : vector<16x8xf32>
      %232 = tpu.matmul %174, %231, %cst_169 {dimension_numbers = #tpu.dot_dimension_numbers<[1], [0], [0], [1], [0, 0, 1, 1], [], []>} : vector<16x32xbf16>, vector<32x8xbf16>, vector<16x8xf32> -> vector<16x8xf32>
      %c2_170 = arith.constant 2 : index
      %c2_171 = arith.constant 2 : index
      %c0_172 = arith.constant 0 : index
      %c0_173 = arith.constant 0 : index
      %233 = vector.load %arg4[%c2_170, %c2_171, %c0_172, %c0_173] : memref<3x4x1x8xf32, #tpu.memory_space<vmem>>, vector<1x1x1x8xf32>
      %234 = vector.shape_cast %233 : vector<1x1x1x8xf32> to vector<1x8xf32>
      %235 = vector.broadcast %234 : vector<1x8xf32> to vector<16x8xf32>
      %236 = arith.addf %232, %235 : vector<16x8xf32>
      %237 = arith.truncf %236 : vector<16x8xf32> to vector<16x8xbf16>
      %c2_174 = arith.constant 2 : index
      %c0_175 = arith.constant 0 : index
      %c0_176 = arith.constant 0 : index
      %238 = vector.load %arg12[%c2_174, %c0_175, %c0_176] : memref<4x16x8xbf16, #tpu.memory_space<vmem>>, vector<1x16x8xbf16>
      %239 = vector.shape_cast %238 : vector<1x16x8xbf16> to vector<16x8xbf16>
      %240 = vector.shape_cast %237 : vector<16x8xbf16> to vector<1x16x8xbf16>
      tpu.vector_store %arg12[%c2_174, %c0_175, %c0_176], %240 {strides = array<i32>} : memref<4x16x8xbf16, #tpu.memory_space<vmem>>, vector<1x16x8xbf16>,
      %c1_177 = arith.constant 1 : index
      %c3_178 = arith.constant 3 : index
      %c0_179 = arith.constant 0 : index
      %c0_180 = arith.constant 0 : index
      %241 = vector.load %arg3[%c1_177, %c3_178, %c0_179, %c0_180] : memref<3x4x32x8xbf16, #tpu.memory_space<vmem>>, vector<1x1x32x8xbf16>
      %242 = vector.shape_cast %241 : vector<1x1x32x8xbf16> to vector<32x8xbf16>
      %cst_181 = arith.constant dense<0.000000e+00> : vector<16x8xf32>
      %243 = tpu.matmul %174, %242, %cst_181 {dimension_numbers = #tpu.dot_dimension_numbers<[1], [0], [0], [1], [0, 0, 1, 1], [], []>} : vector<16x32xbf16>, vector<32x8xbf16>, vector<16x8xf32> -> vector<16x8xf32>
      %c1_182 = arith.constant 1 : index
      %c3_183 = arith.constant 3 : index
      %c0_184 = arith.constant 0 : index
      %c0_185 = arith.constant 0 : index
      %244 = vector.load %arg4[%c1_182, %c3_183, %c0_184, %c0_185] : memref<3x4x1x8xf32, #tpu.memory_space<vmem>>, vector<1x1x1x8xf32>
      %245 = vector.shape_cast %244 : vector<1x1x1x8xf32> to vector<1x8xf32>
      %246 = vector.broadcast %245 : vector<1x8xf32> to vector<16x8xf32>
      %247 = arith.addf %243, %246 : vector<16x8xf32>
      %248 = arith.truncf %247 : vector<16x8xf32> to vector<16x8xbf16>
      %c3_186 = arith.constant 3 : index
      %c0_187 = arith.constant 0 : index
      %c0_188 = arith.constant 0 : index
      %249 = vector.load %arg11[%c3_186, %c0_187, %c0_188] : memref<4x16x8xbf16, #tpu.memory_space<vmem>>, vector<1x16x8xbf16>
      %250 = vector.shape_cast %249 : vector<1x16x8xbf16> to vector<16x8xbf16>
      %251 = vector.shape_cast %248 : vector<16x8xbf16> to vector<1x16x8xbf16>
      tpu.vector_store %arg11[%c3_186, %c0_187, %c0_188], %251 {strides = array<i32>} : memref<4x16x8xbf16, #tpu.memory_space<vmem>>, vector<1x16x8xbf16>,
      %c2_189 = arith.constant 2 : index
      %c3_190 = arith.constant 3 : index
      %c0_191 = arith.constant 0 : index
      %c0_192 = arith.constant 0 : index
      %252 = vector.load %arg3[%c2_189, %c3_190, %c0_191, %c0_192] : memref<3x4x32x8xbf16, #tpu.memory_space<vmem>>, vector<1x1x32x8xbf16>
      %253 = vector.shape_cast %252 : vector<1x1x32x8xbf16> to vector<32x8xbf16>
      %cst_193 = arith.constant dense<0.000000e+00> : vector<16x8xf32>
      %254 = tpu.matmul %174, %253, %cst_193 {dimension_numbers = #tpu.dot_dimension_numbers<[1], [0], [0], [1], [0, 0, 1, 1], [], []>} : vector<16x32xbf16>, vector<32x8xbf16>, vector<16x8xf32> -> vector<16x8xf32>
      %c2_194 = arith.constant 2 : index
      %c3_195 = arith.constant 3 : index
      %c0_196 = arith.constant 0 : index
      %c0_197 = arith.constant 0 : index
      %255 = vector.load %arg4[%c2_194, %c3_195, %c0_196, %c0_197] : memref<3x4x1x8xf32, #tpu.memory_space<vmem>>, vector<1x1x1x8xf32>
      %256 = vector.shape_cast %255 : vector<1x1x1x8xf32> to vector<1x8xf32>
      %257 = vector.broadcast %256 : vector<1x8xf32> to vector<16x8xf32>
      %258 = arith.addf %254, %257 : vector<16x8xf32>
      %259 = arith.truncf %258 : vector<16x8xf32> to vector<16x8xbf16>
      %c3_198 = arith.constant 3 : index
      %c0_199 = arith.constant 0 : index
      %c0_200 = arith.constant 0 : index
      %260 = vector.load %arg12[%c3_198, %c0_199, %c0_200] : memref<4x16x8xbf16, #tpu.memory_space<vmem>>, vector<1x16x8xbf16>
      %261 = vector.shape_cast %260 : vector<1x16x8xbf16> to vector<16x8xbf16>
      %262 = vector.shape_cast %259 : vector<16x8xbf16> to vector<1x16x8xbf16>
      tpu.vector_store %arg12[%c3_198, %c0_199, %c0_200], %262 {strides = array<i32>} : memref<4x16x8xbf16, #tpu.memory_space<vmem>>, vector<1x16x8xbf16>,
    } else {
    }
    %c8_i32 = arith.constant 8 : i32
    %10 = arith.muli %arg1, %c8_i32 : i32
    %11 = tpu.assume_multiple %10, 8 : i32
    %c0_2 = arith.constant 0 : index
    %12 = arith.index_cast %11 : i32 to index
    %c0_3 = arith.constant 0 : index
    %13 = vector.load %arg2[%c0_2, %12, %c0_3] : memref<1x16x32xbf16, #tpu.memory_space<vmem>>, vector<1x8x32xbf16>
    %14 = vector.shape_cast %13 : vector<1x8x32xbf16> to vector<8x32xbf16>
    %15 = arith.extf %14 : vector<8x32xbf16> to vector<8x32xf32>
    %16 = tpu.iota {dimensions = array<i32: 0>} : vector<8x16xi32>
    %17 = vector.broadcast %11 : i32 to vector<8x16xi32>
    %18 = arith.addi %17, %16 : vector<8x16xi32>
    %19 = tpu.iota {dimensions = array<i32: 1>} : vector<8x16xi32>
    %20 = arith.cmpi sgt, %19, %18 : vector<8x16xi32>
    %cst = arith.constant -1.000000e+30 : f32
    %cst_4 = arith.constant 0.000000e+00 : f32
    %21 = vector.broadcast %cst : f32 to vector<8x16xf32>
    %22 = vector.broadcast %cst_4 : f32 to vector<8x16xf32>
    %23 = arith.select %20, %21, %22 : vector<8x16xi1>, vector<8x16xf32>
    %c0_5 = arith.constant 0 : index
    %c0_6 = arith.constant 0 : index
    %c0_7 = arith.constant 0 : index
    %c0_8 = arith.constant 0 : index
    %24 = vector.load %arg3[%c0_5, %c0_6, %c0_7, %c0_8] : memref<3x4x32x8xbf16, #tpu.memory_space<vmem>>, vector<1x1x32x8xbf16>
    %25 = vector.shape_cast %24 : vector<1x1x32x8xbf16> to vector<32x8xbf16>
    %cst_9 = arith.constant dense<0.000000e+00> : vector<8x8xf32>
    %26 = tpu.matmul %14, %25, %cst_9 {dimension_numbers = #tpu.dot_dimension_numbers<[1], [0], [0], [1], [0, 0, 1, 1], [], []>} : vector<8x32xbf16>, vector<32x8xbf16>, vector<8x8xf32> -> vector<8x8xf32>
    %c0_10 = arith.constant 0 : index
    %c0_11 = arith.constant 0 : index
    %c0_12 = arith.constant 0 : index
    %c0_13 = arith.constant 0 : index
    %27 = vector.load %arg4[%c0_10, %c0_11, %c0_12, %c0_13] : memref<3x4x1x8xf32, #tpu.memory_space<vmem>>, vector<1x1x1x8xf32>
    %28 = vector.shape_cast %27 : vector<1x1x1x8xf32> to vector<1x8xf32>
    %29 = vector.broadcast %28 : vector<1x8xf32> to vector<8x8xf32>
    %30 = arith.addf %26, %29 : vector<8x8xf32>
    %31 = arith.truncf %30 : vector<8x8xf32> to vector<8x8xbf16>
    %c0_14 = arith.constant 0 : index
    %c0_15 = arith.constant 0 : index
    %c0_16 = arith.constant 0 : index
    %32 = vector.load %arg11[%c0_14, %c0_15, %c0_16] : memref<4x16x8xbf16, #tpu.memory_space<vmem>>, vector<1x16x8xbf16>
    %33 = vector.shape_cast %32 : vector<1x16x8xbf16> to vector<16x8xbf16>
    %cst_17 = arith.constant dense<0.000000e+00> : vector<8x16xf32>
    %34 = tpu.matmul %31, %33, %cst_17 {dimension_numbers = #tpu.dot_dimension_numbers<[1], [1], [0], [0], [0, 0, 1, 0], [], []>} : vector<8x8xbf16>, vector<16x8xbf16>, vector<8x16xf32> -> vector<8x16xf32>
    %35 = arith.addf %34, %23 : vector<8x16xf32>
    %cst_18 = arith.constant dense<0xFF800000> : vector<8xf32>
    %36 = vector.multi_reduction <maximumf>, %35, %cst_18 [1] : vector<8x16xf32> to vector<8xf32>
    %37 = vector.shape_cast %36 : vector<8xf32> to vector<8x1xf32>
    %38 = vector.broadcast %37 : vector<8x1xf32> to vector<8x16xf32>
    %39 = arith.subf %35, %38 : vector<8x16xf32>
    %40 = math.exp %39 : vector<8x16xf32>
    %cst_19 = arith.constant dense<0.000000e+00> : vector<8xf32>
    %41 = vector.multi_reduction <add>, %40, %cst_19 [1] : vector<8x16xf32> to vector<8xf32>
    %42 = vector.shape_cast %41 : vector<8xf32> to vector<8x1xf32>
    %43 = tpu.reciprocal %42 {approx = true} : vector<8x1xf32> -> vector<8x1xf32>
    %44 = vector.broadcast %43 : vector<8x1xf32> to vector<8x16xf32>
    %45 = arith.mulf %40, %44 : vector<8x16xf32>
    %46 = arith.truncf %45 : vector<8x16xf32> to vector<8x16xbf16>
    %c0_20 = arith.constant 0 : index
    %c0_21 = arith.constant 0 : index
    %c0_22 = arith.constant 0 : index
    %47 = vector.load %arg12[%c0_20, %c0_21, %c0_22] : memref<4x16x8xbf16, #tpu.memory_space<vmem>>, vector<1x16x8xbf16>
    %48 = vector.shape_cast %47 : vector<1x16x8xbf16> to vector<16x8xbf16>
    %cst_23 = arith.constant dense<0.000000e+00> : vector<8x8xf32>
    %49 = tpu.matmul %46, %48, %cst_23 {dimension_numbers = #tpu.dot_dimension_numbers<[1], [0], [0], [1], [0, 0, 1, 1], [], []>} : vector<8x16xbf16>, vector<16x8xbf16>, vector<8x8xf32> -> vector<8x8xf32>
    %50 = arith.truncf %49 : vector<8x8xf32> to vector<8x8xbf16>
    %c0_24 = arith.constant 0 : index
    %c0_25 = arith.constant 0 : index
    %51 = vector.load %arg13[%c0_24, %c0_25] : memref<8x32xbf16, #tpu.memory_space<vmem>>, vector<8x8xbf16>
    tpu.vector_store %arg13[%c0_24, %c0_25], %50 {strides = array<i32>} : memref<8x32xbf16, #tpu.memory_space<vmem>>, vector<8x8xbf16>,
    %c0_26 = arith.constant 0 : index
    %c1 = arith.constant 1 : index
    %c0_27 = arith.constant 0 : index
    %c0_28 = arith.constant 0 : index
    %52 = vector.load %arg3[%c0_26, %c1, %c0_27, %c0_28] : memref<3x4x32x8xbf16, #tpu.memory_space<vmem>>, vector<1x1x32x8xbf16>
    %53 = vector.shape_cast %52 : vector<1x1x32x8xbf16> to vector<32x8xbf16>
    %cst_29 = arith.constant dense<0.000000e+00> : vector<8x8xf32>
    %54 = tpu.matmul %14, %53, %cst_29 {dimension_numbers = #tpu.dot_dimension_numbers<[1], [0], [0], [1], [0, 0, 1, 1], [], []>} : vector<8x32xbf16>, vector<32x8xbf16>, vector<8x8xf32> -> vector<8x8xf32>
    %c0_30 = arith.constant 0 : index
    %c1_31 = arith.constant 1 : index
    %c0_32 = arith.constant 0 : index
    %c0_33 = arith.constant 0 : index
    %55 = vector.load %arg4[%c0_30, %c1_31, %c0_32, %c0_33] : memref<3x4x1x8xf32, #tpu.memory_space<vmem>>, vector<1x1x1x8xf32>
    %56 = vector.shape_cast %55 : vector<1x1x1x8xf32> to vector<1x8xf32>
    %57 = vector.broadcast %56 : vector<1x8xf32> to vector<8x8xf32>
    %58 = arith.addf %54, %57 : vector<8x8xf32>
    %59 = arith.truncf %58 : vector<8x8xf32> to vector<8x8xbf16>
    %c1_34 = arith.constant 1 : index
    %c0_35 = arith.constant 0 : index
    %c0_36 = arith.constant 0 : index
    %60 = vector.load %arg11[%c1_34, %c0_35, %c0_36] : memref<4x16x8xbf16, #tpu.memory_space<vmem>>, vector<1x16x8xbf16>
    %61 = vector.shape_cast %60 : vector<1x16x8xbf16> to vector<16x8xbf16>
    %cst_37 = arith.constant dense<0.000000e+00> : vector<8x16xf32>
    %62 = tpu.matmul %59, %61, %cst_37 {dimension_numbers = #tpu.dot_dimension_numbers<[1], [1], [0], [0], [0, 0, 1, 0], [], []>} : vector<8x8xbf16>, vector<16x8xbf16>, vector<8x16xf32> -> vector<8x16xf32>
    %63 = arith.addf %62, %23 : vector<8x16xf32>
    %cst_38 = arith.constant dense<0xFF800000> : vector<8xf32>
    %64 = vector.multi_reduction <maximumf>, %63, %cst_38 [1] : vector<8x16xf32> to vector<8xf32>
    %65 = vector.shape_cast %64 : vector<8xf32> to vector<8x1xf32>
    %66 = vector.broadcast %65 : vector<8x1xf32> to vector<8x16xf32>
    %67 = arith.subf %63, %66 : vector<8x16xf32>
    %68 = math.exp %67 : vector<8x16xf32>
    %cst_39 = arith.constant dense<0.000000e+00> : vector<8xf32>
    %69 = vector.multi_reduction <add>, %68, %cst_39 [1] : vector<8x16xf32> to vector<8xf32>
    %70 = vector.shape_cast %69 : vector<8xf32> to vector<8x1xf32>
    %71 = tpu.reciprocal %70 {approx = true} : vector<8x1xf32> -> vector<8x1xf32>
    %72 = vector.broadcast %71 : vector<8x1xf32> to vector<8x16xf32>
    %73 = arith.mulf %68, %72 : vector<8x16xf32>
    %74 = arith.truncf %73 : vector<8x16xf32> to vector<8x16xbf16>
    %c1_40 = arith.constant 1 : index
    %c0_41 = arith.constant 0 : index
    %c0_42 = arith.constant 0 : index
    %75 = vector.load %arg12[%c1_40, %c0_41, %c0_42] : memref<4x16x8xbf16, #tpu.memory_space<vmem>>, vector<1x16x8xbf16>
    %76 = vector.shape_cast %75 : vector<1x16x8xbf16> to vector<16x8xbf16>
    %cst_43 = arith.constant dense<0.000000e+00> : vector<8x8xf32>
    %77 = tpu.matmul %74, %76, %cst_43 {dimension_numbers = #tpu.dot_dimension_numbers<[1], [0], [0], [1], [0, 0, 1, 1], [], []>} : vector<8x16xbf16>, vector<16x8xbf16>, vector<8x8xf32> -> vector<8x8xf32>
    %78 = arith.truncf %77 : vector<8x8xf32> to vector<8x8xbf16>
    %c0_44 = arith.constant 0 : index
    %c8 = arith.constant 8 : index
    %79 = vector.load %arg13[%c0_44, %c8] : memref<8x32xbf16, #tpu.memory_space<vmem>>, vector<8x8xbf16>
    tpu.vector_store %arg13[%c0_44, %c8], %78 {strides = array<i32>} : memref<8x32xbf16, #tpu.memory_space<vmem>>, vector<8x8xbf16>,
    %c0_45 = arith.constant 0 : index
    %c2 = arith.constant 2 : index
    %c0_46 = arith.constant 0 : index
    %c0_47 = arith.constant 0 : index
    %80 = vector.load %arg3[%c0_45, %c2, %c0_46, %c0_47] : memref<3x4x32x8xbf16, #tpu.memory_space<vmem>>, vector<1x1x32x8xbf16>
    %81 = vector.shape_cast %80 : vector<1x1x32x8xbf16> to vector<32x8xbf16>
    %cst_48 = arith.constant dense<0.000000e+00> : vector<8x8xf32>
    %82 = tpu.matmul %14, %81, %cst_48 {dimension_numbers = #tpu.dot_dimension_numbers<[1], [0], [0], [1], [0, 0, 1, 1], [], []>} : vector<8x32xbf16>, vector<32x8xbf16>, vector<8x8xf32> -> vector<8x8xf32>
    %c0_49 = arith.constant 0 : index
    %c2_50 = arith.constant 2 : index
    %c0_51 = arith.constant 0 : index
    %c0_52 = arith.constant 0 : index
    %83 = vector.load %arg4[%c0_49, %c2_50, %c0_51, %c0_52] : memref<3x4x1x8xf32, #tpu.memory_space<vmem>>, vector<1x1x1x8xf32>
    %84 = vector.shape_cast %83 : vector<1x1x1x8xf32> to vector<1x8xf32>
    %85 = vector.broadcast %84 : vector<1x8xf32> to vector<8x8xf32>
    %86 = arith.addf %82, %85 : vector<8x8xf32>
    %87 = arith.truncf %86 : vector<8x8xf32> to vector<8x8xbf16>
    %c2_53 = arith.constant 2 : index
    %c0_54 = arith.constant 0 : index
    %c0_55 = arith.constant 0 : index
    %88 = vector.load %arg11[%c2_53, %c0_54, %c0_55] : memref<4x16x8xbf16, #tpu.memory_space<vmem>>, vector<1x16x8xbf16>
    %89 = vector.shape_cast %88 : vector<1x16x8xbf16> to vector<16x8xbf16>
    %cst_56 = arith.constant dense<0.000000e+00> : vector<8x16xf32>
    %90 = tpu.matmul %87, %89, %cst_56 {dimension_numbers = #tpu.dot_dimension_numbers<[1], [1], [0], [0], [0, 0, 1, 0], [], []>} : vector<8x8xbf16>, vector<16x8xbf16>, vector<8x16xf32> -> vector<8x16xf32>
    %91 = arith.addf %90, %23 : vector<8x16xf32>
    %cst_57 = arith.constant dense<0xFF800000> : vector<8xf32>
    %92 = vector.multi_reduction <maximumf>, %91, %cst_57 [1] : vector<8x16xf32> to vector<8xf32>
    %93 = vector.shape_cast %92 : vector<8xf32> to vector<8x1xf32>
    %94 = vector.broadcast %93 : vector<8x1xf32> to vector<8x16xf32>
    %95 = arith.subf %91, %94 : vector<8x16xf32>
    %96 = math.exp %95 : vector<8x16xf32>
    %cst_58 = arith.constant dense<0.000000e+00> : vector<8xf32>
    %97 = vector.multi_reduction <add>, %96, %cst_58 [1] : vector<8x16xf32> to vector<8xf32>
    %98 = vector.shape_cast %97 : vector<8xf32> to vector<8x1xf32>
    %99 = tpu.reciprocal %98 {approx = true} : vector<8x1xf32> -> vector<8x1xf32>
    %100 = vector.broadcast %99 : vector<8x1xf32> to vector<8x16xf32>
    %101 = arith.mulf %96, %100 : vector<8x16xf32>
    %102 = arith.truncf %101 : vector<8x16xf32> to vector<8x16xbf16>
    %c2_59 = arith.constant 2 : index
    %c0_60 = arith.constant 0 : index
    %c0_61 = arith.constant 0 : index
    %103 = vector.load %arg12[%c2_59, %c0_60, %c0_61] : memref<4x16x8xbf16, #tpu.memory_space<vmem>>, vector<1x16x8xbf16>
    %104 = vector.shape_cast %103 : vector<1x16x8xbf16> to vector<16x8xbf16>
    %cst_62 = arith.constant dense<0.000000e+00> : vector<8x8xf32>
    %105 = tpu.matmul %102, %104, %cst_62 {dimension_numbers = #tpu.dot_dimension_numbers<[1], [0], [0], [1], [0, 0, 1, 1], [], []>} : vector<8x16xbf16>, vector<16x8xbf16>, vector<8x8xf32> -> vector<8x8xf32>
    %106 = arith.truncf %105 : vector<8x8xf32> to vector<8x8xbf16>
    %c0_63 = arith.constant 0 : index
    %c16 = arith.constant 16 : index
    %107 = vector.load %arg13[%c0_63, %c16] : memref<8x32xbf16, #tpu.memory_space<vmem>>, vector<8x8xbf16>
    tpu.vector_store %arg13[%c0_63, %c16], %106 {strides = array<i32>} : memref<8x32xbf16, #tpu.memory_space<vmem>>, vector<8x8xbf16>,
    %c0_64 = arith.constant 0 : index
    %c3 = arith.constant 3 : index
    %c0_65 = arith.constant 0 : index
    %c0_66 = arith.constant 0 : index
    %108 = vector.load %arg3[%c0_64, %c3, %c0_65, %c0_66] : memref<3x4x32x8xbf16, #tpu.memory_space<vmem>>, vector<1x1x32x8xbf16>
    %109 = vector.shape_cast %108 : vector<1x1x32x8xbf16> to vector<32x8xbf16>
    %cst_67 = arith.constant dense<0.000000e+00> : vector<8x8xf32>
    %110 = tpu.matmul %14, %109, %cst_67 {dimension_numbers = #tpu.dot_dimension_numbers<[1], [0], [0], [1], [0, 0, 1, 1], [], []>} : vector<8x32xbf16>, vector<32x8xbf16>, vector<8x8xf32> -> vector<8x8xf32>
    %c0_68 = arith.constant 0 : index
    %c3_69 = arith.constant 3 : index
    %c0_70 = arith.constant 0 : index
    %c0_71 = arith.constant 0 : index
    %111 = vector.load %arg4[%c0_68, %c3_69, %c0_70, %c0_71] : memref<3x4x1x8xf32, #tpu.memory_space<vmem>>, vector<1x1x1x8xf32>
    %112 = vector.shape_cast %111 : vector<1x1x1x8xf32> to vector<1x8xf32>
    %113 = vector.broadcast %112 : vector<1x8xf32> to vector<8x8xf32>
    %114 = arith.addf %110, %113 : vector<8x8xf32>
    %115 = arith.truncf %114 : vector<8x8xf32> to vector<8x8xbf16>
    %c3_72 = arith.constant 3 : index
    %c0_73 = arith.constant 0 : index
    %c0_74 = arith.constant 0 : index
    %116 = vector.load %arg11[%c3_72, %c0_73, %c0_74] : memref<4x16x8xbf16, #tpu.memory_space<vmem>>, vector<1x16x8xbf16>
    %117 = vector.shape_cast %116 : vector<1x16x8xbf16> to vector<16x8xbf16>
    %cst_75 = arith.constant dense<0.000000e+00> : vector<8x16xf32>
    %118 = tpu.matmul %115, %117, %cst_75 {dimension_numbers = #tpu.dot_dimension_numbers<[1], [1], [0], [0], [0, 0, 1, 0], [], []>} : vector<8x8xbf16>, vector<16x8xbf16>, vector<8x16xf32> -> vector<8x16xf32>
    %119 = arith.addf %118, %23 : vector<8x16xf32>
    %cst_76 = arith.constant dense<0xFF800000> : vector<8xf32>
    %120 = vector.multi_reduction <maximumf>, %119, %cst_76 [1] : vector<8x16xf32> to vector<8xf32>
    %121 = vector.shape_cast %120 : vector<8xf32> to vector<8x1xf32>
    %122 = vector.broadcast %121 : vector<8x1xf32> to vector<8x16xf32>
    %123 = arith.subf %119, %122 : vector<8x16xf32>
    %124 = math.exp %123 : vector<8x16xf32>
    %cst_77 = arith.constant dense<0.000000e+00> : vector<8xf32>
    %125 = vector.multi_reduction <add>, %124, %cst_77 [1] : vector<8x16xf32> to vector<8xf32>
    %126 = vector.shape_cast %125 : vector<8xf32> to vector<8x1xf32>
    %127 = tpu.reciprocal %126 {approx = true} : vector<8x1xf32> -> vector<8x1xf32>
    %128 = vector.broadcast %127 : vector<8x1xf32> to vector<8x16xf32>
    %129 = arith.mulf %124, %128 : vector<8x16xf32>
    %130 = arith.truncf %129 : vector<8x16xf32> to vector<8x16xbf16>
    %c3_78 = arith.constant 3 : index
    %c0_79 = arith.constant 0 : index
    %c0_80 = arith.constant 0 : index
    %131 = vector.load %arg12[%c3_78, %c0_79, %c0_80] : memref<4x16x8xbf16, #tpu.memory_space<vmem>>, vector<1x16x8xbf16>
    %132 = vector.shape_cast %131 : vector<1x16x8xbf16> to vector<16x8xbf16>
    %cst_81 = arith.constant dense<0.000000e+00> : vector<8x8xf32>
    %133 = tpu.matmul %130, %132, %cst_81 {dimension_numbers = #tpu.dot_dimension_numbers<[1], [0], [0], [1], [0, 0, 1, 1], [], []>} : vector<8x16xbf16>, vector<16x8xbf16>, vector<8x8xf32> -> vector<8x8xf32>
    %134 = arith.truncf %133 : vector<8x8xf32> to vector<8x8xbf16>
    %c0_82 = arith.constant 0 : index
    %c24 = arith.constant 24 : index
    %135 = vector.load %arg13[%c0_82, %c24] : memref<8x32xbf16, #tpu.memory_space<vmem>>, vector<8x8xbf16>
    tpu.vector_store %arg13[%c0_82, %c24], %134 {strides = array<i32>} : memref<8x32xbf16, #tpu.memory_space<vmem>>, vector<8x8xbf16>,
    %c0_83 = arith.constant 0 : index
    %c0_84 = arith.constant 0 : index
    %136 = vector.load %arg13[%c0_83, %c0_84] : memref<8x32xbf16, #tpu.memory_space<vmem>>, vector<8x32xbf16>
    %c0_85 = arith.constant 0 : index
    %c0_86 = arith.constant 0 : index
    %137 = vector.load %arg5[%c0_85, %c0_86] : memref<32x32xbf16, #tpu.memory_space<vmem>>, vector<32x32xbf16>
    %cst_87 = arith.constant dense<0.000000e+00> : vector<8x32xf32>
    %138 = tpu.matmul %136, %137, %cst_87 {dimension_numbers = #tpu.dot_dimension_numbers<[1], [0], [0], [1], [0, 0, 1, 1], [], []>} : vector<8x32xbf16>, vector<32x32xbf16>, vector<8x32xf32> -> vector<8x32xf32>
    %139 = vector.broadcast %1 : vector<1x32xf32> to vector<8x32xf32>
    %140 = arith.addf %138, %139 : vector<8x32xf32>
    %141 = arith.addf %15, %140 : vector<8x32xf32>
    %142 = vector.broadcast %3 : vector<1x32xf32> to vector<8x32xf32>
    %143 = arith.mulf %141, %142 : vector<8x32xf32>
    %144 = vector.broadcast %4 : vector<1x32xf32> to vector<8x32xf32>
    %145 = arith.addf %143, %144 : vector<8x32xf32>
    %146 = arith.truncf %141 : vector<8x32xf32> to vector<8x32xbf16>
    %c0_88 = arith.constant 0 : index
    %c0_89 = arith.constant 0 : index
    %147 = vector.load %arg7[%c0_88, %c0_89] : memref<32x128xbf16, #tpu.memory_space<vmem>>, vector<32x128xbf16>
    %cst_90 = arith.constant dense<0.000000e+00> : vector<8x128xf32>
    %148 = tpu.matmul %146, %147, %cst_90 {dimension_numbers = #tpu.dot_dimension_numbers<[1], [0], [0], [1], [0, 0, 1, 1], [], []>} : vector<8x32xbf16>, vector<32x128xbf16>, vector<8x128xf32> -> vector<8x128xf32>
    %c0_91 = arith.constant 0 : index
    %c0_92 = arith.constant 0 : index
    %149 = vector.load %arg8[%c0_91, %c0_92] : memref<1x128xf32, #tpu.memory_space<vmem>>, vector<1x128xf32>
    %150 = vector.broadcast %149 : vector<1x128xf32> to vector<8x128xf32>
    %151 = arith.addf %148, %150 : vector<8x128xf32>
    %cst_93 = arith.constant 5.000000e-01 : f32
    %152 = vector.broadcast %cst_93 : f32 to vector<8x128xf32>
    %153 = arith.mulf %152, %151 : vector<8x128xf32>
    %cst_94 = arith.constant 0.707106769 : f32
    %154 = vector.broadcast %cst_94 : f32 to vector<8x128xf32>
    %155 = arith.mulf %151, %154 : vector<8x128xf32>
    %156 = math.erf %155 : vector<8x128xf32>
    %cst_95 = arith.constant 1.000000e+00 : f32
    %157 = vector.broadcast %cst_95 : f32 to vector<8x128xf32>
    %158 = arith.addf %157, %156 : vector<8x128xf32>
    %159 = arith.mulf %153, %158 : vector<8x128xf32>
    %160 = arith.truncf %159 : vector<8x128xf32> to vector<8x128xbf16>
    %c0_96 = arith.constant 0 : index
    %c0_97 = arith.constant 0 : index
    %161 = vector.load %arg9[%c0_96, %c0_97] : memref<128x32xbf16, #tpu.memory_space<vmem>>, vector<128x32xbf16>
    %cst_98 = arith.constant dense<0.000000e+00> : vector<8x32xf32>
    %162 = tpu.matmul %160, %161, %cst_98 {dimension_numbers = #tpu.dot_dimension_numbers<[1], [0], [0], [1], [0, 0, 1, 1], [], []>} : vector<8x128xbf16>, vector<128x32xbf16>, vector<8x32xf32> -> vector<8x32xf32>
    %163 = vector.broadcast %2 : vector<1x32xf32> to vector<8x32xf32>
    %164 = arith.addf %162, %163 : vector<8x32xf32>
    %165 = arith.addf %164, %145 : vector<8x32xf32>
    %166 = vector.broadcast %5 : vector<1x32xf32> to vector<8x32xf32>
    %167 = arith.mulf %165, %166 : vector<8x32xf32>
    %168 = vector.broadcast %6 : vector<1x32xf32> to vector<8x32xf32>
    %169 = arith.addf %167, %168 : vector<8x32xf32>
    %c0_99 = arith.constant 0 : index
    %c0_100 = arith.constant 0 : index
    %c0_101 = arith.constant 0 : index
    %170 = vector.load %arg10[%c0_99, %c0_100, %c0_101] : memref<1x8x32xf32, #tpu.memory_space<vmem>>, vector<1x8x32xf32>
    %171 = vector.shape_cast %170 : vector<1x8x32xf32> to vector<8x32xf32>
    %172 = vector.shape_cast %169 : vector<8x32xf32> to vector<1x8x32xf32>
    tpu.vector_store %arg10[%c0_99, %c0_100, %c0_101], %172 {strides = array<i32>} : memref<1x8x32xf32, #tpu.memory_space<vmem>>, vector<1x8x32xf32>,
    return
  }
  func.func @transform_0(%arg0: i32, %arg1: i32) -> (i32, i32, i32) {
    %c0_i32 = arith.constant 0 : i32
    %c0_i32_0 = arith.constant 0 : i32
    %c0_i32_1 = arith.constant 0 : i32
    return %arg0, %c0_i32, %c0_i32_0 : i32, i32, i32
  }
  func.func @transform_1(%arg0: i32, %arg1: i32) -> (i32, i32, i32, i32) {
    %c0_i32 = arith.constant 0 : i32
    %c0_i32_0 = arith.constant 0 : i32
    %c0_i32_1 = arith.constant 0 : i32
    %c0_i32_2 = arith.constant 0 : i32
    %c0_i32_3 = arith.constant 0 : i32
    return %c0_i32, %c0_i32_0, %c0_i32_1, %c0_i32_2 : i32, i32, i32, i32
  }
  func.func @transform_2(%arg0: i32, %arg1: i32) -> (i32, i32, i32, i32) {
    %c0_i32 = arith.constant 0 : i32
    %c0_i32_0 = arith.constant 0 : i32
    %c0_i32_1 = arith.constant 0 : i32
    %c0_i32_2 = arith.constant 0 : i32
    %c0_i32_3 = arith.constant 0 : i32
    return %c0_i32, %c0_i32_0, %c0_i32_1, %c0_i32_2 : i32, i32, i32, i32
  }
  func.func @transform_3(%arg0: i32, %arg1: i32) -> (i32, i32) {
    %c0_i32 = arith.constant 0 : i32
    %c0_i32_0 = arith.constant 0 : i32
    %c0_i32_1 = arith.constant 0 : i32
    return %c0_i32, %c0_i32_0 : i32, i32
  }
  func.func @transform_4(%arg0: i32, %arg1: i32) -> (i32, i32) {
    %c0_i32 = arith.constant 0 : i32
    %c0_i32_0 = arith.constant 0 : i32
    %c0_i32_1 = arith.constant 0 : i32
    return %c0_i32, %c0_i32_0 : i32, i32
  }
  func.func @transform_5(%arg0: i32, %arg1: i32) -> (i32, i32) {
    %c0_i32 = arith.constant 0 : i32
    %c0_i32_0 = arith.constant 0 : i32
    %c0_i32_1 = arith.constant 0 : i32
    return %c0_i32, %c0_i32_0 : i32, i32
  }
  func.func @transform_6(%arg0: i32, %arg1: i32) -> (i32, i32) {
    %c0_i32 = arith.constant 0 : i32
    %c0_i32_0 = arith.constant 0 : i32
    %c0_i32_1 = arith.constant 0 : i32
    return %c0_i32, %c0_i32_0 : i32, i32
  }
  func.func @transform_7(%arg0: i32, %arg1: i32) -> (i32, i32) {
    %c0_i32 = arith.constant 0 : i32
    %c0_i32_0 = arith.constant 0 : i32
    %c0_i32_1 = arith.constant 0 : i32
    return %c0_i32, %c0_i32_0 : i32, i32
  }
  func.func @transform_8(%arg0: i32, %arg1: i32) -> (i32, i32, i32) {
    %c0_i32 = arith.constant 0 : i32
    %c0_i32_0 = arith.constant 0 : i32
    return %arg0, %arg1, %c0_i32 : i32, i32, i32
  }
}

</mosaic_0001>

<bundles_post_ra>
// kernel: tpu_custom_call.1
= control target key start
LH: loop header
LB: loop body
LE: loop exit
PB: predicated region body
PF: predicated region fallthrough
CT: control target
= control target key end

     0   :  { %13 = vsyncpa [#allocation6], 0  ;;  %s3096_s0 = inlined_call_operand.vmem [shape: bf16[2,16,32], index: 0, kind: input, shape index: {}]   ;;  %s3097_s1 = inlined_call_operand.vmem [shape: bf16[3,4,32,8], index: 1, kind: input, shape index: {}]   ;;  %s3098_s2 = inlined_call_operand.vmem [shape: f32[3,4,1,8], index: 2, kind: input, shape index: {}]   ;;  %s3099_s3 = inlined_call_operand.vmem [shape: bf16[32,32], index: 3, kind: input, shape index: {}]   ;;  %s3100_s4 = inlined_call_operand.vmem [shape: f32[6,32], index: 4, kind: input, shape index: {}]   ;;  %s3101_s5 = inlined_call_operand.vmem [shape: bf16[32,128], index: 5, kind: input, shape index: {}]   ;;  %s3102_s6 = inlined_call_operand.vmem [shape: f32[1,128], index: 6, kind: input, shape index: {}]   ;;  %s3103_s7 = inlined_call_operand.vmem [shape: bf16[128,32], index: 7, kind: input, shape index: {}]   ;;  %s3104_s8 = inlined_call_operand.hbm [shape: f32[2,16,32], index: 8, kind: output, shape index: {}]  }
   0x1   :  { %15 = vsyncpa [#allocation6 + $0x1], 0  ;;  %s2654_s27 = smov 0   ;;  %s2656_s28 = smov 0  }
   0x2   :  { %s2658_s29 = smov 0   ;;  %s2660_s30 = smov 0  }
   0x3   :  { %s2662_s9 = smov 0   ;;  %s2664_s10 = smov 0  }
   0x4   :  { %s2666_s11 = smov 0   ;;  %s2668_s12 = smov 0  }
   0x5 LB: > { %3108 = sst [smem:[#allocation8_spill]] %s2595_s11  ;;  %s1975_s13 = sadd.s32 4294967295, %s2599_s12   ;;  %s2599_s12 = sphi %s2668_s12, %s21_s12   ;;  %s2595_s11 = sphi %s2666_s11, %s3115_s11   ;;  %s2591_s10 = sphi %s2664_s10, %s3120_s10   ;;  %s2587_s9 = sphi %s2662_s9, %s3113_s9   ;;  %s2583_s30 = sphi %s2660_s30, %s3119_s30   ;;  %s2579_s29 = sphi %s2658_s29, %s3118_s29   ;;  %s2575_s28 = sphi %s2656_s28, %s3117_s28   ;;  %s2571_s27 = sphi %s2654_s27, %s3116_s27  }
   0x6   : > { %s1976_s14 = sadd.s32 4294967294, %s2599_s12   ;;  %s30_s15 = sadd.s32 1, %s2591_s10 }
   0x7   : > { %p31_p0 = scmp.ge.s32.totalorder %s30_s15, 2  ;;  %s33_s16 = sadd.s32 1, %s2595_s11 }
   0x8   : > { %p225_p1 = scmp.ne.s32.totalorder %s2579_s29, %s2575_s28  ;;  %p226_p2 = scmp.eq.s32.totalorder %s1975_s13, 3 }
   0x9   : > { %s3122_s15 = smov (%p31_p0, %s30_s15), 0  ;;  %s3124_s16 = smov (!%p31_p0, %s33_s16), %s2595_s11 }
   0xa   : > { %3109 = sst [smem:[#allocation9_spill]] %s3122_s15  ;;  %s211_s17 = ssub.s32 %s2591_s10, %s3122_s15 }
   0xb   : > { %p2705_p3 = por %p226_p2, %p225_p1  ;;  %p35_p4 = scmp.ge.s32.totalorder %s3124_s16, 2 }
   0xc   : > { %p231_p5 = scmp.ne.s32.totalorder %s2575_s28, %s2571_s27  ;;  %p232_p6 = scmp.eq.s32.totalorder %s1976_s14, 3 }
   0xd   : > { %p1979_p7 = scmp.ge.s32.totalorder %s2599_s12, 1  ;;  %s3126_s16 = smov (%p35_p4, %s3124_s16), 0 }
   0xe   : > { %3111 = sst [smem:[#allocation10_spill]] %s3126_s16  ;;  %p2714_p8 = por %p232_p6, %p231_p5 }
   0xf   : > { %p279_p9 = scmp.lt.s32.totalorder %s2599_s12, 5  ;;  %s210_s20 = ssub.s32 %s2595_s11, %s3126_s16 }
  0x10   : > { %s215_s21 = sadd.s32 1, %s2579_s29  ;;  %s212_s22 = sor.u32 %s211_s17, %s210_s20 }
  0x11   : > { %p280_p10 = pnand %p1979_p7, %p279_p9  ;;  %p213_p11 = scmp.eq.s32.totalorder %s212_s22, 0 }
  0x12   : > { %s310_s24 = sand.u32 (!%p280_p10), 1, %s2575_s28   ;;  %p313_p12 = scmp.lt.s32.totalorder (!%p280_p10), %s2587_s9, 1  ;;  %v2730_v0 = vld [vmem:[%s3100_s4] sm:$0x3f] (!%p280_p10) }
  0x13   : > { %s2723_s23 = scalar_select %p213_p11, %s2579_s29, %s215_s21  }
  0x14   : > { %283 = sbr.rel (%p280_p10) target bundleno = 3888 (0xf30), region = 52  ;;  %s2734_s13 = sshll.u32 (!%p280_p10), %s310_s24, 3 }
  0x15   : > { %s312_s16 = scalar_lea.vmem (!%p280_p10), [#allocation5], %s2734_s13  ;;  %p1983_p13 = scmp.ne.s32.totalorder (!%p280_p10), %s2583_s30, 0 }
  0x1b   : > { %s314_s14 = scalar_select %p313_p12, %s2587_s9, 1 }
  0x1c   : > { %323 = sbr.rel (%p1983_p13) target bundleno = 281 (0x119), region = 56  ;;  %v2450_v1 = vld [vmem:[%s3097_s1 + $0x40] sm:$0xff] (!%p1983_p13)   ;;  %v2601_v2 = vmov (!%p1983_p13), 0.0   ;;  %v2452_v4 = vld [vmem:[%s3097_s1 + $0x48] sm:$0xff] (!%p1983_p13)   ;;  %vm2602_vm0 = vmmov (!%p1983_p13), 0   ;;  %vm356_vm1 = vcmask (!%p1983_p13), 261120  }
  0x1d   : > { %s2121_s17 = sshll.u32 %s314_s14, 3  ;;  %2192 = vmatprep.subr.bf16.mxu0 (!%p1983_p13), %v2601_v2  ;;  %2200 = vmatprep.subr.bf16.mxu1 (!%p1983_p13), %v2601_v2  ;;  %v2451_v3 = vld [vmem:[%s3097_s1 + $0x80] sm:$0xff] (!%p1983_p13)   ;;  %v2453_v5 = vld [vmem:[%s3097_s1 + $0x88] sm:$0xff] (!%p1983_p13)   ;;  %v2455_v7 = vld [vmem:[%s3097_s1 + $0x50] sm:$0xff] (!%p1983_p13)   ;;  %vm402_vm2 = vcmask (!%p1983_p13), 64512  }
  0x1e   : > { %s2740_s22 = scalar_lea.vmem %s3096_s0, %s2121_s17  ;;  %2193 = vmatpush3.bf16.msra.mxu0 (!%p1983_p13), %v2450_v1  ;;  %2196 = vmatprep.mubr.msk.bf16.mxu0 (!%p1983_p13), %vm2602_vm0, %v2601_v2  ;;  %v2456_v8 = vld [vmem:[%s3097_s1 + $0x90] sm:$0xff] (!%p1983_p13)   ;;  %v2457_v9 = vld [vmem:[%s3097_s1 + $0x58] sm:$0xff] (!%p1983_p13)   ;;  %v2459_v11 = vld [vmem:[%s3097_s1 + $0x60] sm:$0xff] (!%p1983_p13)  }
  0x1f   : > { %2201 = vmatpush3.bf16.msra.mxu1 (!%p1983_p13), %v2451_v3  ;;  %2194 = vmatprep.subr.bf16.mxu0 (!%p1983_p13), %v2601_v2  ;;  %v2454_v6 = vld [vmem:[%s2740_s22] sm:$0xff] (!%p1983_p13)   ;;  %v2458_v10 = vld [vmem:[%s3097_s1 + $0x98] sm:$0xff] (!%p1983_p13)   ;;  %v2461_v13 = vld [vmem:[%s3097_s1 + $0x68] sm:$0xff] (!%p1983_p13)  }
  0x20   : > { %2202 = vmatprep.subr.bf16.mxu1 (!%p1983_p13), %v2601_v2  ;;  %2204 = vmatprep.mubr.msk.bf16.mxu1 (!%p1983_p13), %vm2602_vm0, %v2601_v2  ;;  %v2460_v12 = vld [vmem:[%s3097_s1 + $0xa0] sm:$0xff] (!%p1983_p13)   ;;  %v2462_v14 = vld [vmem:[%s3097_s1 + $0xa8] sm:$0xff] (!%p1983_p13)   ;;  %v2463_v15 = vld [vmem:[%s3097_s1 + $0x70] sm:$0xff] (!%p1983_p13)  }
  0x21   : > { %v2464_v16 = vld [vmem:[%s3097_s1 + $0xb0] sm:$0xff] (!%p1983_p13)   ;;  %v2465_v17 = vld [vmem:[%s3097_s1 + $0x78] sm:$0xff] (!%p1983_p13)   ;;  %v1989_v19 = vld [vmem:[%s3098_s2 + $0x4] ss:$0 sm:$0xff] (!%p1983_p13) }
  0x22   : > { %2195 = vmatpush3.bf16.msra.mxu0 (!%p1983_p13), %v2452_v4  ;;  %v2466_v18 = vld [vmem:[%s3097_s1 + $0xb8] sm:$0xff] (!%p1983_p13)   ;;  %v1999_v21 = vld [vmem:[%s3098_s2 + $0x8] ss:$0 sm:$0xff] (!%p1983_p13)  ;;  %v2008_v35 = vld [vmem:[%s3098_s2 + $0x5] ss:$0 sm:$0xff] (!%p1983_p13) }
  0x23   : > { %2203 = vmatpush3.bf16.msra.mxu1 %v2453_v5  ;;  %2208 = vmatprep.subr.bf16.mxu0 %v2601_v2  ;;  %v2017_v37 = vld [vmem:[%s3098_s2 + $0x9] ss:$0 sm:$0xff]  ;;  %v2026_v51 = vld [vmem:[%s3098_s2 + $0x6] ss:$0 sm:$0xff]  ;;  %v2035_v53 = vld [vmem:[%s3098_s2 + $0xa] ss:$0 sm:$0xff] }
  0x24   : > { %2216 = vmatprep.subr.bf16.mxu1 %v2601_v2  ;;  %v2044_v4 = vld [vmem:[%s3098_s2 + $0x7] ss:$0 sm:$0xff] }
  0x25   : > { %2197 = vmatmul.mubr.msk.bf16.vlgmr.msra.gmra.mrb[0].mxu0 %vm356_vm1, %v2454_v6 }
  0x26   : > { %2205 = vmatmul.mubr.msk.bf16.vlgmr.msra.gmra.mrb[0].mxu1 %vm356_vm1, %v2454_v6  ;;  %2209 = vmatpush3.bf16.msra.mxu0 %v2455_v7 }
  0x27   : > { %2217 = vmatpush3.bf16.msra.mxu1 %v2456_v8  ;;  %2210 = vmatprep.subr.bf16.mxu0 %v2601_v2 }
  0x28   : > { %2218 = vmatprep.subr.bf16.mxu1 %v2601_v2  ;;  %2212 = vmatprep.mubr.msk.bf16.mxu0 %vm2602_vm0, %v2601_v2 }
  0x29   : > { %2220 = vmatprep.mubr.msk.bf16.mxu1 %vm2602_vm0, %v2601_v2 }
  0x2a   : > { %2211 = vmatpush3.bf16.msra.mxu0 %v2457_v9 }
  0x2b   : > { %2219 = vmatpush3.bf16.msra.mxu1 %v2458_v10  ;;  %2224 = vmatprep.subr.bf16.mxu0 %v2601_v2 }
  0x2c   : > { %2232 = vmatprep.subr.bf16.mxu1 %v2601_v2 }
  0x2d   : > { %2213 = vmatmul.mubr.msk.bf16.vlgmr.msra.gmra.mrb[4].mxu0 %vm356_vm1, %v2454_v6 }
  0x2e   : > { %2221 = vmatmul.mubr.msk.bf16.vlgmr.msra.gmra.mrb[4].mxu1 %vm356_vm1, %v2454_v6  ;;  %2225 = vmatpush3.bf16.msra.mxu0 %v2459_v11 }
  0x2f   : > { %2233 = vmatpush3.bf16.msra.mxu1 %v2460_v12  ;;  %2226 = vmatprep.subr.bf16.mxu0 %v2601_v2 }
  0x30   : > { %2234 = vmatprep.subr.bf16.mxu1 %v2601_v2  ;;  %2228 = vmatprep.mubr.msk.bf16.mxu0 %vm2602_vm0, %v2601_v2 }
  0x31   : > { %2236 = vmatprep.mubr.msk.bf16.mxu1 %vm2602_vm0, %v2601_v2 }
  0x32   : > { %2227 = vmatpush3.bf16.msra.mxu0 %v2461_v13 }
  0x33   : > { %2235 = vmatpush3.bf16.msra.mxu1 %v2462_v14  ;;  %2240 = vmatprep.subr.bf16.mxu0 %v2601_v2 }
  0x34   : > { %2248 = vmatprep.subr.bf16.mxu1 %v2601_v2 }
  0x35   : > { %2229 = vmatmul.mubr.msk.bf16.vlgmr.msra.gmra.mrb[8].mxu0 %vm356_vm1, %v2454_v6 }
  0x36   : > { %2237 = vmatmul.mubr.msk.bf16.vlgmr.msra.gmra.mrb[8].mxu1 %vm356_vm1, %v2454_v6  ;;  %2241 = vmatpush3.bf16.msra.mxu0 %v2463_v15 }
  0x37   : > { %2249 = vmatpush3.bf16.msra.mxu1 %v2464_v16  ;;  %2242 = vmatprep.subr.bf16.mxu0 %v2601_v2 }
  0x38   : > { %2250 = vmatprep.subr.bf16.mxu1 %v2601_v2  ;;  %2244 = vmatprep.mubr.msk.bf16.mxu0 %vm2602_vm0, %v2601_v2 }
  0x39   : > { %2252 = vmatprep.mubr.msk.bf16.mxu1 %vm2602_vm0, %v2601_v2 }
  0x3a   : > { %2243 = vmatpush3.bf16.msra.mxu0 %v2465_v17 }
  0x3b   : > { %2251 = vmatpush3.bf16.msra.mxu1 %v2466_v18 }
  0x3d   : > { %2245 = vmatmul.mubr.msk.bf16.vlgmr.msra.gmra.mrb[12].mxu0 %vm356_vm1, %v2454_v6 }
  0x3e   : > { %2253 = vmatmul.mubr.msk.bf16.vlgmr.msra.gmra.mrb[12].mxu1 %vm356_vm1, %v2454_v6  ;;  %v2053_v6 = vld [vmem:[%s3098_s2 + $0xb] ss:$0 sm:$0xff] }
  0xf8   : > { %v394_v20 = vpop.f32.mrb[0].mxu0 }
  0xf9   : > { %v463_v22 = vpop.f32.mrb[0].mxu1  ;;  %v2198_v23 = vpop.f32.mrb[1].mxu0  ;;  %v395_v26 = vadd.f32 %v1989_v19, %v394_v20 }
  0xfa   : > { %v2206_v24 = vpop.f32.mrb[1].mxu1  ;;  %v397_v25 = vpop.f32.mrb[2].mxu0  ;;  %v464_v30 = vadd.f32 %v1999_v21, %v463_v22 }
  0xfb   : > { %v398_v27 = vadd.f32 %v1989_v19, %v397_v25  ;;  %v466_v28 = vpop.f32.mrb[2].mxu1  ;;  %v2199_v29 = vpop.f32.mrb[3].mxu0 }
  0xfc   : > { %v467_v31 = vadd.f32 %v1999_v21, %v466_v28  ;;  %v2207_v32 = vpop.f32.mrb[3].mxu1 }
  0xfd   : > { %v401_v33 = vpack.c.bf16 %v398_v27, %v395_v26 }
  0xfe   : > { %v470_v34 = vpack.c.bf16 %v467_v31, %v464_v30 }
  0xff   : > { %403 = vst.msk [vmem:[#allocation2] sm:$0xff] %vm402_vm2, %v401_v33 }
 0x100   : > { %471 = vst.msk [vmem:[#allocation3] sm:$0xff] %vm402_vm2, %v470_v34  ;;  %v531_v36 = vpop.f32.mrb[4].mxu0 }
 0x101   : > { %v600_v38 = vpop.f32.mrb[4].mxu1  ;;  %v2214_v39 = vpop.f32.mrb[5].mxu0  ;;  %v532_v42 = vadd.f32 %v2008_v35, %v531_v36 }
 0x102   : > { %v2222_v40 = vpop.f32.mrb[5].mxu1  ;;  %v534_v41 = vpop.f32.mrb[6].mxu0  ;;  %v601_v46 = vadd.f32 %v2017_v37, %v600_v38 }
 0x103   : > { %v535_v43 = vadd.f32 %v2008_v35, %v534_v41  ;;  %v603_v44 = vpop.f32.mrb[6].mxu1  ;;  %v2215_v45 = vpop.f32.mrb[7].mxu0 }
 0x104   : > { %v604_v47 = vadd.f32 %v2017_v37, %v603_v44  ;;  %v2223_v48 = vpop.f32.mrb[7].mxu1 }
 0x105   : > { %v538_v49 = vpack.c.bf16 %v535_v43, %v532_v42 }
 0x106   : > { %v607_v50 = vpack.c.bf16 %v604_v47, %v601_v46 }
 0x107   : > { %540 = vst.msk [vmem:[#allocation2 + $0x8] sm:$0xff] %vm402_vm2, %v538_v49 }
 0x108   : > { %609 = vst.msk [vmem:[#allocation3 + $0x8] sm:$0xff] %vm402_vm2, %v607_v50  ;;  %v669_v52 = vpop.f32.mrb[8].mxu0 }
 0x109   : > { %v738_v54 = vpop.f32.mrb[8].mxu1  ;;  %v2230_v55 = vpop.f32.mrb[9].mxu0  ;;  %v670_v58 = vadd.f32 %v2026_v51, %v669_v52 }
 0x10a   : > { %v2238_v56 = vpop.f32.mrb[9].mxu1  ;;  %v672_v57 = vpop.f32.mrb[10].mxu0  ;;  %v739_v62 = vadd.f32 %v2035_v53, %v738_v54 }
 0x10b   : > { %v673_v59 = vadd.f32 %v2026_v51, %v672_v57  ;;  %v741_v60 = vpop.f32.mrb[10].mxu1  ;;  %v2231_v61 = vpop.f32.mrb[11].mxu0 }
 0x10c   : > { %v742_v63 = vadd.f32 %v2035_v53, %v741_v60  ;;  %v2239_v1 = vpop.f32.mrb[11].mxu1 }
 0x10d   : > { %v676_v2 = vpack.c.bf16 %v673_v59, %v670_v58 }
 0x10e   : > { %v745_v3 = vpack.c.bf16 %v742_v63, %v739_v62 }
 0x10f   : > { %678 = vst.msk [vmem:[#allocation2 + $0x10] sm:$0xff] %vm402_vm2, %v676_v2 }
 0x110   : > { %747 = vst.msk [vmem:[#allocation3 + $0x10] sm:$0xff] %vm402_vm2, %v745_v3  ;;  %v807_v5 = vpop.f32.mrb[12].mxu0 }
 0x111   : > { %v876_v7 = vpop.f32.mrb[12].mxu1  ;;  %v2246_v8 = vpop.f32.mrb[13].mxu0  ;;  %v808_v11 = vadd.f32 %v2044_v4, %v807_v5 }
 0x112   : > { %v2254_v9 = vpop.f32.mrb[13].mxu1  ;;  %v810_v10 = vpop.f32.mrb[14].mxu0  ;;  %v877_v15 = vadd.f32 %v2053_v6, %v876_v7 }
 0x113   : > { %v811_v12 = vadd.f32 %v2044_v4, %v810_v10  ;;  %v879_v13 = vpop.f32.mrb[14].mxu1  ;;  %v2247_v14 = vpop.f32.mrb[15].mxu0 }
 0x114   : > { %v880_v16 = vadd.f32 %v2053_v6, %v879_v13  ;;  %v2255_v17 = vpop.f32.mrb[15].mxu1 }
 0x115   : > { %v814_v18 = vpack.c.bf16 %v811_v12, %v808_v11 }
 0x116   : > { %v883_v19 = vpack.c.bf16 %v880_v16, %v877_v15 }
 0x117   : > { %816 = vst.msk [vmem:[#allocation2 + $0x18] sm:$0xff] %vm402_vm2, %v814_v18 }
 0x118   : > { %885 = vst.msk [vmem:[#allocation3 + $0x18] sm:$0xff] %vm402_vm2, %v883_v19 }
 0x119 PF: > { %v2467_v20 = vld [vmem:[%s3097_s1] sm:$0xff]   ;;  %v2603_v21 = vmov 0.0   ;;  %v2468_v22 = vld [vmem:[%s3097_s1 + $0x8] sm:$0xff]   ;;  %vm2604_vm3 = vmmov 0   ;;  %s2057_s14 = sshll.u32 %s2583_s30, 3  ;;  %vm970_vm4 = vcmask 64512   ;;  %v893_v33 = vlaneseq }
 0x11a   : > { %2256 = vmatprep.subr.bf16.mxu1 %v2603_v21  ;;  %2284 = vmatprep.subr.bf16.mxu0 %v2603_v21  ;;  %v969_v23 = vld [vmem:[#allocation2] sm:$0xff]  ;;  %s887_s17 = sshra.s32 %s2057_s14, 3  ;;  %vm924_vm5 = vcmask 261120   ;;  %v895_v35 = vstv %s2057_s14  ;;  %vm1017_vm7 = vcmask 130048   ;;  %v2469_v54 = vld [vmem:[%s3097_s1 + $0x10] sm:$0xff]   ;;  %v2470_v56 = vld [vmem:[%s3097_s1 + $0x18] sm:$0xff]  }
 0x11b   : > { %2257 = vmatpush3.bf16.msra.mxu1 %v2467_v20  ;;  %2260 = vmatprep.mubr.msk.bf16.mxu1 %vm2604_vm3, %v2603_v21  ;;  %s2058_s11 = sshll.u32 %s887_s17, 2  ;;  %v975_v24 = vsel %vm970_vm4, %v969_v23, 0  ;;  %v2059_v26 = vld [vmem:[%s3098_s2] ss:$0 sm:$0xff]  ;;  %v2871_v34 = vshrl.u32 %v893_v33, 7  ;;  %v898_v37 = vand.u32 127, %v893_v33 }
 0x11c   : > { %2258 = vmatprep.subr.bf16.mxu1 %v2603_v21  ;;  %2286 = vmatprep.mubr.msk.bf16.mxu0 %vm2604_vm3, %v2603_v21  ;;  %s890_s15 = scalar_lea.vmem %s2740_s22, %s2058_s11  ;;  %v1030_v50 = vld [vmem:[#allocation3] sm:$0xff]  ;;  %v1144_v57 = vld [vmem:[#allocation2 + $0x8] sm:$0xff]  ;;  %vm1075_vm8 = vcmask 60416   ;;  %s2605_s22 = smov 8   ;;  %vm1255_vm9 = vcmask 126016   ;;  %vm1435_vm10 = vcmask 191616  }
 0x11d   : > { %v2857_v25 = vld [vmem:[%s890_s15] sm:$0xf]  ;;  %v896_v36 = vadd.s32 %v895_v35, %v2871_v34  ;;  %v1149_v58 = vsel %vm970_vm4, %v1144_v57, 0  ;;  %v2472_v9 = vld [vmem:[%s3097_s1 + $0x28] sm:$0xff]   ;;  %s2606_s25 = smov 16   ;;  %s2607_s21 = smov 24  }
 0x11e   : > { %2285 = vmatpush3.bf16.xpose.msra.mxu0 %v1149_v58  ;;  %v2070_v1 = vld [vmem:[%s3098_s2 + $0x1] ss:$0 sm:$0xff]  ;;  %vm1615_vm11 = vcmask 257216   ;;  %s2117_s26 = sshll.u32 %s2587_s9, 1  ;;  %s1901_s9 = sshll.u32 %s312_s16, 4  ;;  %s3040_s9 = int_to_ptr.vmem [resolvable:$true] %s1901_s9 }
 0x11f   : > { %2259 = vmatpush3.bf16.msra.mxu1 %v2468_v22  ;;  %vm899_vm6 = vcmp.gt.s32.totalorder %v898_v37, %v896_v36  ;;  %2296 = vmatprep.subr.bf16.mxu0 %v2603_v21  ;;  %v2471_v8 = vld [vmem:[%s3097_s1 + $0x20] sm:$0xff]   ;;  %v1204_v22 = vld [vmem:[#allocation3 + $0x8] sm:$0xff]  ;;  %s1897_s14 = sadd.s32 %s2583_s30, %s2117_s26  ;;  %s1886_s30 = scalar_lea.sflag [#allocation6], %s310_s24 }
 0x120   : > { %2264 = vmatprep.subr.bf16.mxu1 %v2603_v21  ;;  %v2875_v38 = vsel %vm899_vm6, -1e+30, %v2603_v21  ;;  %s2118_s17 = sshll.u32 %s1897_s14, 7 }
 0x121   : > { %s3038_s20 = scalar_lea.hbm %s3104_s8, %s2118_s17 }
 0x122   : > { %2261 = vmatmul.mubr.msk.bf16.vlgmr.msra.gmra.mrb[0].mxu1 %vm924_vm5, %v2857_v25 }
 0x123   : > { %2266 = vmatprep.mubr.msk.bf16.mxu1 %vm2604_vm3, %v2603_v21 }
 0x128   : > { %2265 = vmatpush3.bf16.xpose.msra.mxu1 %v975_v24 }
 0x129   : > { %2270 = vmatprep.subr.bf16.mxu1 %v2603_v21 }
 0x1f5   : > { %v962_v27 = vpop.f32.mrb[0].mxu1 }
 0x1f6   : > { %v963_v28 = vadd.f32 %v2059_v26, %v962_v27  ;;  %v2262_v29 = vpop.f32.mrb[1].mxu1 }
 0x1f7   : > { %v965_v30 = vpop.f32.mrb[2].mxu1 }
 0x1f8   : > { %v968_v31 = vpack.c.bf16 %v963_v28, %v963_v28  ;;  %v2263_v32 = vpop.f32.mrb[3].mxu1  ;;  %v1324_v30 = vld [vmem:[#allocation2 + $0x10] sm:$0xff] }
 0x1f9   : > { %v2082_v32 = vld [vmem:[%s3098_s2 + $0x2] ss:$0 sm:$0xff]  ;;  %v1329_v35 = vsel %vm970_vm4, %v1324_v30, 0 }
 0x1fa   : > { %2267 = vmatmul.mubr.msk.bf16.vlgmr.msra.gmra.mrb[4].mxu1 %vm970_vm4, %v968_v31 }
 0x1fb   : > { %2272 = vmatprep.mubr.msk.bf16.mxu1 %vm2604_vm3, %v2603_v21  ;;  %2271 = vmatpush3.bf16.msra.mxu1 %v1030_v50 }
 0x1fc   : > { %2276 = vmatprep.subr.bf16.mxu1 %v2603_v21 }
 0x2cd   : > { %v1011_v39 = vpop.f32.mrb[4].mxu1 }
 0x2ce   : > { %v1012_v40 = vadd.f32 %v1011_v39, %v2875_v38  ;;  %v2268_v41 = vpop.f32.mrb[5].mxu1  ;;  %v2473_v39 = vld [vmem:[%s3097_s1 + $0x30] sm:$0xff]  }
 0x2cf   : > { %v1014_v42 = vpop.f32.mrb[6].mxu1 }
 0x2d0   : > { %v2269_v43 = vpop.f32.mrb[7].mxu1  ;;  %v1018_v44 = vsel %vm1017_vm7, %v1012_v40, -inf }
 0x2d1   : > { %1019 = vmax.xlane.f32.xlu0 %v1018_v44 }
 0x35e   : > { %v1020_v45 = vpop.xlane.xlu0 %1019 }
 0x35f   : > { %v1021_v46 = vsub.f32 %v1012_v40, %v1020_v45  ;;  %v2474_v40 = vld [vmem:[%s3097_s1 + $0x38] sm:$0xff]  }
 0x361   : > { %v1022_v47 = vmul.f32 1.442695, %v1021_v46 }
 0x363   : > { %2487 = vpow2.f32 %v1022_v47 }
 0x36d   : > { %v2488_v48 = vpop.eup %2487 }
 0x36e   : > { %v1024_v49 = vsel %vm1017_vm7, %v2488_v48, 0.0 }
 0x36f   : > { %1025 = vadd.xlane.f32.xlu0 %v1024_v49 }
 0x3fc   : > { %v1026_v51 = vpop.xlane.xlu0 %1025 }
 0x3fd   : > { %2489 = vrcp.f32 %v1026_v51 }
 0x407   : > { %v2490_v52 = vpop.eup %2489 }
 0x408   : > { %v1028_v53 = vmul.f32 %v2490_v52, %v2488_v48 }
 0x40a   : > { %v1029_v55 = vpack.c.bf16 %v1028_v53, %v1028_v53 }
 0x40c   : > { %2273 = vmatmul.mubr.msk.bf16.vlgmr.msra.gmra.mrb[8].mxu1 %vm1017_vm7, %v1029_v55 }
 0x40d   : > { %2277 = vmatpush3.bf16.msra.mxu1 %v2469_v54  ;;  %2280 = vmatprep.mubr.msk.bf16.mxu1 %vm2604_vm3, %v2603_v21 }
 0x40e   : > { %2278 = vmatprep.subr.bf16.mxu1 %v2603_v21 }
 0x411   : > { %2279 = vmatpush3.bf16.msra.mxu1 %v2470_v56  ;;  %v1384_v56 = vld [vmem:[#allocation3 + $0x10] sm:$0xff] }
 0x412   : > { %2290 = vmatprep.subr.bf16.mxu1 %v2603_v21 }
 0x414   : > { %2281 = vmatmul.mubr.msk.bf16.vlgmr.msra.gmra.mrb[12].mxu1 %vm924_vm5, %v2857_v25 }
 0x415   : > { %2292 = vmatprep.mubr.msk.bf16.mxu1 %vm2604_vm3, %v2603_v21  ;;  %2291 = vmatpush3.bf16.msra.mxu1 %v1204_v22 }
 0x416   : > { %2304 = vmatprep.subr.bf16.mxu1 %v2603_v21 }
 0x4df   : > { %v1068_v59 = vpop.f32.mrb[8].mxu1 }
 0x4e0   : > { %v1074_v60 = vpack.c.bf16 %v1068_v59, %v1068_v59  ;;  %v2274_v61 = vpop.f32.mrb[9].mxu1 }
 0x4e1   : > { %v1071_v62 = vpop.f32.mrb[10].mxu1 }
 0x4e2   : > { %1076 = vst.msk [vmem:[#allocation4] sm:$0xf] %vm1075_vm8, %v1074_v60  ;;  %v2275_v63 = vpop.f32.mrb[11].mxu1 }
 0x4e3   : > { %v1504_v63 = vld [vmem:[#allocation2 + $0x18] sm:$0xff] }
 0x4e7   : > { %v1136_v2 = vpop.f32.mrb[12].mxu1 }
 0x4e8   : > { %v1137_v3 = vadd.f32 %v2070_v1, %v1136_v2  ;;  %v2282_v4 = vpop.f32.mrb[13].mxu1  ;;  %v2094_v2 = vld [vmem:[%s3098_s2 + $0x3] ss:$0 sm:$0xff] }
 0x4e9   : > { %v1139_v5 = vpop.f32.mrb[14].mxu1  ;;  %v1509_v4 = vsel %vm970_vm4, %v1504_v63, 0 }
 0x4ea   : > { %v1142_v6 = vpack.c.bf16 %v1137_v3, %v1137_v3  ;;  %v2283_v7 = vpop.f32.mrb[15].mxu1 }
 0x4ec   : > { %2287 = vmatmul.mubr.msk.bf16.vlgmr.msra.gmra.mrb[0].mxu0 %vm970_vm4, %v1142_v6 }
 0x4ed   : > { %2300 = vmatprep.mubr.msk.bf16.mxu0 %vm2604_vm3, %v2603_v21  ;;  %2297 = vmatpush3.bf16.msra.mxu0 %v2471_v8 }
 0x4ee   : > { %2298 = vmatprep.subr.bf16.mxu0 %v2603_v21 }
 0x4f1   : > { %2299 = vmatpush3.bf16.msra.mxu0 %v2472_v9 }
 0x4f2   : > { %2310 = vmatprep.subr.bf16.mxu0 %v2603_v21 }
 0x4f4   : > { %2301 = vmatmul.mubr.msk.bf16.vlgmr.msra.gmra.mrb[4].mxu0 %vm924_vm5, %v2857_v25 }
 0x4f5   : > { %2312 = vmatprep.mubr.msk.bf16.mxu0 %vm2604_vm3, %v2603_v21  ;;  %2311 = vmatpush3.bf16.msra.mxu0 %v1384_v56 }
 0x4f6   : > { %2324 = vmatprep.subr.bf16.mxu0 %v2603_v21 }
 0x5bf   : > { %v1185_v10 = vpop.f32.mrb[0].mxu0 }
 0x5c0   : > { %v1186_v11 = vadd.f32 %v1185_v10, %v2875_v38  ;;  %v2288_v12 = vpop.f32.mrb[1].mxu0 }
 0x5c1   : > { %v1188_v13 = vpop.f32.mrb[2].mxu0 }
 0x5c2   : > { %v2289_v14 = vpop.f32.mrb[3].mxu0  ;;  %v1191_v15 = vsel %vm1017_vm7, %v1186_v11, -inf }
 0x5c3   : > { %1192 = vmax.xlane.f32.xlu1 %v1191_v15 }
 0x5c7   : > { %v1316_v23 = vpop.f32.mrb[4].mxu0 }
 0x5c8   : > { %v2302_v24 = vpop.f32.mrb[5].mxu0  ;;  %v1317_v36 = vadd.f32 %v2082_v32, %v1316_v23  ;;  %v2475_v32 = vld [vmem:[%s3099_s3] sm:$0xff]  }
 0x5c9   : > { %v1319_v26 = vpop.f32.mrb[6].mxu0 }
 0x5ca   : > { %v2303_v27 = vpop.f32.mrb[7].mxu0  ;;  %v1322_v37 = vpack.c.bf16 %v1317_v36, %v1317_v36  ;;  %v1564_v26 = vld [vmem:[#allocation3 + $0x18] sm:$0xff] }
 0x650   : > { %v1193_v16 = vpop.xlane.xlu1 %1192 }
 0x651   : > { %v1194_v17 = vsub.f32 %v1186_v11, %v1193_v16 }
 0x653   : > { %v1195_v18 = vmul.f32 1.442695, %v1194_v17 }
 0x655   : > { %2491 = vpow2.f32 %v1195_v18 }
 0x65f   : > { %v2492_v19 = vpop.eup %2491 }
 0x660   : > { %v1197_v20 = vsel %vm1017_vm7, %v2492_v19, 0.0 }
 0x661   : > { %1198 = vadd.xlane.f32.xlu1 %v1197_v20 }
 0x6ee   : > { %v1199_v28 = vpop.xlane.xlu1 %1198 }
 0x6ef   : > { %2493 = vrcp.f32 %v1199_v28 }
 0x6f9   : > { %v2494_v29 = vpop.eup %2493 }
 0x6fa   : > { %v1201_v31 = vmul.f32 %v2494_v29, %v2492_v19 }
 0x6fc   : > { %v1202_v33 = vpack.c.bf16 %v1201_v31, %v1201_v31 }
 0x6fe   : > { %2293 = vmatmul.mubr.msk.bf16.vlgmr.msra.gmra.mrb[16].mxu1 %vm1017_vm7, %v1202_v33  ;;  %v2476_v33 = vld [vmem:[%s3099_s3 + $0x8] sm:$0xff]  }
 0x6ff   : > { %2305 = vmatpush3.bf16.xpose.msra.mxu1 %v1329_v35  ;;  %2306 = vmatprep.mubr.msk.bf16.mxu1 %vm2604_vm3, %v2603_v21  ;;  %v2477_v35 = vld [vmem:[%s3101_s5] sm:$0xff]  }
 0x700   : > { %2316 = vmatprep.subr.bf16.mxu1 %v2603_v21 }
 0x706   : > { %2307 = vmatmul.mubr.msk.bf16.vlgmr.msra.gmra.mrb[20].mxu1 %vm970_vm4, %v1322_v37 }
 0x707   : > { %2320 = vmatprep.mubr.msk.bf16.mxu1 %vm2604_vm3, %v2603_v21  ;;  %2317 = vmatpush3.bf16.msra.mxu1 %v2473_v39 }
 0x708   : > { %2318 = vmatprep.subr.bf16.mxu1 %v2603_v21 }
 0x70b   : > { %2319 = vmatpush3.bf16.msra.mxu1 %v2474_v40 }
 0x70c   : > { %2330 = vmatprep.subr.bf16.mxu1 %v2603_v21 }
 0x70e   : > { %2321 = vmatmul.mubr.msk.bf16.vlgmr.msra.gmra.mrb[24].mxu1 %vm924_vm5, %v2857_v25 }
 0x70f   : > { %2332 = vmatprep.mubr.msk.bf16.mxu1 %vm2604_vm3, %v2603_v21  ;;  %2331 = vmatpush3.bf16.msra.mxu1 %v1564_v26 }
 0x710   : > { %2344 = vmatprep.subr.bf16.mxu1 %v2603_v21 }
 0x7d1   : > { %v1242_v41 = vpop.f32.mrb[16].mxu1 }
 0x7d2   : > { %v2294_v42 = vpop.f32.mrb[17].mxu1  ;;  %v2122_v17 = vpack.c.bf16 %v1242_v41, %v1242_v41 }
 0x7d3   : > { %v1245_v43 = vpop.f32.mrb[18].mxu1 }
 0x7d4   : > { %v2295_v44 = vpop.f32.mrb[19].mxu1 }
 0x7d5   : > { %v2478_v44 = vld [vmem:[%s3101_s5 + $0x8] sm:$0xff]  }
 0x7d9   : > { %v1365_v45 = vpop.f32.mrb[20].mxu1 }
 0x7da   : > { %v1366_v46 = vadd.f32 %v1365_v45, %v2875_v38  ;;  %v2308_v47 = vpop.f32.mrb[21].mxu1  ;;  %v2479_v45 = vld [vmem:[%s3103_s7] sm:$0xff]  }
 0x7db   : > { %v1368_v48 = vpop.f32.mrb[22].mxu1  ;;  %v2481_v47 = vld [vmem:[%s3103_s7 + $0x10] sm:$0xff]  }
 0x7dc   : > { %v2309_v49 = vpop.f32.mrb[23].mxu1  ;;  %v1371_v50 = vsel %vm1017_vm7, %v1366_v46, -inf  ;;  %v1624_v48 = vsub.s32 0, %v2871_v34 }
 0x7dd   : > { %1372 = vmax.xlane.f32.xlu0 %v1371_v50  ;;  %v892_v50 = vunpack.c.l.bf16 %v2857_v25  ;;  %v2483_v25 = vld [vmem:[%s3103_s7 + $0x20] sm:$0xff]  }
 0x7de   : > { %v1625_v49 = vrot.slane %v2730_v0, %v1624_v48 }
 0x7e1   : > { %v1496_v57 = vpop.f32.mrb[24].mxu1 }
 0x7e2   : > { %v2322_v58 = vpop.f32.mrb[25].mxu1  ;;  %v1497_v5 = vadd.f32 %v2094_v2, %v1496_v57 }
 0x7e3   : > { %v1499_v59 = vpop.f32.mrb[26].mxu1  ;;  %v2482_v58 = vld [vmem:[%s3103_s7 + $0x18] sm:$0xff]  }
 0x7e4   : > { %v2323_v60 = vpop.f32.mrb[27].mxu1  ;;  %v1502_v6 = vpack.c.bf16 %v1497_v5, %v1497_v5  ;;  %v2484_v59 = vld [vmem:[%s3103_s7 + $0x28] sm:$0xff]  }
 0x7e5   : > { %v2485_v60 = vld [vmem:[%s3103_s7 + $0x30] sm:$0xff]  }
 0x86a   : > { %v1373_v51 = vpop.xlane.xlu0 %1372 }
 0x86b   : > { %v1374_v52 = vsub.f32 %v1366_v46, %v1373_v51  ;;  %v2480_v46 = vld [vmem:[%s3103_s7 + $0x8] sm:$0xff]  }
 0x86d   : > { %v1375_v53 = vmul.f32 1.442695, %v1374_v52 }
 0x86f   : > { %2495 = vpow2.f32 %v1375_v53 }
 0x879   : > { %v2496_v54 = vpop.eup %2495 }
 0x87a   : > { %v1377_v55 = vsel %vm1017_vm7, %v2496_v54, 0.0 }
 0x87b   : > { %1378 = vadd.xlane.f32.xlu1 %v1377_v55 }
 0x908   : > { %v1379_v61 = vpop.xlane.xlu1 %1378 }
 0x909   : > { %2497 = vrcp.f32 %v1379_v61  ;;  %v2486_v61 = vld [vmem:[%s3103_s7 + $0x38] sm:$0xff]  }
 0x913   : > { %v2498_v62 = vpop.eup %2497 }
 0x914   : > { %v1381_v1 = vmul.f32 %v2498_v62, %v2496_v54  ;;  %v2104_v62 = vld [vmem:[%s3102_s6] ss:$0 sm:$0xff] }
 0x916   : > { %v1382_v3 = vpack.c.bf16 %v1381_v1, %v1381_v1 }
 0x918   : > { %2313 = vmatmul.mubr.msk.bf16.vlgmr.msra.gmra.mrb[8].mxu0 %vm1017_vm7, %v1382_v3 }
 0x919   : > { %2325 = vmatpush3.bf16.xpose.msra.mxu0 %v1509_v4  ;;  %2326 = vmatprep.mubr.msk.bf16.mxu0 %vm2604_vm3, %v2603_v21 }
 0x91a   : > { %2336 = vmatprep.subr.bf16.mxu0 %v2603_v21 }
 0x920   : > { %2327 = vmatmul.mubr.msk.bf16.vlgmr.msra.gmra.mrb[12].mxu0 %vm970_vm4, %v1502_v6 }
 0x921   : > { %2340 = vmatprep.mubr.msk.bf16.mxu0 %vm2604_vm3, %v2603_v21  ;;  %2337 = vmatpush3.bf16.msra.mxu0 %v2475_v32 }
 0x922   : > { %2338 = vmatprep.subr.bf16.mxu0 %v2603_v21 }
 0x925   : > { %2339 = vmatpush3.bf16.msra.mxu0 %v2476_v33 }
 0x926   : > { %2352 = vmatprep.subr.bf16.mxu0 %v2603_v21 }
 0x9eb   : > { %v1422_v7 = vpop.f32.mrb[8].mxu0 }
 0x9ec   : > { %v2314_v8 = vpop.f32.mrb[9].mxu0 }
 0x9ed   : > { %v1425_v9 = vpop.f32.mrb[10].mxu0 }
 0x9ee   : > { %v2315_v10 = vpop.f32.mrb[11].mxu0 }
 0x9ef   : > { %v1684_v10 = vsub.s32 2, %v2871_v34 }
 0x9f3   : > { %v1545_v11 = vpop.f32.mrb[12].mxu0 }
 0x9f4   : > { %v1546_v12 = vadd.f32 %v1545_v11, %v2875_v38  ;;  %v2328_v13 = vpop.f32.mrb[13].mxu0  ;;  %v2123_v38 = vpack.c.bf16 %v1422_v7, %v1422_v7  ;;  %v1685_v11 = vrot.slane %v2730_v0, %v1684_v10 }
 0x9f5   : > { %v1548_v14 = vpop.f32.mrb[14].mxu0  ;;  %v1783_v13 = vsub.s32 1, %v2871_v34 }
 0x9f6   : > { %v2329_v15 = vpop.f32.mrb[15].mxu0  ;;  %v1551_v16 = vsel %vm1017_vm7, %v1546_v12, -inf }
 0x9f7   : > { %1552 = vmax.xlane.f32.xlu0 %v1551_v16  ;;  %v1784_v16 = vrot.slane %v2730_v0, %v1783_v13 }
 0xa0d   : > { %1252 = vrot.lane.b32.xlu0 %v2122_v17, %s2605_s22  ;;  %v1876_v17 = vsub.s32 4, %v2871_v34  ;;  %s2608_s22 = smov [#allocation5]  }
 0xa84   : > { %v1553_v18 = vpop.xlane.xlu0 %1552 }
 0xa85   : > { %v1554_v19 = vsub.f32 %v1546_v12, %v1553_v18  ;;  %v1689_v12 = vsub.s32 3, %v2871_v34  ;;  %v1881_v18 = vsub.s32 5, %v2871_v34 }
 0xa87   : > { %v1555_v20 = vmul.f32 1.442695, %v1554_v19  ;;  %v1690_v15 = vrot.slane %v2730_v0, %v1689_v12 }
 0xa88   : > { %v1253_v22 = vpop.permute.xlu0 %1252 }
 0xa89   : > { %2499 = vpow2.f32 %v1555_v20  ;;  %1256 = vst.msk [vmem:[#allocation4] sm:$0xf] %vm1255_vm9, %v1253_v22 }
 0xa93   : > { %v2500_v23 = vpop.eup %2499 }
 0xa94   : > { %v1557_v24 = vsel %vm1017_vm7, %v2500_v23, 0.0 }
 0xa95   : > { %1558 = vadd.xlane.f32.xlu1 %v1557_v24 }
 0xaa6   : > { %1432 = vrot.lane.b32.xlu1 %v2123_v38, %s2606_s25  ;;  %s2509_s25 = sshll.u32 %s2608_s22, 4  ;;  %s2510_s25 = int_to_ptr.vmem [resolvable:$false] %s2509_s25 }
 0xaa7   : > { %s2511_s26 = scalar_lea.vmem %s2510_s25, 256  ;;  %p2512_p4 = scmp.lt.s32.totalorder %s3040_s9, %s2510_s25 }
 0xb22   : > { %v1559_v27 = vpop.xlane.xlu1 %1558 }
 0xb23   : > { %2501 = vrcp.f32 %v1559_v27 }
 0xb26   : > { %v1433_v28 = vpop.permute.xlu1 %1432 }
 0xb27   : > { %1436 = vst.msk [vmem:[#allocation4] sm:$0xf] %vm1435_vm10, %v1433_v28  ;;  %v1882_v28 = vrot.slane %v2730_v0, %v1881_v18 }
 0xb2d   : > { %v2502_v29 = vpop.eup %2501 }
 0xb2e   : > { %v1561_v30 = vmul.f32 %v2502_v29, %v2500_v23  ;;  %v1877_v23 = vrot.slane %v2730_v0, %v1876_v17 }
 0xb30   : > { %v1562_v31 = vpack.c.bf16 %v1561_v30, %v1561_v30 }
 0xb32   : > { %2333 = vmatmul.mubr.msk.bf16.vlgmr.msra.gmra.mrb[28].mxu1 %vm1017_vm7, %v1562_v31 }
 0xb33   : > { %2348 = vmatprep.mubr.msk.bf16.mxu1 %vm2604_vm3, %v2603_v21  ;;  %2345 = vmatpush3.bf16.msra.mxu1 %v2477_v35 }
 0xb34   : > { %2346 = vmatprep.subr.bf16.mxu1 %v2603_v21 }
 0xb37   : > { %2347 = vmatpush3.bf16.msra.mxu1 %v2478_v44 }
 0xc05   : > { %v1602_v36 = vpop.f32.mrb[28].mxu1 }
 0xc06   : > { %v2124_v37 = vpack.c.bf16 %v1602_v36, %v1602_v36  ;;  %v2334_v39 = vpop.f32.mrb[29].mxu1 }
 0xc07   : > { %v1605_v40 = vpop.f32.mrb[30].mxu1 }
 0xc08   : > { %1612 = vrot.lane.b32.xlu1 %v2124_v37, %s2607_s21  ;;  %v2335_v41 = vpop.f32.mrb[31].mxu1  ;;  %s2505_s21 = scalar_lea.vmem %s3040_s9, 128 }
 0xc09   : > { %p2506_p0 = scmp.ne.s32.totalorder %s3040_s9, %s2505_s21  ;;  %p2513_p5 = scmp.lt.s32.totalorder %s2511_s26, %s2505_s21 }
 0xc0b   : > { %p2507_p1 = pnand %p2506_p0, %p2705_p3  ;;  %p2514_p6 = por %p2513_p5, %p2512_p4 }
 0xc0d   : > { %p2508_p2 = pneg %p2507_p1 }
 0xc0f   : > { %p2515_p7 = pnand %p2514_p6, %p2508_p2 }
 0xc7a   : > { %v1613_v42 = vpop.permute.xlu1 %1612 }
 0xc7b   : > { %1616 = vst.msk [vmem:[#allocation4] sm:$0xf] %vm1615_vm11, %v1613_v42 }
 0xc82   : > { %v1617_v43 = vld [vmem:[#allocation4] sm:$0xf] }
 0xc83   : > { %2341 = vmatmul.mubr.msk.bf16.vlgmr.msra.gmra.mrb[16].mxu0 %vm924_vm5, %v1617_v43 }
 0xc84   : > { %2368 = vmatprep.mubr.msk.bf16.mxu0 %vm2604_vm3, %v2603_v21  ;;  %2353 = vmatpush3.bf16.msra.mxu0 %v2479_v45 }
 0xc85   : > { %2354 = vmatprep.subr.bf16.mxu0 %v2603_v21 }
 0xc88   : > { %2355 = vmatpush3.bf16.msra.mxu0 %v2480_v46 }
 0xc89   : > { %2356 = vmatprep.subr.bf16.mxu0 %v2603_v21 }
 0xc8c   : > { %2357 = vmatpush3.bf16.msra.mxu0 %v2481_v47 }
 0xc8d   : > { %2358 = vmatprep.subr.bf16.mxu0 %v2603_v21 }
 0xc90   : > { %2359 = vmatpush3.bf16.msra.mxu0 %v2482_v58 }
 0xc91   : > { %2360 = vmatprep.subr.bf16.mxu0 %v2603_v21 }
 0xc94   : > { %2361 = vmatpush3.bf16.msra.mxu0 %v2483_v25 }
 0xc95   : > { %2362 = vmatprep.subr.bf16.mxu0 %v2603_v21 }
 0xc98   : > { %2363 = vmatpush3.bf16.msra.mxu0 %v2484_v59 }
 0xc99   : > { %2364 = vmatprep.subr.bf16.mxu0 %v2603_v21 }
 0xc9c   : > { %2365 = vmatpush3.bf16.msra.mxu0 %v2485_v60 }
 0xc9d   : > { %2366 = vmatprep.subr.bf16.mxu0 %v2603_v21 }
 0xca0   : > { %2367 = vmatpush3.bf16.msra.mxu0 %v2486_v61 }
 0xd56   : > { %v1675_v51 = vpop.f32.mrb[16].mxu0 }
 0xd57   : > { %v1676_v52 = vadd.f32 %v1675_v51, %v1625_v49  ;;  %v2342_v53 = vpop.f32.mrb[17].mxu0 }
 0xd58   : > { %v1678_v54 = vpop.f32.mrb[18].mxu0 }
 0xd59   : > { %v1681_v55 = vadd.f32 %v1676_v52, %v892_v50  ;;  %v2343_v56 = vpop.f32.mrb[19].mxu0 }
 0xd5b   : > { %v1692_v57 = vpack.c.bf16 %v1681_v55, %v1681_v55  ;;  %v1686_v14 = vmul.f32 %v1685_v11, %v1681_v55 }
 0xd5d   : > { %2349 = vmatmul.mubr.msk.bf16.vlgmr.msra.gmra.mrb[32].mxu1 %vm924_vm5, %v1692_v57  ;;  %v1691_v20 = vadd.f32 %v1690_v15, %v1686_v14 }
 0xe30   : > { %v1753_v63 = vpop.f32.mrb[32].mxu1 }
 0xe31   : > { %v1754_v1 = vadd.f32 %v2104_v62, %v1753_v63  ;;  %v2350_v2 = vpop.f32.mrb[33].mxu1 }
 0xe32   : > { %v1756_v3 = vpop.f32.mrb[34].mxu1 }
 0xe33   : > { %v1760_v4 = vmul.f32 0.70710677, %v1754_v1  ;;  %v2351_v5 = vpop.f32.mrb[35].mxu1  ;;  %v1759_v7 = vmul.f32 0.5, %v1754_v1 }
 0xe35   : > { %2503 = verf.f32 %v1760_v4 }
 0xe3f   : > { %v2504_v6 = vpop.eup %2503 }
 0xe40   : > { %v1762_v21 = vadd.f32 1.0, %v2504_v6 }
 0xe42   : > { %v1763_v8 = vmul.f32 %v1762_v21, %v1759_v7 }
 0xe44   : > { %v1764_v9 = vpack.c.bf16 %v1763_v8, %v1763_v8 }
 0xe46   : > { %2369 = vmatmul.mubr.bf16.vlgmr.msra.gmra.mrb[20].mxu0 %v1764_v9 }
 0xf19   : > { %v1867_v19 = vpop.f32.mrb[20].mxu0 }
 0xf1a   : > { %v1868_v22 = vadd.f32 %v1867_v19, %v1784_v16  ;;  %v2370_v24 = vpop.f32.mrb[21].mxu0 }
 0xf1b   : > { %v1870_v38 = vpop.f32.mrb[22].mxu0 }
 0xf1c   : > { %v1873_v26 = vadd.f32 %v1868_v22, %v1691_v20  ;;  %v2371_v27 = vpop.f32.mrb[23].mxu0 }
 0xf1e   : > { %v1878_v29 = vmul.f32 %v1877_v23, %v1873_v26 }
 0xf20   : > { %v1883_v34 = vadd.f32 %v1882_v28, %v1878_v29 }
 0xf22   : > { %1884 = vst.msk [vmem:[%s312_s16] sm:$0xff] %vm924_vm5, %v1883_v34 }
 0xf23   : > { %2518 = shalt.err (!%p2515_p7)
}
 0xf24   : > { %s2519_s16 = scalar_lea.hbm %s3038_s20, 128  ;;  %s2523_s14 = scalar_lea.hbm %s3104_s8, 512 }
 0xf25   : > { %p2520_p9 = scmp.ne.s32.totalorder %s3038_s20, %s2519_s16  ;;  %p2524_p12 = scmp.lt.u32.totalorder %s3038_s20, %s3104_s8 }
 0xf26   : > { %p2525_p13 = scmp.lt.u32.totalorder %s2523_s14, %s2519_s16  ;;  %p2527_p1 = scmp.lt.u32.totalorder %s2519_s16, %s3038_s20 }
 0xf27   : > { %p2521_p10 = pnand %p2520_p9, %p2705_p3 }
 0xf28   : > { %p2526_p0 = por %p2525_p13, %p2524_p12 }
 0xf29   : > { %p2522_p11 = pneg %p2521_p10 }
 0xf2a   : > { %p2528_p2 = por %p2527_p1, %p2526_p0 }
 0xf2c   : > { %p2529_p4 = pnand %p2528_p2, %p2522_p11 }
 0xf2e   : > { %2532 = shalt.err (!%p2529_p4)
}
 0xf2f   : > { %2372 = dma.vmem_to_hbm [thread:$0]  (%p2705_p3), %s3040_s9, 128, %s3038_s20, %s1886_s30  }
 0xf30 PF: > { %p2378_p5 = scmp.ge.s32.totalorder %s2599_s12, 2  ;;  %s1913_s15 = sand.u32 1, %s2571_s27  }
 0xf31   : > { %s1914_s21 = scalar_lea.sflag [#allocation6], %s1913_s15 }
 0xf32   : > { %p2375_p6 = pnand %p2378_p5, %p2714_p8 }
 0xf34   : > { %2566 = dma.done.wait (!%p2375_p6), %s1914_s21, 128  }
 0xf35   : > { %2568 = vsyncadd (!%p2375_p6), %s1914_s21, 4294967168  ;;  %s21_s12 = sadd.s32 1, %s2599_s12   ;;  %s3113_s9 = sld [smem:[#allocation8_spill]] }
 0xf36   : > { %p18_p7 = scmp.ge.s32.totalorder %s21_s12, 6   ;;  %s3114_s18 = sld [smem:[#allocation9_spill]] }
 0xf37   : > { %s3115_s11 = sld [smem:[#allocation10_spill]]  ;;  %s3116_s27 = smov %s2575_s28 }
 0xf38   : > { %s3117_s28 = smov %s2579_s29  ;;  %s3118_s29 = smov %s2723_s23 }
 0xf39   : > { %s3119_s30 = smov %s2591_s10  ;;  %20 = sbr.rel (!%p18_p7) target bundleno = 5 (0x5), region = 126 }
 0xf3c   : > { %s3120_s10 = smov %s3114_s18 }
 0xf40   :  { %1919 = vsyncpa [#allocation6], 1 }
 0xf41   :  { %1921 = vsyncpa [#allocation6 + $0x1], 1 }

// kernel: tpu_custom_call.1
= control target key start
LH: loop header
LB: loop body
LE: loop exit
PB: predicated region body
PF: predicated region fallthrough
CT: control target
= control target key end

     0   :  { %13 = vsyncpa [#allocation6], 0  ;;  %s3096_s0 = inlined_call_operand.vmem [shape: bf16[2,16,32], index: 0, kind: input, shape index: {}]   ;;  %s3097_s1 = inlined_call_operand.vmem [shape: bf16[3,4,32,8], index: 1, kind: input, shape index: {}]   ;;  %s3098_s2 = inlined_call_operand.vmem [shape: f32[3,4,1,8], index: 2, kind: input, shape index: {}]   ;;  %s3099_s3 = inlined_call_operand.vmem [shape: bf16[32,32], index: 3, kind: input, shape index: {}]   ;;  %s3100_s4 = inlined_call_operand.vmem [shape: f32[6,32], index: 4, kind: input, shape index: {}]   ;;  %s3101_s5 = inlined_call_operand.vmem [shape: bf16[32,128], index: 5, kind: input, shape index: {}]   ;;  %s3102_s6 = inlined_call_operand.vmem [shape: f32[1,128], index: 6, kind: input, shape index: {}]   ;;  %s3103_s7 = inlined_call_operand.vmem [shape: bf16[128,32], index: 7, kind: input, shape index: {}]   ;;  %s3104_s8 = inlined_call_operand.hbm [shape: f32[2,16,32], index: 8, kind: output, shape index: {}]  }
   0x1   :  { %15 = vsyncpa [#allocation6 + $0x1], 0  ;;  %s2654_s27 = smov 0   ;;  %s2656_s28 = smov 0  }
   0x2   :  { %s2658_s29 = smov 0   ;;  %s2660_s30 = smov 0  }
   0x3   :  { %s2662_s9 = smov 0   ;;  %s2664_s10 = smov 0  }
   0x4   :  { %s2666_s11 = smov 0   ;;  %s2668_s12 = smov 0  }
   0x5 LB: > { %3108 = sst [smem:[#allocation8_spill]] %s2595_s11  ;;  %s1975_s13 = sadd.s32 4294967295, %s2599_s12   ;;  %s2599_s12 = sphi %s2668_s12, %s21_s12   ;;  %s2595_s11 = sphi %s2666_s11, %s3115_s11   ;;  %s2591_s10 = sphi %s2664_s10, %s3120_s10   ;;  %s2587_s9 = sphi %s2662_s9, %s3113_s9   ;;  %s2583_s30 = sphi %s2660_s30, %s3119_s30   ;;  %s2579_s29 = sphi %s2658_s29, %s3118_s29   ;;  %s2575_s28 = sphi %s2656_s28, %s3117_s28   ;;  %s2571_s27 = sphi %s2654_s27, %s3116_s27  }
   0x6   : > { %s1976_s14 = sadd.s32 4294967294, %s2599_s12   ;;  %s30_s15 = sadd.s32 1, %s2591_s10 }
   0x7   : > { %p31_p0 = scmp.ge.s32.totalorder %s30_s15, 2  ;;  %s33_s16 = sadd.s32 1, %s2595_s11 }
   0x8   : > { %p225_p1 = scmp.ne.s32.totalorder %s2579_s29, %s2575_s28  ;;  %p226_p2 = scmp.eq.s32.totalorder %s1975_s13, 3 }
   0x9   : > { %s3122_s15 = smov (%p31_p0, %s30_s15), 0  ;;  %s3124_s16 = smov (!%p31_p0, %s33_s16), %s2595_s11 }
   0xa   : > { %3109 = sst [smem:[#allocation9_spill]] %s3122_s15  ;;  %s211_s17 = ssub.s32 %s2591_s10, %s3122_s15 }
   0xb   : > { %p2705_p3 = por %p226_p2, %p225_p1  ;;  %p35_p4 = scmp.ge.s32.totalorder %s3124_s16, 2 }
   0xc   : > { %p231_p5 = scmp.ne.s32.totalorder %s2575_s28, %s2571_s27  ;;  %p232_p6 = scmp.eq.s32.totalorder %s1976_s14, 3 }
   0xd   : > { %p1979_p7 = scmp.ge.s32.totalorder %s2599_s12, 1  ;;  %s3126_s16 = smov (%p35_p4, %s3124_s16), 0 }
   0xe   : > { %3111 = sst [smem:[#allocation10_spill]] %s3126_s16  ;;  %p2714_p8 = por %p232_p6, %p231_p5 }
   0xf   : > { %p279_p9 = scmp.lt.s32.totalorder %s2599_s12, 5  ;;  %s210_s20 = ssub.s32 %s2595_s11, %s3126_s16 }
  0x10   : > { %s215_s21 = sadd.s32 1, %s2579_s29  ;;  %s212_s22 = sor.u32 %s211_s17, %s210_s20 }
  0x11   : > { %p280_p10 = pnand %p1979_p7, %p279_p9  ;;  %p213_p11 = scmp.eq.s32.totalorder %s212_s22, 0 }
  0x12   : > { %s310_s24 = sand.u32 (!%p280_p10), 1, %s2575_s28   ;;  %p313_p12 = scmp.lt.s32.totalorder (!%p280_p10), %s2587_s9, 1  ;;  %v2730_v0 = vld [vmem:[%s3100_s4] sm:$0x3f] (!%p280_p10) }
  0x13   : > { %s2723_s23 = scalar_select %p213_p11, %s2579_s29, %s215_s21  }
  0x14   : > { %283 = sbr.rel (%p280_p10) target bundleno = 3888 (0xf30), region = 52  ;;  %s2734_s13 = sshll.u32 (!%p280_p10), %s310_s24, 3 }
  0x15   : > { %s312_s16 = scalar_lea.vmem (!%p280_p10), [#allocation5], %s2734_s13  ;;  %p1983_p13 = scmp.ne.s32.totalorder (!%p280_p10), %s2583_s30, 0 }
  0x1b   : > { %s314_s14 = scalar_select %p313_p12, %s2587_s9, 1 }
  0x1c   : > { %323 = sbr.rel (%p1983_p13) target bundleno = 281 (0x119), region = 56  ;;  %v2450_v1 = vld [vmem:[%s3097_s1 + $0x40] sm:$0xff] (!%p1983_p13)   ;;  %v2601_v2 = vmov (!%p1983_p13), 0.0   ;;  %v2452_v4 = vld [vmem:[%s3097_s1 + $0x48] sm:$0xff] (!%p1983_p13)   ;;  %vm2602_vm0 = vmmov (!%p1983_p13), 0   ;;  %vm356_vm1 = vcmask (!%p1983_p13), 261120  }
  0x1d   : > { %s2121_s17 = sshll.u32 %s314_s14, 3  ;;  %2192 = vmatprep.subr.bf16.mxu0 (!%p1983_p13), %v2601_v2  ;;  %2200 = vmatprep.subr.bf16.mxu1 (!%p1983_p13), %v2601_v2  ;;  %v2451_v3 = vld [vmem:[%s3097_s1 + $0x80] sm:$0xff] (!%p1983_p13)   ;;  %v2453_v5 = vld [vmem:[%s3097_s1 + $0x88] sm:$0xff] (!%p1983_p13)   ;;  %v2455_v7 = vld [vmem:[%s3097_s1 + $0x50] sm:$0xff] (!%p1983_p13)   ;;  %vm402_vm2 = vcmask (!%p1983_p13), 64512  }
  0x1e   : > { %s2740_s22 = scalar_lea.vmem %s3096_s0, %s2121_s17  ;;  %2193 = vmatpush3.bf16.msra.mxu0 (!%p1983_p13), %v2450_v1  ;;  %2196 = vmatprep.mubr.msk.bf16.mxu0 (!%p1983_p13), %vm2602_vm0, %v2601_v2  ;;  %v2456_v8 = vld [vmem:[%s3097_s1 + $0x90] sm:$0xff] (!%p1983_p13)   ;;  %v2457_v9 = vld [vmem:[%s3097_s1 + $0x58] sm:$0xff] (!%p1983_p13)   ;;  %v2459_v11 = vld [vmem:[%s3097_s1 + $0x60] sm:$0xff] (!%p1983_p13)  }
  0x1f   : > { %2201 = vmatpush3.bf16.msra.mxu1 (!%p1983_p13), %v2451_v3  ;;  %2194 = vmatprep.subr.bf16.mxu0 (!%p1983_p13), %v2601_v2  ;;  %v2454_v6 = vld [vmem:[%s2740_s22] sm:$0xff] (!%p1983_p13)   ;;  %v2458_v10 = vld [vmem:[%s3097_s1 + $0x98] sm:$0xff] (!%p1983_p13)   ;;  %v2461_v13 = vld [vmem:[%s3097_s1 + $0x68] sm:$0xff] (!%p1983_p13)  }
  0x20   : > { %2202 = vmatprep.subr.bf16.mxu1 (!%p1983_p13), %v2601_v2  ;;  %2204 = vmatprep.mubr.msk.bf16.mxu1 (!%p1983_p13), %vm2602_vm0, %v2601_v2  ;;  %v2460_v12 = vld [vmem:[%s3097_s1 + $0xa0] sm:$0xff] (!%p1983_p13)   ;;  %v2462_v14 = vld [vmem:[%s3097_s1 + $0xa8] sm:$0xff] (!%p1983_p13)   ;;  %v2463_v15 = vld [vmem:[%s3097_s1 + $0x70] sm:$0xff] (!%p1983_p13)  }
  0x21   : > { %v2464_v16 = vld [vmem:[%s3097_s1 + $0xb0] sm:$0xff] (!%p1983_p13)   ;;  %v2465_v17 = vld [vmem:[%s3097_s1 + $0x78] sm:$0xff] (!%p1983_p13)   ;;  %v1989_v19 = vld [vmem:[%s3098_s2 + $0x4] ss:$0 sm:$0xff] (!%p1983_p13) }
  0x22   : > { %2195 = vmatpush3.bf16.msra.mxu0 (!%p1983_p13), %v2452_v4  ;;  %v2466_v18 = vld [vmem:[%s3097_s1 + $0xb8] sm:$0xff] (!%p1983_p13)   ;;  %v1999_v21 = vld [vmem:[%s3098_s2 + $0x8] ss:$0 sm:$0xff] (!%p1983_p13)  ;;  %v2008_v35 = vld [vmem:[%s3098_s2 + $0x5] ss:$0 sm:$0xff] (!%p1983_p13) }
  0x23   : > { %2203 = vmatpush3.bf16.msra.mxu1 %v2453_v5  ;;  %2208 = vmatprep.subr.bf16.mxu0 %v2601_v2  ;;  %v2017_v37 = vld [vmem:[%s3098_s2 + $0x9] ss:$0 sm:$0xff]  ;;  %v2026_v51 = vld [vmem:[%s3098_s2 + $0x6] ss:$0 sm:$0xff]  ;;  %v2035_v53 = vld [vmem:[%s3098_s2 + $0xa] ss:$0 sm:$0xff] }
  0x24   : > { %2216 = vmatprep.subr.bf16.mxu1 %v2601_v2  ;;  %v2044_v4 = vld [vmem:[%s3098_s2 + $0x7] ss:$0 sm:$0xff] }
  0x25   : > { %2197 = vmatmul.mubr.msk.bf16.vlgmr.msra.gmra.mrb[0].mxu0 %vm356_vm1, %v2454_v6 }
  0x26   : > { %2205 = vmatmul.mubr.msk.bf16.vlgmr.msra.gmra.mrb[0].mxu1 %vm356_vm1, %v2454_v6  ;;  %2209 = vmatpush3.bf16.msra.mxu0 %v2455_v7 }
  0x27   : > { %2217 = vmatpush3.bf16.msra.mxu1 %v2456_v8  ;;  %2210 = vmatprep.subr.bf16.mxu0 %v2601_v2 }
  0x28   : > { %2218 = vmatprep.subr.bf16.mxu1 %v2601_v2  ;;  %2212 = vmatprep.mubr.msk.bf16.mxu0 %vm2602_vm0, %v2601_v2 }
  0x29   : > { %2220 = vmatprep.mubr.msk.bf16.mxu1 %vm2602_vm0, %v2601_v2 }
  0x2a   : > { %2211 = vmatpush3.bf16.msra.mxu0 %v2457_v9 }
  0x2b   : > { %2219 = vmatpush3.bf16.msra.mxu1 %v2458_v10  ;;  %2224 = vmatprep.subr.bf16.mxu0 %v2601_v2 }
  0x2c   : > { %2232 = vmatprep.subr.bf16.mxu1 %v2601_v2 }
  0x2d   : > { %2213 = vmatmul.mubr.msk.bf16.vlgmr.msra.gmra.mrb[4].mxu0 %vm356_vm1, %v2454_v6 }
  0x2e   : > { %2221 = vmatmul.mubr.msk.bf16.vlgmr.msra.gmra.mrb[4].mxu1 %vm356_vm1, %v2454_v6  ;;  %2225 = vmatpush3.bf16.msra.mxu0 %v2459_v11 }
  0x2f   : > { %2233 = vmatpush3.bf16.msra.mxu1 %v2460_v12  ;;  %2226 = vmatprep.subr.bf16.mxu0 %v2601_v2 }
  0x30   : > { %2234 = vmatprep.subr.bf16.mxu1 %v2601_v2  ;;  %2228 = vmatprep.mubr.msk.bf16.mxu0 %vm2602_vm0, %v2601_v2 }
  0x31   : > { %2236 = vmatprep.mubr.msk.bf16.mxu1 %vm2602_vm0, %v2601_v2 }
  0x32   : > { %2227 = vmatpush3.bf16.msra.mxu0 %v2461_v13 }
  0x33   : > { %2235 = vmatpush3.bf16.msra.mxu1 %v2462_v14  ;;  %2240 = vmatprep.subr.bf16.mxu0 %v2601_v2 }
  0x34   : > { %2248 = vmatprep.subr.bf16.mxu1 %v2601_v2 }
  0x35   : > { %2229 = vmatmul.mubr.msk.bf16.vlgmr.msra.gmra.mrb[8].mxu0 %vm356_vm1, %v2454_v6 }
  0x36   : > { %2237 = vmatmul.mubr.msk.bf16.vlgmr.msra.gmra.mrb[8].mxu1 %vm356_vm1, %v2454_v6  ;;  %2241 = vmatpush3.bf16.msra.mxu0 %v2463_v15 }
  0x37   : > { %2249 = vmatpush3.bf16.msra.mxu1 %v2464_v16  ;;  %2242 = vmatprep.subr.bf16.mxu0 %v2601_v2 }
  0x38   : > { %2250 = vmatprep.subr.bf16.mxu1 %v2601_v2  ;;  %2244 = vmatprep.mubr.msk.bf16.mxu0 %vm2602_vm0, %v2601_v2 }
  0x39   : > { %2252 = vmatprep.mubr.msk.bf16.mxu1 %vm2602_vm0, %v2601_v2 }
  0x3a   : > { %2243 = vmatpush3.bf16.msra.mxu0 %v2465_v17 }
  0x3b   : > { %2251 = vmatpush3.bf16.msra.mxu1 %v2466_v18 }
  0x3d   : > { %2245 = vmatmul.mubr.msk.bf16.vlgmr.msra.gmra.mrb[12].mxu0 %vm356_vm1, %v2454_v6 }
  0x3e   : > { %2253 = vmatmul.mubr.msk.bf16.vlgmr.msra.gmra.mrb[12].mxu1 %vm356_vm1, %v2454_v6  ;;  %v2053_v6 = vld [vmem:[%s3098_s2 + $0xb] ss:$0 sm:$0xff] }
  0xf8   : > { %v394_v20 = vpop.f32.mrb[0].mxu0 }
  0xf9   : > { %v463_v22 = vpop.f32.mrb[0].mxu1  ;;  %v2198_v23 = vpop.f32.mrb[1].mxu0  ;;  %v395_v26 = vadd.f32 %v1989_v19, %v394_v20 }
  0xfa   : > { %v2206_v24 = vpop.f32.mrb[1].mxu1  ;;  %v397_v25 = vpop.f32.mrb[2].mxu0  ;;  %v464_v30 = vadd.f32 %v1999_v21, %v463_v22 }
  0xfb   : > { %v398_v27 = vadd.f32 %v1989_v19, %v397_v25  ;;  %v466_v28 = vpop.f32.mrb[2].mxu1  ;;  %v2199_v29 = vpop.f32.mrb[3].mxu0 }
  0xfc   : > { %v467_v31 = vadd.f32 %v1999_v21, %v466_v28  ;;  %v2207_v32 = vpop.f32.mrb[3].mxu1 }
  0xfd   : > { %v401_v33 = vpack.c.bf16 %v398_v27, %v395_v26 }
  0xfe   : > { %v470_v34 = vpack.c.bf16 %v467_v31, %v464_v30 }
  0xff   : > { %403 = vst.msk [vmem:[#allocation2] sm:$0xff] %vm402_vm2, %v401_v33 }
 0x100   : > { %471 = vst.msk [vmem:[#allocation3] sm:$0xff] %vm402_vm2, %v470_v34  ;;  %v531_v36 = vpop.f32.mrb[4].mxu0 }
 0x101   : > { %v600_v38 = vpop.f32.mrb[4].mxu1  ;;  %v2214_v39 = vpop.f32.mrb[5].mxu0  ;;  %v532_v42 = vadd.f32 %v2008_v35, %v531_v36 }
 0x102   : > { %v2222_v40 = vpop.f32.mrb[5].mxu1  ;;  %v534_v41 = vpop.f32.mrb[6].mxu0  ;;  %v601_v46 = vadd.f32 %v2017_v37, %v600_v38 }
 0x103   : > { %v535_v43 = vadd.f32 %v2008_v35, %v534_v41  ;;  %v603_v44 = vpop.f32.mrb[6].mxu1  ;;  %v2215_v45 = vpop.f32.mrb[7].mxu0 }
 0x104   : > { %v604_v47 = vadd.f32 %v2017_v37, %v603_v44  ;;  %v2223_v48 = vpop.f32.mrb[7].mxu1 }
 0x105   : > { %v538_v49 = vpack.c.bf16 %v535_v43, %v532_v42 }
 0x106   : > { %v607_v50 = vpack.c.bf16 %v604_v47, %v601_v46 }
 0x107   : > { %540 = vst.msk [vmem:[#allocation2 + $0x8] sm:$0xff] %vm402_vm2, %v538_v49 }
 0x108   : > { %609 = vst.msk [vmem:[#allocation3 + $0x8] sm:$0xff] %vm402_vm2, %v607_v50  ;;  %v669_v52 = vpop.f32.mrb[8].mxu0 }
 0x109   : > { %v738_v54 = vpop.f32.mrb[8].mxu1  ;;  %v2230_v55 = vpop.f32.mrb[9].mxu0  ;;  %v670_v58 = vadd.f32 %v2026_v51, %v669_v52 }
 0x10a   : > { %v2238_v56 = vpop.f32.mrb[9].mxu1  ;;  %v672_v57 = vpop.f32.mrb[10].mxu0  ;;  %v739_v62 = vadd.f32 %v2035_v53, %v738_v54 }
 0x10b   : > { %v673_v59 = vadd.f32 %v2026_v51, %v672_v57  ;;  %v741_v60 = vpop.f32.mrb[10].mxu1  ;;  %v2231_v61 = vpop.f32.mrb[11].mxu0 }
 0x10c   : > { %v742_v63 = vadd.f32 %v2035_v53, %v741_v60  ;;  %v2239_v1 = vpop.f32.mrb[11].mxu1 }
 0x10d   : > { %v676_v2 = vpack.c.bf16 %v673_v59, %v670_v58 }
 0x10e   : > { %v745_v3 = vpack.c.bf16 %v742_v63, %v739_v62 }
 0x10f   : > { %678 = vst.msk [vmem:[#allocation2 + $0x10] sm:$0xff] %vm402_vm2, %v676_v2 }
 0x110   : > { %747 = vst.msk [vmem:[#allocation3 + $0x10] sm:$0xff] %vm402_vm2, %v745_v3  ;;  %v807_v5 = vpop.f32.mrb[12].mxu0 }
 0x111   : > { %v876_v7 = vpop.f32.mrb[12].mxu1  ;;  %v2246_v8 = vpop.f32.mrb[13].mxu0  ;;  %v808_v11 = vadd.f32 %v2044_v4, %v807_v5 }
 0x112   : > { %v2254_v9 = vpop.f32.mrb[13].mxu1  ;;  %v810_v10 = vpop.f32.mrb[14].mxu0  ;;  %v877_v15 = vadd.f32 %v2053_v6, %v876_v7 }
 0x113   : > { %v811_v12 = vadd.f32 %v2044_v4, %v810_v10  ;;  %v879_v13 = vpop.f32.mrb[14].mxu1  ;;  %v2247_v14 = vpop.f32.mrb[15].mxu0 }
 0x114   : > { %v880_v16 = vadd.f32 %v2053_v6, %v879_v13  ;;  %v2255_v17 = vpop.f32.mrb[15].mxu1 }
 0x115   : > { %v814_v18 = vpack.c.bf16 %v811_v12, %v808_v11 }
 0x116   : > { %v883_v19 = vpack.c.bf16 %v880_v16, %v877_v15 }
 0x117   : > { %816 = vst.msk [vmem:[#allocation2 + $0x18] sm:$0xff] %vm402_vm2, %v814_v18 }
 0x118   : > { %885 = vst.msk [vmem:[#allocation3 + $0x18] sm:$0xff] %vm402_vm2, %v883_v19 }
 0x119 PF: > { %v2467_v20 = vld [vmem:[%s3097_s1] sm:$0xff]   ;;  %v2603_v21 = vmov 0.0   ;;  %v2468_v22 = vld [vmem:[%s3097_s1 + $0x8] sm:$0xff]   ;;  %vm2604_vm3 = vmmov 0   ;;  %s2057_s14 = sshll.u32 %s2583_s30, 3  ;;  %vm970_vm4 = vcmask 64512   ;;  %v893_v33 = vlaneseq }
 0x11a   : > { %2256 = vmatprep.subr.bf16.mxu1 %v2603_v21  ;;  %2284 = vmatprep.subr.bf16.mxu0 %v2603_v21  ;;  %v969_v23 = vld [vmem:[#allocation2] sm:$0xff]  ;;  %s887_s17 = sshra.s32 %s2057_s14, 3  ;;  %vm924_vm5 = vcmask 261120   ;;  %v895_v35 = vstv %s2057_s14  ;;  %vm1017_vm7 = vcmask 130048   ;;  %v2469_v54 = vld [vmem:[%s3097_s1 + $0x10] sm:$0xff]   ;;  %v2470_v56 = vld [vmem:[%s3097_s1 + $0x18] sm:$0xff]  }
 0x11b   : > { %2257 = vmatpush3.bf16.msra.mxu1 %v2467_v20  ;;  %2260 = vmatprep.mubr.msk.bf16.mxu1 %vm2604_vm3, %v2603_v21  ;;  %s2058_s11 = sshll.u32 %s887_s17, 2  ;;  %v975_v24 = vsel %vm970_vm4, %v969_v23, 0  ;;  %v2059_v26 = vld [vmem:[%s3098_s2] ss:$0 sm:$0xff]  ;;  %v2871_v34 = vshrl.u32 %v893_v33, 7  ;;  %v898_v37 = vand.u32 127, %v893_v33 }
 0x11c   : > { %2258 = vmatprep.subr.bf16.mxu1 %v2603_v21  ;;  %2286 = vmatprep.mubr.msk.bf16.mxu0 %vm2604_vm3, %v2603_v21  ;;  %s890_s15 = scalar_lea.vmem %s2740_s22, %s2058_s11  ;;  %v1030_v50 = vld [vmem:[#allocation3] sm:$0xff]  ;;  %v1144_v57 = vld [vmem:[#allocation2 + $0x8] sm:$0xff]  ;;  %vm1075_vm8 = vcmask 60416   ;;  %s2605_s22 = smov 8   ;;  %vm1255_vm9 = vcmask 126016   ;;  %vm1435_vm10 = vcmask 191616  }
 0x11d   : > { %v2857_v25 = vld [vmem:[%s890_s15] sm:$0xf]  ;;  %v896_v36 = vadd.s32 %v895_v35, %v2871_v34  ;;  %v1149_v58 = vsel %vm970_vm4, %v1144_v57, 0  ;;  %v2472_v9 = vld [vmem:[%s3097_s1 + $0x28] sm:$0xff]   ;;  %s2606_s25 = smov 16   ;;  %s2607_s21 = smov 24  }
 0x11e   : > { %2285 = vmatpush3.bf16.xpose.msra.mxu0 %v1149_v58  ;;  %v2070_v1 = vld [vmem:[%s3098_s2 + $0x1] ss:$0 sm:$0xff]  ;;  %vm1615_vm11 = vcmask 257216   ;;  %s2117_s26 = sshll.u32 %s2587_s9, 1  ;;  %s1901_s9 = sshll.u32 %s312_s16, 4  ;;  %s3040_s9 = int_to_ptr.vmem [resolvable:$true] %s1901_s9 }
 0x11f   : > { %2259 = vmatpush3.bf16.msra.mxu1 %v2468_v22  ;;  %vm899_vm6 = vcmp.gt.s32.totalorder %v898_v37, %v896_v36  ;;  %2296 = vmatprep.subr.bf16.mxu0 %v2603_v21  ;;  %v2471_v8 = vld [vmem:[%s3097_s1 + $0x20] sm:$0xff]   ;;  %v1204_v22 = vld [vmem:[#allocation3 + $0x8] sm:$0xff]  ;;  %s1897_s14 = sadd.s32 %s2583_s30, %s2117_s26  ;;  %s1886_s30 = scalar_lea.sflag [#allocation6], %s310_s24 }
 0x120   : > { %2264 = vmatprep.subr.bf16.mxu1 %v2603_v21  ;;  %v2875_v38 = vsel %vm899_vm6, -1e+30, %v2603_v21  ;;  %s2118_s17 = sshll.u32 %s1897_s14, 7 }
 0x121   : > { %s3038_s20 = scalar_lea.hbm %s3104_s8, %s2118_s17 }
 0x122   : > { %2261 = vmatmul.mubr.msk.bf16.vlgmr.msra.gmra.mrb[0].mxu1 %vm924_vm5, %v2857_v25 }
 0x123   : > { %2266 = vmatprep.mubr.msk.bf16.mxu1 %vm2604_vm3, %v2603_v21 }
 0x128   : > { %2265 = vmatpush3.bf16.xpose.msra.mxu1 %v975_v24 }
 0x129   : > { %2270 = vmatprep.subr.bf16.mxu1 %v2603_v21 }
 0x1f5   : > { %v962_v27 = vpop.f32.mrb[0].mxu1 }
 0x1f6   : > { %v963_v28 = vadd.f32 %v2059_v26, %v962_v27  ;;  %v2262_v29 = vpop.f32.mrb[1].mxu1 }
 0x1f7   : > { %v965_v30 = vpop.f32.mrb[2].mxu1 }
 0x1f8   : > { %v968_v31 = vpack.c.bf16 %v963_v28, %v963_v28  ;;  %v2263_v32 = vpop.f32.mrb[3].mxu1  ;;  %v1324_v30 = vld [vmem:[#allocation2 + $0x10] sm:$0xff] }
 0x1f9   : > { %v2082_v32 = vld [vmem:[%s3098_s2 + $0x2] ss:$0 sm:$0xff]  ;;  %v1329_v35 = vsel %vm970_vm4, %v1324_v30, 0 }
 0x1fa   : > { %2267 = vmatmul.mubr.msk.bf16.vlgmr.msra.gmra.mrb[4].mxu1 %vm970_vm4, %v968_v31 }
 0x1fb   : > { %2272 = vmatprep.mubr.msk.bf16.mxu1 %vm2604_vm3, %v2603_v21  ;;  %2271 = vmatpush3.bf16.msra.mxu1 %v1030_v50 }
 0x1fc   : > { %2276 = vmatprep.subr.bf16.mxu1 %v2603_v21 }
 0x2cd   : > { %v1011_v39 = vpop.f32.mrb[4].mxu1 }
 0x2ce   : > { %v1012_v40 = vadd.f32 %v1011_v39, %v2875_v38  ;;  %v2268_v41 = vpop.f32.mrb[5].mxu1  ;;  %v2473_v39 = vld [vmem:[%s3097_s1 + $0x30] sm:$0xff]  }
 0x2cf   : > { %v1014_v42 = vpop.f32.mrb[6].mxu1 }
 0x2d0   : > { %v2269_v43 = vpop.f32.mrb[7].mxu1  ;;  %v1018_v44 = vsel %vm1017_vm7, %v1012_v40, -inf }
 0x2d1   : > { %1019 = vmax.xlane.f32.xlu0 %v1018_v44 }
 0x35e   : > { %v1020_v45 = vpop.xlane.xlu0 %1019 }
 0x35f   : > { %v1021_v46 = vsub.f32 %v1012_v40, %v1020_v45  ;;  %v2474_v40 = vld [vmem:[%s3097_s1 + $0x38] sm:$0xff]  }
 0x361   : > { %v1022_v47 = vmul.f32 1.442695, %v1021_v46 }
 0x363   : > { %2487 = vpow2.f32 %v1022_v47 }
 0x36d   : > { %v2488_v48 = vpop.eup %2487 }
 0x36e   : > { %v1024_v49 = vsel %vm1017_vm7, %v2488_v48, 0.0 }
 0x36f   : > { %1025 = vadd.xlane.f32.xlu0 %v1024_v49 }
 0x3fc   : > { %v1026_v51 = vpop.xlane.xlu0 %1025 }
 0x3fd   : > { %2489 = vrcp.f32 %v1026_v51 }
 0x407   : > { %v2490_v52 = vpop.eup %2489 }
 0x408   : > { %v1028_v53 = vmul.f32 %v2490_v52, %v2488_v48 }
 0x40a   : > { %v1029_v55 = vpack.c.bf16 %v1028_v53, %v1028_v53 }
 0x40c   : > { %2273 = vmatmul.mubr.msk.bf16.vlgmr.msra.gmra.mrb[8].mxu1 %vm1017_vm7, %v1029_v55 }
 0x40d   : > { %2277 = vmatpush3.bf16.msra.mxu1 %v2469_v54  ;;  %2280 = vmatprep.mubr.msk.bf16.mxu1 %vm2604_vm3, %v2603_v21 }
 0x40e   : > { %2278 = vmatprep.subr.bf16.mxu1 %v2603_v21 }
 0x411   : > { %2279 = vmatpush3.bf16.msra.mxu1 %v2470_v56  ;;  %v1384_v56 = vld [vmem:[#allocation3 + $0x10] sm:$0xff] }
 0x412   : > { %2290 = vmatprep.subr.bf16.mxu1 %v2603_v21 }
 0x414   : > { %2281 = vmatmul.mubr.msk.bf16.vlgmr.msra.gmra.mrb[12].mxu1 %vm924_vm5, %v2857_v25 }
 0x415   : > { %2292 = vmatprep.mubr.msk.bf16.mxu1 %vm2604_vm3, %v2603_v21  ;;  %2291 = vmatpush3.bf16.msra.mxu1 %v1204_v22 }
 0x416   : > { %2304 = vmatprep.subr.bf16.mxu1 %v2603_v21 }
 0x4df   : > { %v1068_v59 = vpop.f32.mrb[8].mxu1 }
 0x4e0   : > { %v1074_v60 = vpack.c.bf16 %v1068_v59, %v1068_v59  ;;  %v2274_v61 = vpop.f32.mrb[9].mxu1 }
 0x4e1   : > { %v1071_v62 = vpop.f32.mrb[10].mxu1 }
 0x4e2   : > { %1076 = vst.msk [vmem:[#allocation4] sm:$0xf] %vm1075_vm8, %v1074_v60  ;;  %v2275_v63 = vpop.f32.mrb[11].mxu1 }
 0x4e3   : > { %v1504_v63 = vld [vmem:[#allocation2 + $0x18] sm:$0xff] }
 0x4e7   : > { %v1136_v2 = vpop.f32.mrb[12].mxu1 }
 0x4e8   : > { %v1137_v3 = vadd.f32 %v2070_v1, %v1136_v2  ;;  %v2282_v4 = vpop.f32.mrb[13].mxu1  ;;  %v2094_v2 = vld [vmem:[%s3098_s2 + $0x3] ss:$0 sm:$0xff] }
 0x4e9   : > { %v1139_v5 = vpop.f32.mrb[14].mxu1  ;;  %v1509_v4 = vsel %vm970_vm4, %v1504_v63, 0 }
 0x4ea   : > { %v1142_v6 = vpack.c.bf16 %v1137_v3, %v1137_v3  ;;  %v2283_v7 = vpop.f32.mrb[15].mxu1 }
 0x4ec   : > { %2287 = vmatmul.mubr.msk.bf16.vlgmr.msra.gmra.mrb[0].mxu0 %vm970_vm4, %v1142_v6 }
 0x4ed   : > { %2300 = vmatprep.mubr.msk.bf16.mxu0 %vm2604_vm3, %v2603_v21  ;;  %2297 = vmatpush3.bf16.msra.mxu0 %v2471_v8 }
 0x4ee   : > { %2298 = vmatprep.subr.bf16.mxu0 %v2603_v21 }
 0x4f1   : > { %2299 = vmatpush3.bf16.msra.mxu0 %v2472_v9 }
 0x4f2   : > { %2310 = vmatprep.subr.bf16.mxu0 %v2603_v21 }
 0x4f4   : > { %2301 = vmatmul.mubr.msk.bf16.vlgmr.msra.gmra.mrb[4].mxu0 %vm924_vm5, %v2857_v25 }
 0x4f5   : > { %2312 = vmatprep.mubr.msk.bf16.mxu0 %vm2604_vm3, %v2603_v21  ;;  %2311 = vmatpush3.bf16.msra.mxu0 %v1384_v56 }
 0x4f6   : > { %2324 = vmatprep.subr.bf16.mxu0 %v2603_v21 }
 0x5bf   : > { %v1185_v10 = vpop.f32.mrb[0].mxu0 }
 0x5c0   : > { %v1186_v11 = vadd.f32 %v1185_v10, %v2875_v38  ;;  %v2288_v12 = vpop.f32.mrb[1].mxu0 }
 0x5c1   : > { %v1188_v13 = vpop.f32.mrb[2].mxu0 }
 0x5c2   : > { %v2289_v14 = vpop.f32.mrb[3].mxu0  ;;  %v1191_v15 = vsel %vm1017_vm7, %v1186_v11, -inf }
 0x5c3   : > { %1192 = vmax.xlane.f32.xlu1 %v1191_v15 }
 0x5c7   : > { %v1316_v23 = vpop.f32.mrb[4].mxu0 }
 0x5c8   : > { %v2302_v24 = vpop.f32.mrb[5].mxu0  ;;  %v1317_v36 = vadd.f32 %v2082_v32, %v1316_v23  ;;  %v2475_v32 = vld [vmem:[%s3099_s3] sm:$0xff]  }
 0x5c9   : > { %v1319_v26 = vpop.f32.mrb[6].mxu0 }
 0x5ca   : > { %v2303_v27 = vpop.f32.mrb[7].mxu0  ;;  %v1322_v37 = vpack.c.bf16 %v1317_v36, %v1317_v36  ;;  %v1564_v26 = vld [vmem:[#allocation3 + $0x18] sm:$0xff] }
 0x650   : > { %v1193_v16 = vpop.xlane.xlu1 %1192 }
 0x651   : > { %v1194_v17 = vsub.f32 %v1186_v11, %v1193_v16 }
 0x653   : > { %v1195_v18 = vmul.f32 1.442695, %v1194_v17 }
 0x655   : > { %2491 = vpow2.f32 %v1195_v18 }
 0x65f   : > { %v2492_v19 = vpop.eup %2491 }
 0x660   : > { %v1197_v20 = vsel %vm1017_vm7, %v2492_v19, 0.0 }
 0x661   : > { %1198 = vadd.xlane.f32.xlu1 %v1197_v20 }
 0x6ee   : > { %v1199_v28 = vpop.xlane.xlu1 %1198 }
 0x6ef   : > { %2493 = vrcp.f32 %v1199_v28 }
 0x6f9   : > { %v2494_v29 = vpop.eup %2493 }
 0x6fa   : > { %v1201_v31 = vmul.f32 %v2494_v29, %v2492_v19 }
 0x6fc   : > { %v1202_v33 = vpack.c.bf16 %v1201_v31, %v1201_v31 }
 0x6fe   : > { %2293 = vmatmul.mubr.msk.bf16.vlgmr.msra.gmra.mrb[16].mxu1 %vm1017_vm7, %v1202_v33  ;;  %v2476_v33 = vld [vmem:[%s3099_s3 + $0x8] sm:$0xff]  }
 0x6ff   : > { %2305 = vmatpush3.bf16.xpose.msra.mxu1 %v1329_v35  ;;  %2306 = vmatprep.mubr.msk.bf16.mxu1 %vm2604_vm3, %v2603_v21  ;;  %v2477_v35 = vld [vmem:[%s3101_s5] sm:$0xff]  }
 0x700   : > { %2316 = vmatprep.subr.bf16.mxu1 %v2603_v21 }
 0x706   : > { %2307 = vmatmul.mubr.msk.bf16.vlgmr.msra.gmra.mrb[20].mxu1 %vm970_vm4, %v1322_v37 }
 0x707   : > { %2320 = vmatprep.mubr.msk.bf16.mxu1 %vm2604_vm3, %v2603_v21  ;;  %2317 = vmatpush3.bf16.msra.mxu1 %v2473_v39 }
 0x708   : > { %2318 = vmatprep.subr.bf16.mxu1 %v2603_v21 }
 0x70b   : > { %2319 = vmatpush3.bf16.msra.mxu1 %v2474_v40 }
 0x70c   : > { %2330 = vmatprep.subr.bf16.mxu1 %v2603_v21 }
 0x70e   : > { %2321 = vmatmul.mubr.msk.bf16.vlgmr.msra.gmra.mrb[24].mxu1 %vm924_vm5, %v2857_v25 }
 0x70f   : > { %2332 = vmatprep.mubr.msk.bf16.mxu1 %vm2604_vm3, %v2603_v21  ;;  %2331 = vmatpush3.bf16.msra.mxu1 %v1564_v26 }
 0x710   : > { %2344 = vmatprep.subr.bf16.mxu1 %v2603_v21 }
 0x7d1   : > { %v1242_v41 = vpop.f32.mrb[16].mxu1 }
 0x7d2   : > { %v2294_v42 = vpop.f32.mrb[17].mxu1  ;;  %v2122_v17 = vpack.c.bf16 %v1242_v41, %v1242_v41 }
 0x7d3   : > { %v1245_v43 = vpop.f32.mrb[18].mxu1 }
 0x7d4   : > { %v2295_v44 = vpop.f32.mrb[19].mxu1 }
 0x7d5   : > { %v2478_v44 = vld [vmem:[%s3101_s5 + $0x8] sm:$0xff]  }
 0x7d9   : > { %v1365_v45 = vpop.f32.mrb[20].mxu1 }
 0x7da   : > { %v1366_v46 = vadd.f32 %v1365_v45, %v2875_v38  ;;  %v2308_v47 = vpop.f32.mrb[21].mxu1  ;;  %v2479_v45 = vld [vmem:[%s3103_s7] sm:$0xff]  }
 0x7db   : > { %v1368_v48 = vpop.f32.mrb[22].mxu1  ;;  %v2481_v47 = vld [vmem:[%s3103_s7 + $0x10] sm:$0xff]  }
 0x7dc   : > { %v2309_v49 = vpop.f32.mrb[23].mxu1  ;;  %v1371_v50 = vsel %vm1017_vm7, %v1366_v46, -inf  ;;  %v1624_v48 = vsub.s32 0, %v2871_v34 }
 0x7dd   : > { %1372 = vmax.xlane.f32.xlu0 %v1371_v50  ;;  %v892_v50 = vunpack.c.l.bf16 %v2857_v25  ;;  %v2483_v25 = vld [vmem:[%s3103_s7 + $0x20] sm:$0xff]  }
 0x7de   : > { %v1625_v49 = vrot.slane %v2730_v0, %v1624_v48 }
 0x7e1   : > { %v1496_v57 = vpop.f32.mrb[24].mxu1 }
 0x7e2   : > { %v2322_v58 = vpop.f32.mrb[25].mxu1  ;;  %v1497_v5 = vadd.f32 %v2094_v2, %v1496_v57 }
 0x7e3   : > { %v1499_v59 = vpop.f32.mrb[26].mxu1  ;;  %v2482_v58 = vld [vmem:[%s3103_s7 + $0x18] sm:$0xff]  }
 0x7e4   : > { %v2323_v60 = vpop.f32.mrb[27].mxu1  ;;  %v1502_v6 = vpack.c.bf16 %v1497_v5, %v1497_v5  ;;  %v2484_v59 = vld [vmem:[%s3103_s7 + $0x28] sm:$0xff]  }
 0x7e5   : > { %v2485_v60 = vld [vmem:[%s3103_s7 + $0x30] sm:$0xff]  }
 0x86a   : > { %v1373_v51 = vpop.xlane.xlu0 %1372 }
 0x86b   : > { %v1374_v52 = vsub.f32 %v1366_v46, %v1373_v51  ;;  %v2480_v46 = vld [vmem:[%s3103_s7 + $0x8] sm:$0xff]  }
 0x86d   : > { %v1375_v53 = vmul.f32 1.442695, %v1374_v52 }
 0x86f   : > { %2495 = vpow2.f32 %v1375_v53 }
 0x879   : > { %v2496_v54 = vpop.eup %2495 }
 0x87a   : > { %v1377_v55 = vsel %vm1017_vm7, %v2496_v54, 0.0 }
 0x87b   : > { %1378 = vadd.xlane.f32.xlu1 %v1377_v55 }
 0x908   : > { %v1379_v61 = vpop.xlane.xlu1 %1378 }
 0x909   : > { %2497 = vrcp.f32 %v1379_v61  ;;  %v2486_v61 = vld [vmem:[%s3103_s7 + $0x38] sm:$0xff]  }
 0x913   : > { %v2498_v62 = vpop.eup %2497 }
 0x914   : > { %v1381_v1 = vmul.f32 %v2498_v62, %v2496_v54  ;;  %v2104_v62 = vld [vmem:[%s3102_s6] ss:$0 sm:$0xff] }
 0x916   : > { %v1382_v3 = vpack.c.bf16 %v1381_v1, %v1381_v1 }
 0x918   : > { %2313 = vmatmul.mubr.msk.bf16.vlgmr.msra.gmra.mrb[8].mxu0 %vm1017_vm7, %v1382_v3 }
 0x919   : > { %2325 = vmatpush3.bf16.xpose.msra.mxu0 %v1509_v4  ;;  %2326 = vmatprep.mubr.msk.bf16.mxu0 %vm2604_vm3, %v2603_v21 }
 0x91a   : > { %2336 = vmatprep.subr.bf16.mxu0 %v2603_v21 }
 0x920   : > { %2327 = vmatmul.mubr.msk.bf16.vlgmr.msra.gmra.mrb[12].mxu0 %vm970_vm4, %v1502_v6 }
 0x921   : > { %2340 = vmatprep.mubr.msk.bf16.mxu0 %vm2604_vm3, %v2603_v21  ;;  %2337 = vmatpush3.bf16.msra.mxu0 %v2475_v32 }
 0x922   : > { %2338 = vmatprep.subr.bf16.mxu0 %v2603_v21 }
 0x925   : > { %2339 = vmatpush3.bf16.msra.mxu0 %v2476_v33 }
 0x926   : > { %2352 = vmatprep.subr.bf16.mxu0 %v2603_v21 }
 0x9eb   : > { %v1422_v7 = vpop.f32.mrb[8].mxu0 }
 0x9ec   : > { %v2314_v8 = vpop.f32.mrb[9].mxu0 }
 0x9ed   : > { %v1425_v9 = vpop.f32.mrb[10].mxu0 }
 0x9ee   : > { %v2315_v10 = vpop.f32.mrb[11].mxu0 }
 0x9ef   : > { %v1684_v10 = vsub.s32 2, %v2871_v34 }
 0x9f3   : > { %v1545_v11 = vpop.f32.mrb[12].mxu0 }
 0x9f4   : > { %v1546_v12 = vadd.f32 %v1545_v11, %v2875_v38  ;;  %v2328_v13 = vpop.f32.mrb[13].mxu0  ;;  %v2123_v38 = vpack.c.bf16 %v1422_v7, %v1422_v7  ;;  %v1685_v11 = vrot.slane %v2730_v0, %v1684_v10 }
 0x9f5   : > { %v1548_v14 = vpop.f32.mrb[14].mxu0  ;;  %v1783_v13 = vsub.s32 1, %v2871_v34 }
 0x9f6   : > { %v2329_v15 = vpop.f32.mrb[15].mxu0  ;;  %v1551_v16 = vsel %vm1017_vm7, %v1546_v12, -inf }
 0x9f7   : > { %1552 = vmax.xlane.f32.xlu0 %v1551_v16  ;;  %v1784_v16 = vrot.slane %v2730_v0, %v1783_v13 }
 0xa0d   : > { %1252 = vrot.lane.b32.xlu0 %v2122_v17, %s2605_s22  ;;  %v1876_v17 = vsub.s32 4, %v2871_v34  ;;  %s2608_s22 = smov [#allocation5]  }
 0xa84   : > { %v1553_v18 = vpop.xlane.xlu0 %1552 }
 0xa85   : > { %v1554_v19 = vsub.f32 %v1546_v12, %v1553_v18  ;;  %v1689_v12 = vsub.s32 3, %v2871_v34  ;;  %v1881_v18 = vsub.s32 5, %v2871_v34 }
 0xa87   : > { %v1555_v20 = vmul.f32 1.442695, %v1554_v19  ;;  %v1690_v15 = vrot.slane %v2730_v0, %v1689_v12 }
 0xa88   : > { %v1253_v22 = vpop.permute.xlu0 %1252 }
 0xa89   : > { %2499 = vpow2.f32 %v1555_v20  ;;  %1256 = vst.msk [vmem:[#allocation4] sm:$0xf] %vm1255_vm9, %v1253_v22 }
 0xa93   : > { %v2500_v23 = vpop.eup %2499 }
 0xa94   : > { %v1557_v24 = vsel %vm1017_vm7, %v2500_v23, 0.0 }
 0xa95   : > { %1558 = vadd.xlane.f32.xlu1 %v1557_v24 }
 0xaa6   : > { %1432 = vrot.lane.b32.xlu1 %v2123_v38, %s2606_s25  ;;  %s2509_s25 = sshll.u32 %s2608_s22, 4  ;;  %s2510_s25 = int_to_ptr.vmem [resolvable:$false] %s2509_s25 }
 0xaa7   : > { %s2511_s26 = scalar_lea.vmem %s2510_s25, 256  ;;  %p2512_p4 = scmp.lt.s32.totalorder %s3040_s9, %s2510_s25 }
 0xb22   : > { %v1559_v27 = vpop.xlane.xlu1 %1558 }
 0xb23   : > { %2501 = vrcp.f32 %v1559_v27 }
 0xb26   : > { %v1433_v28 = vpop.permute.xlu1 %1432 }
 0xb27   : > { %1436 = vst.msk [vmem:[#allocation4] sm:$0xf] %vm1435_vm10, %v1433_v28  ;;  %v1882_v28 = vrot.slane %v2730_v0, %v1881_v18 }
 0xb2d   : > { %v2502_v29 = vpop.eup %2501 }
 0xb2e   : > { %v1561_v30 = vmul.f32 %v2502_v29, %v2500_v23  ;;  %v1877_v23 = vrot.slane %v2730_v0, %v1876_v17 }
 0xb30   : > { %v1562_v31 = vpack.c.bf16 %v1561_v30, %v1561_v30 }
 0xb32   : > { %2333 = vmatmul.mubr.msk.bf16.vlgmr.msra.gmra.mrb[28].mxu1 %vm1017_vm7, %v1562_v31 }
 0xb33   : > { %2348 = vmatprep.mubr.msk.bf16.mxu1 %vm2604_vm3, %v2603_v21  ;;  %2345 = vmatpush3.bf16.msra.mxu1 %v2477_v35 }
 0xb34   : > { %2346 = vmatprep.subr.bf16.mxu1 %v2603_v21 }
 0xb37   : > { %2347 = vmatpush3.bf16.msra.mxu1 %v2478_v44 }
 0xc05   : > { %v1602_v36 = vpop.f32.mrb[28].mxu1 }
 0xc06   : > { %v2124_v37 = vpack.c.bf16 %v1602_v36, %v1602_v36  ;;  %v2334_v39 = vpop.f32.mrb[29].mxu1 }
 0xc07   : > { %v1605_v40 = vpop.f32.mrb[30].mxu1 }
 0xc08   : > { %1612 = vrot.lane.b32.xlu1 %v2124_v37, %s2607_s21  ;;  %v2335_v41 = vpop.f32.mrb[31].mxu1  ;;  %s2505_s21 = scalar_lea.vmem %s3040_s9, 128 }
 0xc09   : > { %p2506_p0 = scmp.ne.s32.totalorder %s3040_s9, %s2505_s21  ;;  %p2513_p5 = scmp.lt.s32.totalorder %s2511_s26, %s2505_s21 }
 0xc0b   : > { %p2507_p1 = pnand %p2506_p0, %p2705_p3  ;;  %p2514_p6 = por %p2513_p5, %p2512_p4 }
 0xc0d   : > { %p2508_p2 = pneg %p2507_p1 }
 0xc0f   : > { %p2515_p7 = pnand %p2514_p6, %p2508_p2 }
 0xc7a   : > { %v1613_v42 = vpop.permute.xlu1 %1612 }
 0xc7b   : > { %1616 = vst.msk [vmem:[#allocation4] sm:$0xf] %vm1615_vm11, %v1613_v42 }
 0xc82   : > { %v1617_v43 = vld [vmem:[#allocation4] sm:$0xf] }
 0xc83   : > { %2341 = vmatmul.mubr.msk.bf16.vlgmr.msra.gmra.mrb[16].mxu0 %vm924_vm5, %v1617_v43 }
 0xc84   : > { %2368 = vmatprep.mubr.msk.bf16.mxu0 %vm2604_vm3, %v2603_v21  ;;  %2353 = vmatpush3.bf16.msra.mxu0 %v2479_v45 }
 0xc85   : > { %2354 = vmatprep.subr.bf16.mxu0 %v2603_v21 }
 0xc88   : > { %2355 = vmatpush3.bf16.msra.mxu0 %v2480_v46 }
 0xc89   : > { %2356 = vmatprep.subr.bf16.mxu0 %v2603_v21 }
 0xc8c   : > { %2357 = vmatpush3.bf16.msra.mxu0 %v2481_v47 }
 0xc8d   : > { %2358 = vmatprep.subr.bf16.mxu0 %v2603_v21 }
 0xc90   : > { %2359 = vmatpush3.bf16.msra.mxu0 %v2482_v58 }
 0xc91   : > { %2360 = vmatprep.subr.bf16.mxu0 %v2603_v21 }
 0xc94   : > { %2361 = vmatpush3.bf16.msra.mxu0 %v2483_v25 }
 0xc95   : > { %2362 = vmatprep.subr.bf16.mxu0 %v2603_v21 }
 0xc98   : > { %2363 = vmatpush3.bf16.msra.mxu0 %v2484_v59 }
 0xc99   : > { %2364 = vmatprep.subr.bf16.mxu0 %v2603_v21 }
 0xc9c   : > { %2365 = vmatpush3.bf16.msra.mxu0 %v2485_v60 }
 0xc9d   : > { %2366 = vmatprep.subr.bf16.mxu0 %v2603_v21 }
 0xca0   : > { %2367 = vmatpush3.bf16.msra.mxu0 %v2486_v61 }
 0xd56   : > { %v1675_v51 = vpop.f32.mrb[16].mxu0 }
 0xd57   : > { %v1676_v52 = vadd.f32 %v1675_v51, %v1625_v49  ;;  %v2342_v53 = vpop.f32.mrb[17].mxu0 }
 0xd58   : > { %v1678_v54 = vpop.f32.mrb[18].mxu0 }
 0xd59   : > { %v1681_v55 = vadd.f32 %v1676_v52, %v892_v50  ;;  %v2343_v56 = vpop.f32.mrb[19].mxu0 }
 0xd5b   : > { %v1692_v57 = vpack.c.bf16 %v1681_v55, %v1681_v55  ;;  %v1686_v14 = vmul.f32 %v1685_v11, %v1681_v55 }
 0xd5d   : > { %2349 = vmatmul.mubr.msk.bf16.vlgmr.msra.gmra.mrb[32].mxu1 %vm924_vm5, %v1692_v57  ;;  %v1691_v20 = vadd.f32 %v1690_v15, %v1686_v14 }
 0xe30   : > { %v1753_v63 = vpop.f32.mrb[32].mxu1 }
 0xe31   : > { %v1754_v1 = vadd.f32 %v2104_v62, %v1753_v63  ;;  %v2350_v2 = vpop.f32.mrb[33].mxu1 }
 0xe32   : > { %v1756_v3 = vpop.f32.mrb[34].mxu1 }
 0xe33   : > { %v1760_v4 = vmul.f32 0.70710677, %v1754_v1  ;;  %v2351_v5 = vpop.f32.mrb[35].mxu1  ;;  %v1759_v7 = vmul.f32 0.5, %v1754_v1 }
 0xe35   : > { %2503 = verf.f32 %v1760_v4 }
 0xe3f   : > { %v2504_v6 = vpop.eup %2503 }
 0xe40   : > { %v1762_v21 = vadd.f32 1.0, %v2504_v6 }
 0xe42   : > { %v1763_v8 = vmul.f32 %v1762_v21, %v1759_v7 }
 0xe44   : > { %v1764_v9 = vpack.c.bf16 %v1763_v8, %v1763_v8 }
 0xe46   : > { %2369 = vmatmul.mubr.bf16.vlgmr.msra.gmra.mrb[20].mxu0 %v1764_v9 }
 0xf19   : > { %v1867_v19 = vpop.f32.mrb[20].mxu0 }
 0xf1a   : > { %v1868_v22 = vadd.f32 %v1867_v19, %v1784_v16  ;;  %v2370_v24 = vpop.f32.mrb[21].mxu0 }
 0xf1b   : > { %v1870_v38 = vpop.f32.mrb[22].mxu0 }
 0xf1c   : > { %v1873_v26 = vadd.f32 %v1868_v22, %v1691_v20  ;;  %v2371_v27 = vpop.f32.mrb[23].mxu0 }
 0xf1e   : > { %v1878_v29 = vmul.f32 %v1877_v23, %v1873_v26 }
 0xf20   : > { %v1883_v34 = vadd.f32 %v1882_v28, %v1878_v29 }
 0xf22   : > { %1884 = vst.msk [vmem:[%s312_s16] sm:$0xff] %vm924_vm5, %v1883_v34 }
 0xf23   : > { %2518 = shalt.err (!%p2515_p7)
}
 0xf24   : > { %s2519_s16 = scalar_lea.hbm %s3038_s20, 128  ;;  %s2523_s14 = scalar_lea.hbm %s3104_s8, 512 }
 0xf25   : > { %p2520_p9 = scmp.ne.s32.totalorder %s3038_s20, %s2519_s16  ;;  %p2524_p12 = scmp.lt.u32.totalorder %s3038_s20, %s3104_s8 }
 0xf26   : > { %p2525_p13 = scmp.lt.u32.totalorder %s2523_s14, %s2519_s16  ;;  %p2527_p1 = scmp.lt.u32.totalorder %s2519_s16, %s3038_s20 }
 0xf27   : > { %p2521_p10 = pnand %p2520_p9, %p2705_p3 }
 0xf28   : > { %p2526_p0 = por %p2525_p13, %p2524_p12 }
 0xf29   : > { %p2522_p11 = pneg %p2521_p10 }
 0xf2a   : > { %p2528_p2 = por %p2527_p1, %p2526_p0 }
 0xf2c   : > { %p2529_p4 = pnand %p2528_p2, %p2522_p11 }
 0xf2e   : > { %2532 = shalt.err (!%p2529_p4)
}
 0xf2f   : > { %2372 = dma.vmem_to_hbm [thread:$0]  (%p2705_p3), %s3040_s9, 128, %s3038_s20, %s1886_s30  }
 0xf30 PF: > { %p2378_p5 = scmp.ge.s32.totalorder %s2599_s12, 2  ;;  %s1913_s15 = sand.u32 1, %s2571_s27  }
 0xf31   : > { %s1914_s21 = scalar_lea.sflag [#allocation6], %s1913_s15 }
 0xf32   : > { %p2375_p6 = pnand %p2378_p5, %p2714_p8 }
 0xf34   : > { %2566 = dma.done.wait (!%p2375_p6), %s1914_s21, 128  }
 0xf35   : > { %2568 = vsyncadd (!%p2375_p6), %s1914_s21, 4294967168  ;;  %s21_s12 = sadd.s32 1, %s2599_s12   ;;  %s3113_s9 = sld [smem:[#allocation8_spill]] }
 0xf36   : > { %p18_p7 = scmp.ge.s32.totalorder %s21_s12, 6   ;;  %s3114_s18 = sld [smem:[#allocation9_spill]] }
 0xf37   : > { %s3115_s11 = sld [smem:[#allocation10_spill]]  ;;  %s3116_s27 = smov %s2575_s28 }
 0xf38   : > { %s3117_s28 = smov %s2579_s29  ;;  %s3118_s29 = smov %s2723_s23 }
 0xf39   : > { %s3119_s30 = smov %s2591_s10  ;;  %20 = sbr.rel (!%p18_p7) target bundleno = 5 (0x5), region = 126 }
 0xf3c   : > { %s3120_s10 = smov %s3114_s18 }
 0xf40   :  { %1919 = vsyncpa [#allocation6], 1 }
 0xf41   :  { %1921 = vsyncpa [#allocation6 + $0x1], 1 }

</bundles_post_ra>
